<compile_context>
chip_gen: v5e
topology: v5e:2x2
jax: 0.10.0
libtpu: 0.0.40
codegen_flags: <defaults>
</compile_context>

<pallas_src>
import functools
import math

import jax
import jax.numpy as jnp
from jax.experimental import pallas as pl
from jax.experimental.pallas import tpu as pltpu

# ----------------------------- configuration --------------------------------
B, T, N = 2, 4, 16            # batch, time steps, points per frame
PT_DIM = 4                    # (x, y, z, t)
TNOCS_PT = 4
LOCAL_FEAT = 64               # local per-point feature size (scaled down)
LATENT_FEAT = 96              # z0 size (scaled down from 1600)
MOTION_FEAT = 16              # latent-ODE state size (scaled down from 64)
GLOBAL_FEAT = LATENT_FEAT - MOTION_FEAT
ODE_HIDDEN = 32
ODE_SUBSTEPS = 4
CNF_HIDDEN = 32
CNF_PAD = 128                 # pad conditioning proj. to 128 lanes (aligned transpose)
CNF_STEPS = 5
CNF_TOTAL_TIME = 0.5
_LOG_2PI = math.log(2.0 * math.pi)


def _full_spec(shape):
    # Full-array block (no tiling) for a grid=(1,) kernel.
    return pl.BlockSpec(shape, lambda i, _s=shape: tuple(0 for _ in _s))


# --------------------------- fused CaSPR kernel ------------------------------
def _caspr_kernel(t_ref, pts_ref, tgt_ref, xfm_ref,
                  sel2_ref, fb_ref, pb_ref, pft_ref,
                  e1w_ref, e1b_ref, e2w_ref, e2b_ref,
                  gwm_ref, gbm_ref, gwg_ref, gbg_ref,
                  t1wl_ref, t1wh_ref, t1b_ref, t2w_ref, t2b_ref,
                  ow1_ref, ob1_ref, ow2_ref, ob2_ref,
                  wzm_ref, wzg_ref, bzc1_ref,
                  cw1t_ref, cw2t_ref, cb2_ref, dvec_ref,
                  nll_ref, loss_ref,
                  *, nb, nt, npp, nu, substeps, cnf_steps, total_time):
    f32 = jnp.float32
    npts = nb * nt * npp

    # ---------------- encoder: shared per-point MLP -> per-batch max-pool ----
    # TODO(synk): TPointNet2 multi-radius set abstraction simplified to a
    # shared per-point MLP + max-pool PointNet (same input/output contract).
    pts = pts_ref[...]                                                    # (P, 4)
    h1 = jnp.maximum(jnp.dot(pts, e1w_ref[...], preferred_element_type=f32)
                     + e1b_ref[...], 0.0)                                 # (P, 64)
    h2 = jnp.maximum(jnp.dot(h1, e2w_ref[...], preferred_element_type=f32)
                     + e2b_ref[...], 0.0)                                 # (P, LOCAL)

    # per-batch max-pool: one reshape + one sublane reduce (no Python loop)
    pooled = jnp.max(h2.reshape(nb, nt * npp, h2.shape[1]), axis=1)       # (B, LOCAL)

    # z0 is produced directly split into motion / global parts (no lane slice)
    z_m = jnp.dot(pooled, gwm_ref[...], preferred_element_type=f32) + gbm_ref[...]  # (B, Hm)
    z_g = jnp.dot(pooled, gwg_ref[...], preferred_element_type=f32) + gbg_ref[...]  # (B, Gz)

    # ---------------- TNOCS regression head + MSE ----------------------------
    # concat([h2, pooled[batch(p)]]) @ t1_w
    #   == h2 @ t1w_lo + onehot_pb @ (pooled @ t1w_hi)   (no concat, no loop)
    glob_term = jnp.dot(pb_ref[...],
                        jnp.dot(pooled, t1wh_ref[...], preferred_element_type=f32),
                        preferred_element_type=f32)                       # (P, 64)
    th = jnp.maximum(jnp.dot(h2, t1wl_ref[...], preferred_element_type=f32)
                     + glob_term + t1b_ref[...], 0.0)                     # (P, 64)
    tn_pred = jax.nn.sigmoid(jnp.dot(th, t2w_ref[...], preferred_element_type=f32)
                             + t2b_ref[...])                              # (P, 4)
    d = tn_pred - tgt_ref[...]
    # TODO(synk): TPointNet2.loss details not in the reference; plain MSE used.
    loss_ref[...] = jnp.broadcast_to(jnp.mean(d * d), loss_ref.shape)     # lane-dense row

    # ---------------- latent ODE: fixed-step Euler over unique times ---------
    # TODO(synk): reference uses adaptive torchdiffeq odeint; fixed-step Euler here.
    ow1 = ow1_ref[...]; ob1 = ob1_ref[...]
    ow2 = ow2_ref[...]; ob2 = ob2_ref[...]
    z = z_m
    zs = [z]                                            # odeint: y(t0) = z0
    for k in range(1, nu):
        dt = (t_ref[k] - t_ref[k - 1]) * (1.0 / substeps)   # 0 for padded times
        for _ in range(substeps):
            h = jnp.tanh(jnp.dot(z, ow1, preferred_element_type=f32) + ob1)
            v = jnp.dot(h, ow2, preferred_element_type=f32) + ob2
            z = z + dt * v
        zs.append(z)
    zs_cat = jnp.concatenate(zs, axis=0)                # (U*B, Hm), row = u*B + b

    # ---------------- gather to frames + conditioning projection -------------
    # sample_feats @ cnf_wz + bz + cb1, computed at frame level via one-hot
    # MXU matmuls; the per-point replication is one more matmul below.
    m_feats = jnp.dot(zs_cat, wzm_ref[...], preferred_element_type=f32)   # (U*B, 128)
    g_feats = jnp.dot(z_g, wzg_ref[...], preferred_element_type=f32)      # (B, 128)
    cond = (jnp.dot(sel2_ref[...], m_feats, preferred_element_type=f32)
            + jnp.dot(fb_ref[...], g_feats, preferred_element_type=f32)
            + bzc1_ref[...])                                              # (B*T, 128)
    cond_t = cond.T                                     # native (8,128)->(128,8) transpose
    # loop-invariant feature-major bias, hoisted out of the CNF Euler loop
    bias_fm = jnp.dot(cond_t[:CNF_HIDDEN, :], pft_ref[...],
                      preferred_element_type=f32)                         # (Hc, P)

    # ---------------- point CNF, feature-major, exact divergence -------------
    # TODO(synk): FFJORD uses Hutchinson trace + adaptive solver; divergence
    # here is exact for the 1-hidden-layer tanh field, Euler steps.
    cw1t = cw1t_ref[...]                                # (Hc, 3)
    cw2t = cw2t_ref[...]                                # (3, Hc)
    cb2 = cb2_ref[...]                                  # (3, 1)
    dvec = dvec_ref[...]                                # (Hc, 1)
    x = xfm_ref[...]                                    # (3, P) feature-major
    dt_c = total_time / cnf_steps
    dl = jnp.zeros((1, npts), f32)
    for _ in range(cnf_steps):
        h = jnp.tanh(jnp.dot(cw1t, x, preferred_element_type=f32) + bias_fm)   # (Hc, P)
        v = jnp.dot(cw2t, h, preferred_element_type=f32) + cb2                  # (3, P)
        div = jnp.sum((1.0 - h * h) * dvec, axis=0, keepdims=True)              # (1, P)
        x = x + dt_c * v
        dl = dl - dt_c * div

    # get_nll_loss: -(sum_d logN(y_d) - delta_log_py)
    logpy = jnp.sum(-0.5 * _LOG_2PI - 0.5 * x * x, axis=0, keepdims=True)        # (1, P)
    nll_ref[...] = -(logpy - dl)                                                 # (1, P)


def caspr_pallas(params, pts, tgt, xfm, solve_t, sel2, onehot_fb, onehot_pb,
                 onehot_pft, nb, nt, npp, nu):
    p_ = nb * nt * npp
    hm, hh, hc, gz = MOTION_FEAT, ODE_HIDDEN, CNF_HIDDEN, GLOBAL_FEAT

    # Parameter splits / transposes / foldings stay in XLA (weights only) so the
    # kernel never slices or concatenates along the lane dim.
    gw_m = params["g_w"][:, :hm]
    gw_g = params["g_w"][:, hm:]
    gb_m = params["g_b"][:hm].reshape(1, hm)
    gb_g = params["g_b"][hm:].reshape(1, gz)
    t1w_lo = params["t1_w"][:LOCAL_FEAT]
    t1w_hi = params["t1_w"][LOCAL_FEAT:]
    pad = CNF_PAD - hc
    wz_m = jnp.pad(params["cnf_wz"][:hm], ((0, 0), (0, pad)))
    wz_g = jnp.pad(params["cnf_wz"][hm:], ((0, 0), (0, pad)))
    bzc1 = jnp.pad((params["cnf_bz"] + params["cnf_b1"]).reshape(1, hc),
                   ((0, 0), (0, pad)))                   # bz + cb1 folded once
    cw1_t = params["cnf_w1"].T                           # (Hc, 3)
    cw2_t = params["cnf_w2"].T                           # (3, Hc)
    cb2_c = params["cnf_b2"].reshape(3, 1)
    dvec_c = jnp.sum(params["cnf_w1"] * params["cnf_w2"].T, axis=0).reshape(hc, 1)

    kernel = functools.partial(_caspr_kernel, nb=nb, nt=nt, npp=npp, nu=nu,
                               substeps=ODE_SUBSTEPS, cnf_steps=CNF_STEPS,
                               total_time=CNF_TOTAL_TIME)

    nll, loss = pl.pallas_call(
        kernel,
        out_shape=(jax.ShapeDtypeStruct((1, p_), jnp.float32),
                   jax.ShapeDtypeStruct((1, 128), jnp.float32)),
        grid=(1,),
        in_specs=[
            pl.BlockSpec(memory_space=pltpu.MemorySpace.SMEM),       # solve_t (U,)
            _full_spec((p_, PT_DIM)),
            _full_spec((p_, TNOCS_PT)),
            _full_spec((3, p_)),
            _full_spec((nb * nt, nu * nb)),
            _full_spec((nb * nt, nb)),
            _full_spec((p_, nb)),
            _full_spec((nb * nt, p_)),
            _full_spec((PT_DIM, 64)), _full_spec((1, 64)),
            _full_spec((64, LOCAL_FEAT)), _full_spec((1, LOCAL_FEAT)),
            _full_spec((LOCAL_FEAT, hm)), _full_spec((1, hm)),
            _full_spec((LOCAL_FEAT, gz)), _full_spec((1, gz)),
            _full_spec((LOCAL_FEAT, 64)), _full_spec((LOCAL_FEAT, 64)),
            _full_spec((1, 64)),
            _full_spec((64, TNOCS_PT)), _full_spec((1, TNOCS_PT)),
            _full_spec((hm, hh)), _full_spec((1, hh)),
            _full_spec((hh, hm)), _full_spec((1, hm)),
            _full_spec((hm, CNF_PAD)), _full_spec((gz, CNF_PAD)),
            _full_spec((1, CNF_PAD)),
            _full_spec((hc, 3)), _full_spec((3, hc)), _full_spec((3, 1)),
            _full_spec((hc, 1)),
        ],
        out_specs=(_full_spec((1, p_)), _full_spec((1, 128))),
        compiler_params=pltpu.CompilerParams(
            dimension_semantics=("arbitrary",)),
    )(solve_t.astype(jnp.float32), pts, tgt, xfm,
      sel2, onehot_fb, onehot_pb, onehot_pft,
      params["e1_w"], params["e1_b"].reshape(1, 64),
      params["e2_w"], params["e2_b"].reshape(1, LOCAL_FEAT),
      gw_m, gb_m, gw_g, gb_g,
      t1w_lo, t1w_hi, params["t1_b"].reshape(1, 64),
      params["t2_w"], params["t2_b"].reshape(1, TNOCS_PT),
      params["ode_w1"], params["ode_b1"].reshape(1, hh),
      params["ode_w2"], params["ode_b2"].reshape(1, hm),
      wz_m, wz_g, bzc1,
      cw1_t, cw2_t, cb2_c, dvec_c)
    return nll, loss[0, 0]


# ------------------------------ forward pass ---------------------------------
@functools.partial(jax.jit, static_argnames=("max_unique_times",))
def caspr_forward(params, x, sample_points, max_unique_times=None):
    b_, t_, n_, _ = x.shape
    p_ = b_ * t_ * n_
    # Static upper bound on the number of unique timestamps across the batch
    # (T when all sequences share timestamps, B*T worst case).  A smaller bound
    # shortens the serial latent-ODE chain inside the kernel.
    nu = b_ * t_ if max_unique_times is None else max_unique_times

    pts = x.reshape(p_, PT_DIM)
    tgt = sample_points[..., :TNOCS_PT].reshape(p_, TNOCS_PT)
    xfm = sample_points[..., :3].reshape(p_, 3).T                 # (3, P) feature-major

    # Unique timestamps + inverse map stay in XLA (data-dependent values).
    # fill_value pads solve_t with copies of the max time: padded Euler segments
    # integrate dt = 0 (no-op) and padded sel2 columns are never selected.
    all_times = sample_points[:, :, 0, 3].reshape(-1)             # (B*T,)
    solve_t, time_map = jnp.unique(all_times, size=nu,
                                   fill_value=jnp.max(all_times),
                                   return_inverse=True)

    # One-hot matrices so every in-kernel gather / broadcast is one MXU matmul:
    #   sel2       : frame  -> (unique-time, batch)   (data-dependent)
    #   onehot_fb  : frame  -> batch                  (static)
    #   onehot_pb  : point  -> batch                  (static)
    #   onehot_pft : frame  -> point (transposed)     (static)
    tm = time_map.reshape(b_, t_)
    onehot_u = (tm[:, :, None] == jnp.arange(nu)[None, None, :]).astype(jnp.float32)
    eye_b = jnp.eye(b_, dtype=jnp.float32)
    sel2 = (onehot_u[:, :, :, None] * eye_b[:, None, None, :]).reshape(b_ * t_, nu * b_)

    frame_ids = jnp.arange(b_ * t_)
    point_ids = jnp.arange(p_)
    onehot_fb = (frame_ids[:, None] // t_ == jnp.arange(b_)[None, :]).astype(jnp.float32)
    onehot_pb = (point_ids[:, None] // (t_ * n_) == jnp.arange(b_)[None, :]).astype(jnp.float32)
    onehot_pft = (point_ids[None, :] // n_ == frame_ids[:, None]).astype(jnp.float32)

    nll, tnocs_loss = caspr_pallas(params, pts, tgt, xfm, solve_t, sel2,
                                   onehot_fb, onehot_pb, onehot_pft,
                                   b_, t_, n_, nu)
    recon_loss = nll.reshape(b_, t_, n_)                          # get_nll_loss
    return recon_loss, tnocs_loss


# ----------------------------- parameter init --------------------------------
def init_params(key):
    def lin(k, din, dout):
        w = jax.random.normal(k, (din, dout), jnp.float32) / jnp.sqrt(float(din))
        return w, jnp.zeros((dout,), jnp.float32)

    keys = jax.random.split(key, 10)
    p = {}
    p["e1_w"], p["e1_b"] = lin(keys[0], PT_DIM, 64)
    p["e2_w"], p["e2_b"] = lin(keys[1], 64, LOCAL_FEAT)
    p["g_w"], p["g_b"] = lin(keys[2], LOCAL_FEAT, LATENT_FEAT)
    p["t1_w"], p["t1_b"] = lin(keys[3], 2 * LOCAL_FEAT, 64)
    p["t2_w"], p["t2_b"] = lin(keys[4], 64, TNOCS_PT)
    p["ode_w1"], p["ode_b1"] = lin(keys[5], MOTION_FEAT, ODE_HIDDEN)
    p["ode_w2"], p["ode_b2"] = lin(keys[6], ODE_HIDDEN, MOTION_FEAT)
    p["cnf_wz"], p["cnf_bz"] = lin(keys[7], LATENT_FEAT, CNF_HIDDEN)
    p["cnf_w1"], p["cnf_b1"] = lin(keys[8], 3, CNF_HIDDEN)
    p["cnf_w2"], p["cnf_b2"] = lin(keys[9], CNF_HIDDEN, 3)
    return p


# --------------------------------- main ---------------------------------------
if __name__ == "__main__":
    key = jax.random.PRNGKey(0)
    k1, k2, kp = jax.random.split(key, 3)
    coords_x = jax.random.normal(k1, (B, T, N, 3), jnp.float32)
    coords_s = jax.random.uniform(k2, (B, T, N, 3), jnp.float32)
    times = jnp.broadcast_to(jnp.linspace(0.0, 1.0, T)[None, :, None, None],
                             (B, T, N, 1)).astype(jnp.float32)
    x = jnp.concatenate([coords_x, times], axis=-1)              # (B,T,N,4)
    sample_points = jnp.concatenate([coords_s, times], axis=-1)  # (B,T,N,4)

    params = init_params(kp)
    # Timestamps are shared across the batch => at most T unique times; this
    # halves the serial latent-ODE chain inside the kernel vs. B*T.
    recon_loss, tnocs_loss = caspr_forward(params, x, sample_points,
                                           max_unique_times=T)
    jax.block_until_ready((recon_loss, tnocs_loss))
    assert recon_loss.shape == (B, T, N)
    assert tnocs_loss.shape == ()
    print("KERNEL_OK")
</pallas_src>

<mosaic_0001>
module attributes {stable_mosaic.version = 11 : i64} {
  func.func @_caspr_kernel(%arg0: i32, %arg1: memref<4xf32, #tpu.memory_space<smem>>, %arg2: memref<128x4xf32, #tpu.memory_space<vmem>>, %arg3: memref<128x4xf32, #tpu.memory_space<vmem>>, %arg4: memref<3x128xf32, #tpu.memory_space<vmem>>, %arg5: memref<8x8xf32, #tpu.memory_space<vmem>>, %arg6: memref<8x2xf32, #tpu.memory_space<vmem>>, %arg7: memref<128x2xf32, #tpu.memory_space<vmem>>, %arg8: memref<8x128xf32, #tpu.memory_space<vmem>>, %arg9: memref<4x64xf32, #tpu.memory_space<vmem>>, %arg10: memref<1x64xf32, #tpu.memory_space<vmem>>, %arg11: memref<64x64xf32, #tpu.memory_space<vmem>>, %arg12: memref<1x64xf32, #tpu.memory_space<vmem>>, %arg13: memref<64x16xf32, #tpu.memory_space<vmem>>, %arg14: memref<1x16xf32, #tpu.memory_space<vmem>>, %arg15: memref<64x80xf32, #tpu.memory_space<vmem>>, %arg16: memref<1x80xf32, #tpu.memory_space<vmem>>, %arg17: memref<64x64xf32, #tpu.memory_space<vmem>>, %arg18: memref<64x64xf32, #tpu.memory_space<vmem>>, %arg19: memref<1x64xf32, #tpu.memory_space<vmem>>, %arg20: memref<64x4xf32, #tpu.memory_space<vmem>>, %arg21: memref<1x4xf32, #tpu.memory_space<vmem>>, %arg22: memref<16x32xf32, #tpu.memory_space<vmem>>, %arg23: memref<1x32xf32, #tpu.memory_space<vmem>>, %arg24: memref<32x16xf32, #tpu.memory_space<vmem>>, %arg25: memref<1x16xf32, #tpu.memory_space<vmem>>, %arg26: memref<16x128xf32, #tpu.memory_space<vmem>>, %arg27: memref<80x128xf32, #tpu.memory_space<vmem>>, %arg28: memref<1x128xf32, #tpu.memory_space<vmem>>, %arg29: memref<32x3xf32, #tpu.memory_space<vmem>>, %arg30: memref<3x32xf32, #tpu.memory_space<vmem>>, %arg31: memref<3x1xf32, #tpu.memory_space<vmem>>, %arg32: memref<32x1xf32, #tpu.memory_space<vmem>>, %arg33: memref<1x128xf32, #tpu.memory_space<vmem>>, %arg34: memref<1x128xf32, #tpu.memory_space<vmem>>) attributes {dimension_semantics = [#tpu.dimension_semantics<arbitrary>], iteration_bounds = array<i64: 1>, scalar_prefetch = 0 : i64, scratch_operands = 0 : i64, tpu.core_type = #tpu.core_type<tc>, window_params = [{transform_indices = @transform_0, window_bounds = array<i64: 4>}, {pipeline_mode = #tpu.pipeline_mode<synchronous>, transform_indices = @transform_1, window_bounds = array<i64: 128, 4>}, {pipeline_mode = #tpu.pipeline_mode<synchronous>, transform_indices = @transform_2, window_bounds = array<i64: 128, 4>}, {pipeline_mode = #tpu.pipeline_mode<synchronous>, transform_indices = @transform_3, window_bounds = array<i64: 3, 128>}, {pipeline_mode = #tpu.pipeline_mode<synchronous>, transform_indices = @transform_4, window_bounds = array<i64: 8, 8>}, {pipeline_mode = #tpu.pipeline_mode<synchronous>, transform_indices = @transform_5, window_bounds = array<i64: 8, 2>}, {pipeline_mode = #tpu.pipeline_mode<synchronous>, transform_indices = @transform_6, window_bounds = array<i64: 128, 2>}, {pipeline_mode = #tpu.pipeline_mode<synchronous>, transform_indices = @transform_7, window_bounds = array<i64: 8, 128>}, {pipeline_mode = #tpu.pipeline_mode<synchronous>, transform_indices = @transform_8, window_bounds = array<i64: 4, 64>}, {pipeline_mode = #tpu.pipeline_mode<synchronous>, transform_indices = @transform_9, window_bounds = array<i64: 1, 64>}, {pipeline_mode = #tpu.pipeline_mode<synchronous>, transform_indices = @transform_10, window_bounds = array<i64: 64, 64>}, {pipeline_mode = #tpu.pipeline_mode<synchronous>, transform_indices = @transform_11, window_bounds = array<i64: 1, 64>}, {pipeline_mode = #tpu.pipeline_mode<synchronous>, transform_indices = @transform_12, window_bounds = array<i64: 64, 16>}, {pipeline_mode = #tpu.pipeline_mode<synchronous>, transform_indices = @transform_13, window_bounds = array<i64: 1, 16>}, {pipeline_mode = #tpu.pipeline_mode<synchronous>, transform_indices = @transform_14, window_bounds = array<i64: 64, 80>}, {pipeline_mode = #tpu.pipeline_mode<synchronous>, transform_indices = @transform_15, window_bounds = array<i64: 1, 80>}, {pipeline_mode = #tpu.pipeline_mode<synchronous>, transform_indices = @transform_16, window_bounds = array<i64: 64, 64>}, {pipeline_mode = #tpu.pipeline_mode<synchronous>, transform_indices = @transform_17, window_bounds = array<i64: 64, 64>}, {pipeline_mode = #tpu.pipeline_mode<synchronous>, transform_indices = @transform_18, window_bounds = array<i64: 1, 64>}, {pipeline_mode = #tpu.pipeline_mode<synchronous>, transform_indices = @transform_19, window_bounds = array<i64: 64, 4>}, {pipeline_mode = #tpu.pipeline_mode<synchronous>, transform_indices = @transform_20, window_bounds = array<i64: 1, 4>}, {pipeline_mode = #tpu.pipeline_mode<synchronous>, transform_indices = @transform_21, window_bounds = array<i64: 16, 32>}, {pipeline_mode = #tpu.pipeline_mode<synchronous>, transform_indices = @transform_22, window_bounds = array<i64: 1, 32>}, {pipeline_mode = #tpu.pipeline_mode<synchronous>, transform_indices = @transform_23, window_bounds = array<i64: 32, 16>}, {pipeline_mode = #tpu.pipeline_mode<synchronous>, transform_indices = @transform_24, window_bounds = array<i64: 1, 16>}, {pipeline_mode = #tpu.pipeline_mode<synchronous>, transform_indices = @transform_25, window_bounds = array<i64: 16, 128>}, {pipeline_mode = #tpu.pipeline_mode<synchronous>, transform_indices = @transform_26, window_bounds = array<i64: 80, 128>}, {pipeline_mode = #tpu.pipeline_mode<synchronous>, transform_indices = @transform_27, window_bounds = array<i64: 1, 128>}, {pipeline_mode = #tpu.pipeline_mode<synchronous>, transform_indices = @transform_28, window_bounds = array<i64: 32, 3>}, {pipeline_mode = #tpu.pipeline_mode<synchronous>, transform_indices = @transform_29, window_bounds = array<i64: 3, 32>}, {pipeline_mode = #tpu.pipeline_mode<synchronous>, transform_indices = @transform_30, window_bounds = array<i64: 3, 1>}, {pipeline_mode = #tpu.pipeline_mode<synchronous>, transform_indices = @transform_31, window_bounds = array<i64: 32, 1>}, {pipeline_mode = #tpu.pipeline_mode<synchronous>, transform_indices = @transform_32, window_bounds = array<i64: 1, 128>}, {pipeline_mode = #tpu.pipeline_mode<synchronous>, transform_indices = @transform_33, window_bounds = array<i64: 1, 128>}]} {
    %c0 = arith.constant 0 : index
    %c0_0 = arith.constant 0 : index
    %0 = vector.load %arg2[%c0, %c0_0] : memref<128x4xf32, #tpu.memory_space<vmem>>, vector<128x4xf32>
    %c0_1 = arith.constant 0 : index
    %c0_2 = arith.constant 0 : index
    %1 = vector.load %arg9[%c0_1, %c0_2] : memref<4x64xf32, #tpu.memory_space<vmem>>, vector<4x64xf32>
    %cst = arith.constant dense<0.000000e+00> : vector<128x64xf32>
    %2 = tpu.matmul %0, %1, %cst {dimension_numbers = #tpu.dot_dimension_numbers<[1], [0], [0], [1], [0, 0, 1, 1], [], []>} : vector<128x4xf32>, vector<4x64xf32>, vector<128x64xf32> -> vector<128x64xf32>
    %c0_3 = arith.constant 0 : index
    %c0_4 = arith.constant 0 : index
    %3 = vector.load %arg10[%c0_3, %c0_4] : memref<1x64xf32, #tpu.memory_space<vmem>>, vector<1x64xf32>
    %4 = vector.broadcast %3 : vector<1x64xf32> to vector<128x64xf32>
    %5 = arith.addf %2, %4 : vector<128x64xf32>
    %cst_5 = arith.constant 0.000000e+00 : f32
    %6 = vector.broadcast %cst_5 : f32 to vector<128x64xf32>
    %7 = arith.maximumf %5, %6 : vector<128x64xf32>
    %c0_6 = arith.constant 0 : index
    %c0_7 = arith.constant 0 : index
    %8 = vector.load %arg11[%c0_6, %c0_7] : memref<64x64xf32, #tpu.memory_space<vmem>>, vector<64x64xf32>
    %cst_8 = arith.constant dense<0.000000e+00> : vector<128x64xf32>
    %9 = tpu.matmul %7, %8, %cst_8 {dimension_numbers = #tpu.dot_dimension_numbers<[1], [0], [0], [1], [0, 0, 1, 1], [], []>} : vector<128x64xf32>, vector<64x64xf32>, vector<128x64xf32> -> vector<128x64xf32>
    %c0_9 = arith.constant 0 : index
    %c0_10 = arith.constant 0 : index
    %10 = vector.load %arg12[%c0_9, %c0_10] : memref<1x64xf32, #tpu.memory_space<vmem>>, vector<1x64xf32>
    %11 = vector.broadcast %10 : vector<1x64xf32> to vector<128x64xf32>
    %12 = arith.addf %9, %11 : vector<128x64xf32>
    %cst_11 = arith.constant 0.000000e+00 : f32
    %13 = vector.broadcast %cst_11 : f32 to vector<128x64xf32>
    %14 = arith.maximumf %12, %13 : vector<128x64xf32>
    %15 = vector.shape_cast %14 : vector<128x64xf32> to vector<2x64x64xf32>
    %cst_12 = arith.constant dense<0xFF800000> : vector<2x64xf32>
    %16 = vector.multi_reduction <maximumf>, %15, %cst_12 [1] : vector<2x64x64xf32> to vector<2x64xf32>
    %c0_13 = arith.constant 0 : index
    %c0_14 = arith.constant 0 : index
    %17 = vector.load %arg13[%c0_13, %c0_14] : memref<64x16xf32, #tpu.memory_space<vmem>>, vector<64x16xf32>
    %cst_15 = arith.constant dense<0.000000e+00> : vector<2x16xf32>
    %18 = tpu.matmul %16, %17, %cst_15 {dimension_numbers = #tpu.dot_dimension_numbers<[1], [0], [0], [1], [0, 0, 1, 1], [], []>} : vector<2x64xf32>, vector<64x16xf32>, vector<2x16xf32> -> vector<2x16xf32>
    %c0_16 = arith.constant 0 : index
    %c0_17 = arith.constant 0 : index
    %19 = vector.load %arg14[%c0_16, %c0_17] : memref<1x16xf32, #tpu.memory_space<vmem>>, vector<1x16xf32>
    %20 = vector.broadcast %19 : vector<1x16xf32> to vector<2x16xf32>
    %21 = arith.addf %18, %20 : vector<2x16xf32>
    %c0_18 = arith.constant 0 : index
    %c0_19 = arith.constant 0 : index
    %22 = vector.load %arg15[%c0_18, %c0_19] : memref<64x80xf32, #tpu.memory_space<vmem>>, vector<64x80xf32>
    %cst_20 = arith.constant dense<0.000000e+00> : vector<2x80xf32>
    %23 = tpu.matmul %16, %22, %cst_20 {dimension_numbers = #tpu.dot_dimension_numbers<[1], [0], [0], [1], [0, 0, 1, 1], [], []>} : vector<2x64xf32>, vector<64x80xf32>, vector<2x80xf32> -> vector<2x80xf32>
    %c0_21 = arith.constant 0 : index
    %c0_22 = arith.constant 0 : index
    %24 = vector.load %arg16[%c0_21, %c0_22] : memref<1x80xf32, #tpu.memory_space<vmem>>, vector<1x80xf32>
    %25 = vector.broadcast %24 : vector<1x80xf32> to vector<2x80xf32>
    %26 = arith.addf %23, %25 : vector<2x80xf32>
    %c0_23 = arith.constant 0 : index
    %c0_24 = arith.constant 0 : index
    %27 = vector.load %arg7[%c0_23, %c0_24] : memref<128x2xf32, #tpu.memory_space<vmem>>, vector<128x2xf32>
    %c0_25 = arith.constant 0 : index
    %c0_26 = arith.constant 0 : index
    %28 = vector.load %arg18[%c0_25, %c0_26] : memref<64x64xf32, #tpu.memory_space<vmem>>, vector<64x64xf32>
    %cst_27 = arith.constant dense<0.000000e+00> : vector<2x64xf32>
    %29 = tpu.matmul %16, %28, %cst_27 {dimension_numbers = #tpu.dot_dimension_numbers<[1], [0], [0], [1], [0, 0, 1, 1], [], []>} : vector<2x64xf32>, vector<64x64xf32>, vector<2x64xf32> -> vector<2x64xf32>
    %cst_28 = arith.constant dense<0.000000e+00> : vector<128x64xf32>
    %30 = tpu.matmul %27, %29, %cst_28 {dimension_numbers = #tpu.dot_dimension_numbers<[1], [0], [0], [1], [0, 0, 1, 1], [], []>} : vector<128x2xf32>, vector<2x64xf32>, vector<128x64xf32> -> vector<128x64xf32>
    %c0_29 = arith.constant 0 : index
    %c0_30 = arith.constant 0 : index
    %31 = vector.load %arg17[%c0_29, %c0_30] : memref<64x64xf32, #tpu.memory_space<vmem>>, vector<64x64xf32>
    %cst_31 = arith.constant dense<0.000000e+00> : vector<128x64xf32>
    %32 = tpu.matmul %14, %31, %cst_31 {dimension_numbers = #tpu.dot_dimension_numbers<[1], [0], [0], [1], [0, 0, 1, 1], [], []>} : vector<128x64xf32>, vector<64x64xf32>, vector<128x64xf32> -> vector<128x64xf32>
    %33 = arith.addf %32, %30 : vector<128x64xf32>
    %c0_32 = arith.constant 0 : index
    %c0_33 = arith.constant 0 : index
    %34 = vector.load %arg19[%c0_32, %c0_33] : memref<1x64xf32, #tpu.memory_space<vmem>>, vector<1x64xf32>
    %35 = vector.broadcast %34 : vector<1x64xf32> to vector<128x64xf32>
    %36 = arith.addf %33, %35 : vector<128x64xf32>
    %cst_34 = arith.constant 0.000000e+00 : f32
    %37 = vector.broadcast %cst_34 : f32 to vector<128x64xf32>
    %38 = arith.maximumf %36, %37 : vector<128x64xf32>
    %c0_35 = arith.constant 0 : index
    %c0_36 = arith.constant 0 : index
    %39 = vector.load %arg20[%c0_35, %c0_36] : memref<64x4xf32, #tpu.memory_space<vmem>>, vector<64x4xf32>
    %cst_37 = arith.constant dense<0.000000e+00> : vector<128x4xf32>
    %40 = tpu.matmul %38, %39, %cst_37 {dimension_numbers = #tpu.dot_dimension_numbers<[1], [0], [0], [1], [0, 0, 1, 1], [], []>} : vector<128x64xf32>, vector<64x4xf32>, vector<128x4xf32> -> vector<128x4xf32>
    %c0_38 = arith.constant 0 : index
    %c0_39 = arith.constant 0 : index
    %41 = vector.load %arg21[%c0_38, %c0_39] : memref<1x4xf32, #tpu.memory_space<vmem>>, vector<1x4xf32>
    %42 = vector.broadcast %41 : vector<1x4xf32> to vector<128x4xf32>
    %43 = arith.addf %40, %42 : vector<128x4xf32>
    %44 = arith.negf %43 : vector<128x4xf32>
    %45 = math.exp %44 : vector<128x4xf32>
    %cst_40 = arith.constant 1.000000e+00 : f32
    %46 = vector.broadcast %cst_40 : f32 to vector<128x4xf32>
    %47 = arith.addf %46, %45 : vector<128x4xf32>
    %48 = arith.divf %46, %47 : vector<128x4xf32>
    %c0_41 = arith.constant 0 : index
    %c0_42 = arith.constant 0 : index
    %49 = vector.load %arg3[%c0_41, %c0_42] : memref<128x4xf32, #tpu.memory_space<vmem>>, vector<128x4xf32>
    %50 = arith.subf %48, %49 : vector<128x4xf32>
    %51 = arith.mulf %50, %50 : vector<128x4xf32>
    %52 = vector.shape_cast %51 : vector<128x4xf32> to vector<1x128x4xf32>
    %cst_43 = arith.constant dense<0.000000e+00> : vector<1xf32>
    %53 = vector.multi_reduction <add>, %52, %cst_43 [1, 2] : vector<1x128x4xf32> to vector<1xf32>
    %54 = vector.shape_cast %53 : vector<1xf32> to vector<1x1x1xf32>
    %55 = vector.extract %54[0, 0, 0] : f32 from vector<1x1x1xf32>
    %cst_44 = arith.constant 5.120000e+02 : f32
    %56 = arith.divf %55, %cst_44 : f32
    %57 = vector.broadcast %56 : f32 to vector<1x128xf32>
    %c0_45 = arith.constant 0 : index
    %c0_46 = arith.constant 0 : index
    %58 = vector.load %arg34[%c0_45, %c0_46] : memref<1x128xf32, #tpu.memory_space<vmem>>, vector<1x128xf32>
    tpu.vector_store %arg34[%c0_45, %c0_46], %57 {strides = array<i32>} : memref<1x128xf32, #tpu.memory_space<vmem>>, vector<1x128xf32>,
    %c0_47 = arith.constant 0 : index
    %c0_48 = arith.constant 0 : index
    %59 = vector.load %arg22[%c0_47, %c0_48] : memref<16x32xf32, #tpu.memory_space<vmem>>, vector<16x32xf32>
    %c0_49 = arith.constant 0 : index
    %c0_50 = arith.constant 0 : index
    %60 = vector.load %arg23[%c0_49, %c0_50] : memref<1x32xf32, #tpu.memory_space<vmem>>, vector<1x32xf32>
    %c0_51 = arith.constant 0 : index
    %c0_52 = arith.constant 0 : index
    %61 = vector.load %arg24[%c0_51, %c0_52] : memref<32x16xf32, #tpu.memory_space<vmem>>, vector<32x16xf32>
    %c0_53 = arith.constant 0 : index
    %c0_54 = arith.constant 0 : index
    %62 = vector.load %arg25[%c0_53, %c0_54] : memref<1x16xf32, #tpu.memory_space<vmem>>, vector<1x16xf32>
    %c1 = arith.constant 1 : index
    %63 = memref.load %arg1[%c1] : memref<4xf32, #tpu.memory_space<smem>>
    %c0_55 = arith.constant 0 : index
    %64 = memref.load %arg1[%c0_55] : memref<4xf32, #tpu.memory_space<smem>>
    %65 = arith.subf %63, %64 : f32
    %cst_56 = arith.constant 2.500000e-01 : f32
    %66 = arith.mulf %65, %cst_56 : f32
    %cst_57 = arith.constant dense<0.000000e+00> : vector<2x32xf32>
    %67 = tpu.matmul %21, %59, %cst_57 {dimension_numbers = #tpu.dot_dimension_numbers<[1], [0], [0], [1], [0, 0, 1, 1], [], []>} : vector<2x16xf32>, vector<16x32xf32>, vector<2x32xf32> -> vector<2x32xf32>
    %68 = vector.broadcast %60 : vector<1x32xf32> to vector<2x32xf32>
    %69 = arith.addf %67, %68 : vector<2x32xf32>
    %70 = math.tanh %69 : vector<2x32xf32>
    %cst_58 = arith.constant dense<0.000000e+00> : vector<2x16xf32>
    %71 = tpu.matmul %70, %61, %cst_58 {dimension_numbers = #tpu.dot_dimension_numbers<[1], [0], [0], [1], [0, 0, 1, 1], [], []>} : vector<2x32xf32>, vector<32x16xf32>, vector<2x16xf32> -> vector<2x16xf32>
    %72 = vector.broadcast %62 : vector<1x16xf32> to vector<2x16xf32>
    %73 = arith.addf %71, %72 : vector<2x16xf32>
    %74 = vector.broadcast %66 : f32 to vector<2x16xf32>
    %75 = arith.mulf %74, %73 : vector<2x16xf32>
    %76 = arith.addf %21, %75 : vector<2x16xf32>
    %cst_59 = arith.constant dense<0.000000e+00> : vector<2x32xf32>
    %77 = tpu.matmul %76, %59, %cst_59 {dimension_numbers = #tpu.dot_dimension_numbers<[1], [0], [0], [1], [0, 0, 1, 1], [], []>} : vector<2x16xf32>, vector<16x32xf32>, vector<2x32xf32> -> vector<2x32xf32>
    %78 = vector.broadcast %60 : vector<1x32xf32> to vector<2x32xf32>
    %79 = arith.addf %77, %78 : vector<2x32xf32>
    %80 = math.tanh %79 : vector<2x32xf32>
    %cst_60 = arith.constant dense<0.000000e+00> : vector<2x16xf32>
    %81 = tpu.matmul %80, %61, %cst_60 {dimension_numbers = #tpu.dot_dimension_numbers<[1], [0], [0], [1], [0, 0, 1, 1], [], []>} : vector<2x32xf32>, vector<32x16xf32>, vector<2x16xf32> -> vector<2x16xf32>
    %82 = vector.broadcast %62 : vector<1x16xf32> to vector<2x16xf32>
    %83 = arith.addf %81, %82 : vector<2x16xf32>
    %84 = vector.broadcast %66 : f32 to vector<2x16xf32>
    %85 = arith.mulf %84, %83 : vector<2x16xf32>
    %86 = arith.addf %76, %85 : vector<2x16xf32>
    %cst_61 = arith.constant dense<0.000000e+00> : vector<2x32xf32>
    %87 = tpu.matmul %86, %59, %cst_61 {dimension_numbers = #tpu.dot_dimension_numbers<[1], [0], [0], [1], [0, 0, 1, 1], [], []>} : vector<2x16xf32>, vector<16x32xf32>, vector<2x32xf32> -> vector<2x32xf32>
    %88 = vector.broadcast %60 : vector<1x32xf32> to vector<2x32xf32>
    %89 = arith.addf %87, %88 : vector<2x32xf32>
    %90 = math.tanh %89 : vector<2x32xf32>
    %cst_62 = arith.constant dense<0.000000e+00> : vector<2x16xf32>
    %91 = tpu.matmul %90, %61, %cst_62 {dimension_numbers = #tpu.dot_dimension_numbers<[1], [0], [0], [1], [0, 0, 1, 1], [], []>} : vector<2x32xf32>, vector<32x16xf32>, vector<2x16xf32> -> vector<2x16xf32>
    %92 = vector.broadcast %62 : vector<1x16xf32> to vector<2x16xf32>
    %93 = arith.addf %91, %92 : vector<2x16xf32>
    %94 = vector.broadcast %66 : f32 to vector<2x16xf32>
    %95 = arith.mulf %94, %93 : vector<2x16xf32>
    %96 = arith.addf %86, %95 : vector<2x16xf32>
    %cst_63 = arith.constant dense<0.000000e+00> : vector<2x32xf32>
    %97 = tpu.matmul %96, %59, %cst_63 {dimension_numbers = #tpu.dot_dimension_numbers<[1], [0], [0], [1], [0, 0, 1, 1], [], []>} : vector<2x16xf32>, vector<16x32xf32>, vector<2x32xf32> -> vector<2x32xf32>
    %98 = vector.broadcast %60 : vector<1x32xf32> to vector<2x32xf32>
    %99 = arith.addf %97, %98 : vector<2x32xf32>
    %100 = math.tanh %99 : vector<2x32xf32>
    %cst_64 = arith.constant dense<0.000000e+00> : vector<2x16xf32>
    %101 = tpu.matmul %100, %61, %cst_64 {dimension_numbers = #tpu.dot_dimension_numbers<[1], [0], [0], [1], [0, 0, 1, 1], [], []>} : vector<2x32xf32>, vector<32x16xf32>, vector<2x16xf32> -> vector<2x16xf32>
    %102 = vector.broadcast %62 : vector<1x16xf32> to vector<2x16xf32>
    %103 = arith.addf %101, %102 : vector<2x16xf32>
    %104 = vector.broadcast %66 : f32 to vector<2x16xf32>
    %105 = arith.mulf %104, %103 : vector<2x16xf32>
    %106 = arith.addf %96, %105 : vector<2x16xf32>
    %c2 = arith.constant 2 : index
    %107 = memref.load %arg1[%c2] : memref<4xf32, #tpu.memory_space<smem>>
    %c1_65 = arith.constant 1 : index
    %108 = memref.load %arg1[%c1_65] : memref<4xf32, #tpu.memory_space<smem>>
    %109 = arith.subf %107, %108 : f32
    %cst_66 = arith.constant 2.500000e-01 : f32
    %110 = arith.mulf %109, %cst_66 : f32
    %cst_67 = arith.constant dense<0.000000e+00> : vector<2x32xf32>
    %111 = tpu.matmul %106, %59, %cst_67 {dimension_numbers = #tpu.dot_dimension_numbers<[1], [0], [0], [1], [0, 0, 1, 1], [], []>} : vector<2x16xf32>, vector<16x32xf32>, vector<2x32xf32> -> vector<2x32xf32>
    %112 = vector.broadcast %60 : vector<1x32xf32> to vector<2x32xf32>
    %113 = arith.addf %111, %112 : vector<2x32xf32>
    %114 = math.tanh %113 : vector<2x32xf32>
    %cst_68 = arith.constant dense<0.000000e+00> : vector<2x16xf32>
    %115 = tpu.matmul %114, %61, %cst_68 {dimension_numbers = #tpu.dot_dimension_numbers<[1], [0], [0], [1], [0, 0, 1, 1], [], []>} : vector<2x32xf32>, vector<32x16xf32>, vector<2x16xf32> -> vector<2x16xf32>
    %116 = vector.broadcast %62 : vector<1x16xf32> to vector<2x16xf32>
    %117 = arith.addf %115, %116 : vector<2x16xf32>
    %118 = vector.broadcast %110 : f32 to vector<2x16xf32>
    %119 = arith.mulf %118, %117 : vector<2x16xf32>
    %120 = arith.addf %106, %119 : vector<2x16xf32>
    %cst_69 = arith.constant dense<0.000000e+00> : vector<2x32xf32>
    %121 = tpu.matmul %120, %59, %cst_69 {dimension_numbers = #tpu.dot_dimension_numbers<[1], [0], [0], [1], [0, 0, 1, 1], [], []>} : vector<2x16xf32>, vector<16x32xf32>, vector<2x32xf32> -> vector<2x32xf32>
    %122 = vector.broadcast %60 : vector<1x32xf32> to vector<2x32xf32>
    %123 = arith.addf %121, %122 : vector<2x32xf32>
    %124 = math.tanh %123 : vector<2x32xf32>
    %cst_70 = arith.constant dense<0.000000e+00> : vector<2x16xf32>
    %125 = tpu.matmul %124, %61, %cst_70 {dimension_numbers = #tpu.dot_dimension_numbers<[1], [0], [0], [1], [0, 0, 1, 1], [], []>} : vector<2x32xf32>, vector<32x16xf32>, vector<2x16xf32> -> vector<2x16xf32>
    %126 = vector.broadcast %62 : vector<1x16xf32> to vector<2x16xf32>
    %127 = arith.addf %125, %126 : vector<2x16xf32>
    %128 = vector.broadcast %110 : f32 to vector<2x16xf32>
    %129 = arith.mulf %128, %127 : vector<2x16xf32>
    %130 = arith.addf %120, %129 : vector<2x16xf32>
    %cst_71 = arith.constant dense<0.000000e+00> : vector<2x32xf32>
    %131 = tpu.matmul %130, %59, %cst_71 {dimension_numbers = #tpu.dot_dimension_numbers<[1], [0], [0], [1], [0, 0, 1, 1], [], []>} : vector<2x16xf32>, vector<16x32xf32>, vector<2x32xf32> -> vector<2x32xf32>
    %132 = vector.broadcast %60 : vector<1x32xf32> to vector<2x32xf32>
    %133 = arith.addf %131, %132 : vector<2x32xf32>
    %134 = math.tanh %133 : vector<2x32xf32>
    %cst_72 = arith.constant dense<0.000000e+00> : vector<2x16xf32>
    %135 = tpu.matmul %134, %61, %cst_72 {dimension_numbers = #tpu.dot_dimension_numbers<[1], [0], [0], [1], [0, 0, 1, 1], [], []>} : vector<2x32xf32>, vector<32x16xf32>, vector<2x16xf32> -> vector<2x16xf32>
    %136 = vector.broadcast %62 : vector<1x16xf32> to vector<2x16xf32>
    %137 = arith.addf %135, %136 : vector<2x16xf32>
    %138 = vector.broadcast %110 : f32 to vector<2x16xf32>
    %139 = arith.mulf %138, %137 : vector<2x16xf32>
    %140 = arith.addf %130, %139 : vector<2x16xf32>
    %cst_73 = arith.constant dense<0.000000e+00> : vector<2x32xf32>
    %141 = tpu.matmul %140, %59, %cst_73 {dimension_numbers = #tpu.dot_dimension_numbers<[1], [0], [0], [1], [0, 0, 1, 1], [], []>} : vector<2x16xf32>, vector<16x32xf32>, vector<2x32xf32> -> vector<2x32xf32>
    %142 = vector.broadcast %60 : vector<1x32xf32> to vector<2x32xf32>
    %143 = arith.addf %141, %142 : vector<2x32xf32>
    %144 = math.tanh %143 : vector<2x32xf32>
    %cst_74 = arith.constant dense<0.000000e+00> : vector<2x16xf32>
    %145 = tpu.matmul %144, %61, %cst_74 {dimension_numbers = #tpu.dot_dimension_numbers<[1], [0], [0], [1], [0, 0, 1, 1], [], []>} : vector<2x32xf32>, vector<32x16xf32>, vector<2x16xf32> -> vector<2x16xf32>
    %146 = vector.broadcast %62 : vector<1x16xf32> to vector<2x16xf32>
    %147 = arith.addf %145, %146 : vector<2x16xf32>
    %148 = vector.broadcast %110 : f32 to vector<2x16xf32>
    %149 = arith.mulf %148, %147 : vector<2x16xf32>
    %150 = arith.addf %140, %149 : vector<2x16xf32>
    %c3 = arith.constant 3 : index
    %151 = memref.load %arg1[%c3] : memref<4xf32, #tpu.memory_space<smem>>
    %c2_75 = arith.constant 2 : index
    %152 = memref.load %arg1[%c2_75] : memref<4xf32, #tpu.memory_space<smem>>
    %153 = arith.subf %151, %152 : f32
    %cst_76 = arith.constant 2.500000e-01 : f32
    %154 = arith.mulf %153, %cst_76 : f32
    %cst_77 = arith.constant dense<0.000000e+00> : vector<2x32xf32>
    %155 = tpu.matmul %150, %59, %cst_77 {dimension_numbers = #tpu.dot_dimension_numbers<[1], [0], [0], [1], [0, 0, 1, 1], [], []>} : vector<2x16xf32>, vector<16x32xf32>, vector<2x32xf32> -> vector<2x32xf32>
    %156 = vector.broadcast %60 : vector<1x32xf32> to vector<2x32xf32>
    %157 = arith.addf %155, %156 : vector<2x32xf32>
    %158 = math.tanh %157 : vector<2x32xf32>
    %cst_78 = arith.constant dense<0.000000e+00> : vector<2x16xf32>
    %159 = tpu.matmul %158, %61, %cst_78 {dimension_numbers = #tpu.dot_dimension_numbers<[1], [0], [0], [1], [0, 0, 1, 1], [], []>} : vector<2x32xf32>, vector<32x16xf32>, vector<2x16xf32> -> vector<2x16xf32>
    %160 = vector.broadcast %62 : vector<1x16xf32> to vector<2x16xf32>
    %161 = arith.addf %159, %160 : vector<2x16xf32>
    %162 = vector.broadcast %154 : f32 to vector<2x16xf32>
    %163 = arith.mulf %162, %161 : vector<2x16xf32>
    %164 = arith.addf %150, %163 : vector<2x16xf32>
    %cst_79 = arith.constant dense<0.000000e+00> : vector<2x32xf32>
    %165 = tpu.matmul %164, %59, %cst_79 {dimension_numbers = #tpu.dot_dimension_numbers<[1], [0], [0], [1], [0, 0, 1, 1], [], []>} : vector<2x16xf32>, vector<16x32xf32>, vector<2x32xf32> -> vector<2x32xf32>
    %166 = vector.broadcast %60 : vector<1x32xf32> to vector<2x32xf32>
    %167 = arith.addf %165, %166 : vector<2x32xf32>
    %168 = math.tanh %167 : vector<2x32xf32>
    %cst_80 = arith.constant dense<0.000000e+00> : vector<2x16xf32>
    %169 = tpu.matmul %168, %61, %cst_80 {dimension_numbers = #tpu.dot_dimension_numbers<[1], [0], [0], [1], [0, 0, 1, 1], [], []>} : vector<2x32xf32>, vector<32x16xf32>, vector<2x16xf32> -> vector<2x16xf32>
    %170 = vector.broadcast %62 : vector<1x16xf32> to vector<2x16xf32>
    %171 = arith.addf %169, %170 : vector<2x16xf32>
    %172 = vector.broadcast %154 : f32 to vector<2x16xf32>
    %173 = arith.mulf %172, %171 : vector<2x16xf32>
    %174 = arith.addf %164, %173 : vector<2x16xf32>
    %cst_81 = arith.constant dense<0.000000e+00> : vector<2x32xf32>
    %175 = tpu.matmul %174, %59, %cst_81 {dimension_numbers = #tpu.dot_dimension_numbers<[1], [0], [0], [1], [0, 0, 1, 1], [], []>} : vector<2x16xf32>, vector<16x32xf32>, vector<2x32xf32> -> vector<2x32xf32>
    %176 = vector.broadcast %60 : vector<1x32xf32> to vector<2x32xf32>
    %177 = arith.addf %175, %176 : vector<2x32xf32>
    %178 = math.tanh %177 : vector<2x32xf32>
    %cst_82 = arith.constant dense<0.000000e+00> : vector<2x16xf32>
    %179 = tpu.matmul %178, %61, %cst_82 {dimension_numbers = #tpu.dot_dimension_numbers<[1], [0], [0], [1], [0, 0, 1, 1], [], []>} : vector<2x32xf32>, vector<32x16xf32>, vector<2x16xf32> -> vector<2x16xf32>
    %180 = vector.broadcast %62 : vector<1x16xf32> to vector<2x16xf32>
    %181 = arith.addf %179, %180 : vector<2x16xf32>
    %182 = vector.broadcast %154 : f32 to vector<2x16xf32>
    %183 = arith.mulf %182, %181 : vector<2x16xf32>
    %184 = arith.addf %174, %183 : vector<2x16xf32>
    %cst_83 = arith.constant dense<0.000000e+00> : vector<2x32xf32>
    %185 = tpu.matmul %184, %59, %cst_83 {dimension_numbers = #tpu.dot_dimension_numbers<[1], [0], [0], [1], [0, 0, 1, 1], [], []>} : vector<2x16xf32>, vector<16x32xf32>, vector<2x32xf32> -> vector<2x32xf32>
    %186 = vector.broadcast %60 : vector<1x32xf32> to vector<2x32xf32>
    %187 = arith.addf %185, %186 : vector<2x32xf32>
    %188 = math.tanh %187 : vector<2x32xf32>
    %cst_84 = arith.constant dense<0.000000e+00> : vector<2x16xf32>
    %189 = tpu.matmul %188, %61, %cst_84 {dimension_numbers = #tpu.dot_dimension_numbers<[1], [0], [0], [1], [0, 0, 1, 1], [], []>} : vector<2x32xf32>, vector<32x16xf32>, vector<2x16xf32> -> vector<2x16xf32>
    %190 = vector.broadcast %62 : vector<1x16xf32> to vector<2x16xf32>
    %191 = arith.addf %189, %190 : vector<2x16xf32>
    %192 = vector.broadcast %154 : f32 to vector<2x16xf32>
    %193 = arith.mulf %192, %191 : vector<2x16xf32>
    %194 = arith.addf %184, %193 : vector<2x16xf32>
    %195 = tpu.concatenate %21, %106, %150, %194 in 0 : vector<2x16xf32>, vector<2x16xf32>, vector<2x16xf32>, vector<2x16xf32> -> vector<8x16xf32>
    %c0_85 = arith.constant 0 : index
    %c0_86 = arith.constant 0 : index
    %196 = vector.load %arg26[%c0_85, %c0_86] : memref<16x128xf32, #tpu.memory_space<vmem>>, vector<16x128xf32>
    %cst_87 = arith.constant dense<0.000000e+00> : vector<8x128xf32>
    %197 = tpu.matmul %195, %196, %cst_87 {dimension_numbers = #tpu.dot_dimension_numbers<[1], [0], [0], [1], [0, 0, 1, 1], [], []>} : vector<8x16xf32>, vector<16x128xf32>, vector<8x128xf32> -> vector<8x128xf32>
    %c0_88 = arith.constant 0 : index
    %c0_89 = arith.constant 0 : index
    %198 = vector.load %arg27[%c0_88, %c0_89] : memref<80x128xf32, #tpu.memory_space<vmem>>, vector<80x128xf32>
    %cst_90 = arith.constant dense<0.000000e+00> : vector<2x128xf32>
    %199 = tpu.matmul %26, %198, %cst_90 {dimension_numbers = #tpu.dot_dimension_numbers<[1], [0], [0], [1], [0, 0, 1, 1], [], []>} : vector<2x80xf32>, vector<80x128xf32>, vector<2x128xf32> -> vector<2x128xf32>
    %c0_91 = arith.constant 0 : index
    %c0_92 = arith.constant 0 : index
    %200 = vector.load %arg5[%c0_91, %c0_92] : memref<8x8xf32, #tpu.memory_space<vmem>>, vector<8x8xf32>
    %cst_93 = arith.constant dense<0.000000e+00> : vector<8x128xf32>
    %201 = tpu.matmul %200, %197, %cst_93 {dimension_numbers = #tpu.dot_dimension_numbers<[1], [0], [0], [1], [0, 0, 1, 1], [], []>} : vector<8x8xf32>, vector<8x128xf32>, vector<8x128xf32> -> vector<8x128xf32>
    %c0_94 = arith.constant 0 : index
    %c0_95 = arith.constant 0 : index
    %202 = vector.load %arg6[%c0_94, %c0_95] : memref<8x2xf32, #tpu.memory_space<vmem>>, vector<8x2xf32>
    %cst_96 = arith.constant dense<0.000000e+00> : vector<8x128xf32>
    %203 = tpu.matmul %202, %199, %cst_96 {dimension_numbers = #tpu.dot_dimension_numbers<[1], [0], [0], [1], [0, 0, 1, 1], [], []>} : vector<8x2xf32>, vector<2x128xf32>, vector<8x128xf32> -> vector<8x128xf32>
    %204 = arith.addf %201, %203 : vector<8x128xf32>
    %c0_97 = arith.constant 0 : index
    %c0_98 = arith.constant 0 : index
    %205 = vector.load %arg28[%c0_97, %c0_98] : memref<1x128xf32, #tpu.memory_space<vmem>>, vector<1x128xf32>
    %206 = vector.broadcast %205 : vector<1x128xf32> to vector<8x128xf32>
    %207 = arith.addf %204, %206 : vector<8x128xf32>
    %208 = tpu.transpose %207, [1, 0] : vector<8x128xf32> -> vector<128x8xf32>
    %209 = vector.extract_strided_slice %208 {offsets = [0, 0], sizes = [32, 8], strides = [1, 1]} : vector<128x8xf32> to vector<32x8xf32>
    %c0_99 = arith.constant 0 : index
    %c0_100 = arith.constant 0 : index
    %210 = vector.load %arg8[%c0_99, %c0_100] : memref<8x128xf32, #tpu.memory_space<vmem>>, vector<8x128xf32>
    %cst_101 = arith.constant dense<0.000000e+00> : vector<32x128xf32>
    %211 = tpu.matmul %209, %210, %cst_101 {dimension_numbers = #tpu.dot_dimension_numbers<[1], [0], [0], [1], [0, 0, 1, 1], [], []>} : vector<32x8xf32>, vector<8x128xf32>, vector<32x128xf32> -> vector<32x128xf32>
    %c0_102 = arith.constant 0 : index
    %c0_103 = arith.constant 0 : index
    %212 = vector.load %arg29[%c0_102, %c0_103] : memref<32x3xf32, #tpu.memory_space<vmem>>, vector<32x3xf32>
    %c0_104 = arith.constant 0 : index
    %c0_105 = arith.constant 0 : index
    %213 = vector.load %arg30[%c0_104, %c0_105] : memref<3x32xf32, #tpu.memory_space<vmem>>, vector<3x32xf32>
    %c0_106 = arith.constant 0 : index
    %c0_107 = arith.constant 0 : index
    %214 = vector.load %arg31[%c0_106, %c0_107] : memref<3x1xf32, #tpu.memory_space<vmem>>, vector<3x1xf32>
    %c0_108 = arith.constant 0 : index
    %c0_109 = arith.constant 0 : index
    %215 = vector.load %arg32[%c0_108, %c0_109] : memref<32x1xf32, #tpu.memory_space<vmem>>, vector<32x1xf32>
    %c0_110 = arith.constant 0 : index
    %c0_111 = arith.constant 0 : index
    %216 = vector.load %arg4[%c0_110, %c0_111] : memref<3x128xf32, #tpu.memory_space<vmem>>, vector<3x128xf32>
    %cst_112 = arith.constant 0.000000e+00 : f32
    %217 = vector.broadcast %cst_112 : f32 to vector<1x128xf32>
    %cst_113 = arith.constant dense<0.000000e+00> : vector<32x128xf32>
    %218 = tpu.matmul %212, %216, %cst_113 {dimension_numbers = #tpu.dot_dimension_numbers<[1], [0], [0], [1], [0, 0, 1, 1], [], []>} : vector<32x3xf32>, vector<3x128xf32>, vector<32x128xf32> -> vector<32x128xf32>
    %219 = arith.addf %218, %211 : vector<32x128xf32>
    %220 = math.tanh %219 : vector<32x128xf32>
    %cst_114 = arith.constant dense<0.000000e+00> : vector<3x128xf32>
    %221 = tpu.matmul %213, %220, %cst_114 {dimension_numbers = #tpu.dot_dimension_numbers<[1], [0], [0], [1], [0, 0, 1, 1], [], []>} : vector<3x32xf32>, vector<32x128xf32>, vector<3x128xf32> -> vector<3x128xf32>
    %222 = vector.broadcast %214 : vector<3x1xf32> to vector<3x128xf32>
    %223 = arith.addf %221, %222 : vector<3x128xf32>
    %224 = arith.mulf %220, %220 : vector<32x128xf32>
    %cst_115 = arith.constant 1.000000e+00 : f32
    %225 = vector.broadcast %cst_115 : f32 to vector<32x128xf32>
    %226 = arith.subf %225, %224 : vector<32x128xf32>
    %227 = vector.broadcast %215 : vector<32x1xf32> to vector<32x128xf32>
    %228 = arith.mulf %226, %227 : vector<32x128xf32>
    %cst_116 = arith.constant dense<0.000000e+00> : vector<128xf32>
    %229 = vector.multi_reduction <add>, %228, %cst_116 [0] : vector<32x128xf32> to vector<128xf32>
    %230 = vector.shape_cast %229 : vector<128xf32> to vector<1x128xf32>
    %cst_117 = arith.constant 1.000000e-01 : f32
    %231 = vector.broadcast %cst_117 : f32 to vector<3x128xf32>
    %232 = arith.mulf %231, %223 : vector<3x128xf32>
    %233 = arith.addf %216, %232 : vector<3x128xf32>
    %cst_118 = arith.constant 1.000000e-01 : f32
    %234 = vector.broadcast %cst_118 : f32 to vector<1x128xf32>
    %235 = arith.mulf %234, %230 : vector<1x128xf32>
    %236 = arith.subf %217, %235 : vector<1x128xf32>
    %cst_119 = arith.constant dense<0.000000e+00> : vector<32x128xf32>
    %237 = tpu.matmul %212, %233, %cst_119 {dimension_numbers = #tpu.dot_dimension_numbers<[1], [0], [0], [1], [0, 0, 1, 1], [], []>} : vector<32x3xf32>, vector<3x128xf32>, vector<32x128xf32> -> vector<32x128xf32>
    %238 = arith.addf %237, %211 : vector<32x128xf32>
    %239 = math.tanh %238 : vector<32x128xf32>
    %cst_120 = arith.constant dense<0.000000e+00> : vector<3x128xf32>
    %240 = tpu.matmul %213, %239, %cst_120 {dimension_numbers = #tpu.dot_dimension_numbers<[1], [0], [0], [1], [0, 0, 1, 1], [], []>} : vector<3x32xf32>, vector<32x128xf32>, vector<3x128xf32> -> vector<3x128xf32>
    %241 = vector.broadcast %214 : vector<3x1xf32> to vector<3x128xf32>
    %242 = arith.addf %240, %241 : vector<3x128xf32>
    %243 = arith.mulf %239, %239 : vector<32x128xf32>
    %cst_121 = arith.constant 1.000000e+00 : f32
    %244 = vector.broadcast %cst_121 : f32 to vector<32x128xf32>
    %245 = arith.subf %244, %243 : vector<32x128xf32>
    %246 = vector.broadcast %215 : vector<32x1xf32> to vector<32x128xf32>
    %247 = arith.mulf %245, %246 : vector<32x128xf32>
    %cst_122 = arith.constant dense<0.000000e+00> : vector<128xf32>
    %248 = vector.multi_reduction <add>, %247, %cst_122 [0] : vector<32x128xf32> to vector<128xf32>
    %249 = vector.shape_cast %248 : vector<128xf32> to vector<1x128xf32>
    %cst_123 = arith.constant 1.000000e-01 : f32
    %250 = vector.broadcast %cst_123 : f32 to vector<3x128xf32>
    %251 = arith.mulf %250, %242 : vector<3x128xf32>
    %252 = arith.addf %233, %251 : vector<3x128xf32>
    %cst_124 = arith.constant 1.000000e-01 : f32
    %253 = vector.broadcast %cst_124 : f32 to vector<1x128xf32>
    %254 = arith.mulf %253, %249 : vector<1x128xf32>
    %255 = arith.subf %236, %254 : vector<1x128xf32>
    %cst_125 = arith.constant dense<0.000000e+00> : vector<32x128xf32>
    %256 = tpu.matmul %212, %252, %cst_125 {dimension_numbers = #tpu.dot_dimension_numbers<[1], [0], [0], [1], [0, 0, 1, 1], [], []>} : vector<32x3xf32>, vector<3x128xf32>, vector<32x128xf32> -> vector<32x128xf32>
    %257 = arith.addf %256, %211 : vector<32x128xf32>
    %258 = math.tanh %257 : vector<32x128xf32>
    %cst_126 = arith.constant dense<0.000000e+00> : vector<3x128xf32>
    %259 = tpu.matmul %213, %258, %cst_126 {dimension_numbers = #tpu.dot_dimension_numbers<[1], [0], [0], [1], [0, 0, 1, 1], [], []>} : vector<3x32xf32>, vector<32x128xf32>, vector<3x128xf32> -> vector<3x128xf32>
    %260 = vector.broadcast %214 : vector<3x1xf32> to vector<3x128xf32>
    %261 = arith.addf %259, %260 : vector<3x128xf32>
    %262 = arith.mulf %258, %258 : vector<32x128xf32>
    %cst_127 = arith.constant 1.000000e+00 : f32
    %263 = vector.broadcast %cst_127 : f32 to vector<32x128xf32>
    %264 = arith.subf %263, %262 : vector<32x128xf32>
    %265 = vector.broadcast %215 : vector<32x1xf32> to vector<32x128xf32>
    %266 = arith.mulf %264, %265 : vector<32x128xf32>
    %cst_128 = arith.constant dense<0.000000e+00> : vector<128xf32>
    %267 = vector.multi_reduction <add>, %266, %cst_128 [0] : vector<32x128xf32> to vector<128xf32>
    %268 = vector.shape_cast %267 : vector<128xf32> to vector<1x128xf32>
    %cst_129 = arith.constant 1.000000e-01 : f32
    %269 = vector.broadcast %cst_129 : f32 to vector<3x128xf32>
    %270 = arith.mulf %269, %261 : vector<3x128xf32>
    %271 = arith.addf %252, %270 : vector<3x128xf32>
    %cst_130 = arith.constant 1.000000e-01 : f32
    %272 = vector.broadcast %cst_130 : f32 to vector<1x128xf32>
    %273 = arith.mulf %272, %268 : vector<1x128xf32>
    %274 = arith.subf %255, %273 : vector<1x128xf32>
    %cst_131 = arith.constant dense<0.000000e+00> : vector<32x128xf32>
    %275 = tpu.matmul %212, %271, %cst_131 {dimension_numbers = #tpu.dot_dimension_numbers<[1], [0], [0], [1], [0, 0, 1, 1], [], []>} : vector<32x3xf32>, vector<3x128xf32>, vector<32x128xf32> -> vector<32x128xf32>
    %276 = arith.addf %275, %211 : vector<32x128xf32>
    %277 = math.tanh %276 : vector<32x128xf32>
    %cst_132 = arith.constant dense<0.000000e+00> : vector<3x128xf32>
    %278 = tpu.matmul %213, %277, %cst_132 {dimension_numbers = #tpu.dot_dimension_numbers<[1], [0], [0], [1], [0, 0, 1, 1], [], []>} : vector<3x32xf32>, vector<32x128xf32>, vector<3x128xf32> -> vector<3x128xf32>
    %279 = vector.broadcast %214 : vector<3x1xf32> to vector<3x128xf32>
    %280 = arith.addf %278, %279 : vector<3x128xf32>
    %281 = arith.mulf %277, %277 : vector<32x128xf32>
    %cst_133 = arith.constant 1.000000e+00 : f32
    %282 = vector.broadcast %cst_133 : f32 to vector<32x128xf32>
    %283 = arith.subf %282, %281 : vector<32x128xf32>
    %284 = vector.broadcast %215 : vector<32x1xf32> to vector<32x128xf32>
    %285 = arith.mulf %283, %284 : vector<32x128xf32>
    %cst_134 = arith.constant dense<0.000000e+00> : vector<128xf32>
    %286 = vector.multi_reduction <add>, %285, %cst_134 [0] : vector<32x128xf32> to vector<128xf32>
    %287 = vector.shape_cast %286 : vector<128xf32> to vector<1x128xf32>
    %cst_135 = arith.constant 1.000000e-01 : f32
    %288 = vector.broadcast %cst_135 : f32 to vector<3x128xf32>
    %289 = arith.mulf %288, %280 : vector<3x128xf32>
    %290 = arith.addf %271, %289 : vector<3x128xf32>
    %cst_136 = arith.constant 1.000000e-01 : f32
    %291 = vector.broadcast %cst_136 : f32 to vector<1x128xf32>
    %292 = arith.mulf %291, %287 : vector<1x128xf32>
    %293 = arith.subf %274, %292 : vector<1x128xf32>
    %cst_137 = arith.constant dense<0.000000e+00> : vector<32x128xf32>
    %294 = tpu.matmul %212, %290, %cst_137 {dimension_numbers = #tpu.dot_dimension_numbers<[1], [0], [0], [1], [0, 0, 1, 1], [], []>} : vector<32x3xf32>, vector<3x128xf32>, vector<32x128xf32> -> vector<32x128xf32>
    %295 = arith.addf %294, %211 : vector<32x128xf32>
    %296 = math.tanh %295 : vector<32x128xf32>
    %cst_138 = arith.constant dense<0.000000e+00> : vector<3x128xf32>
    %297 = tpu.matmul %213, %296, %cst_138 {dimension_numbers = #tpu.dot_dimension_numbers<[1], [0], [0], [1], [0, 0, 1, 1], [], []>} : vector<3x32xf32>, vector<32x128xf32>, vector<3x128xf32> -> vector<3x128xf32>
    %298 = vector.broadcast %214 : vector<3x1xf32> to vector<3x128xf32>
    %299 = arith.addf %297, %298 : vector<3x128xf32>
    %300 = arith.mulf %296, %296 : vector<32x128xf32>
    %cst_139 = arith.constant 1.000000e+00 : f32
    %301 = vector.broadcast %cst_139 : f32 to vector<32x128xf32>
    %302 = arith.subf %301, %300 : vector<32x128xf32>
    %303 = vector.broadcast %215 : vector<32x1xf32> to vector<32x128xf32>
    %304 = arith.mulf %302, %303 : vector<32x128xf32>
    %cst_140 = arith.constant dense<0.000000e+00> : vector<128xf32>
    %305 = vector.multi_reduction <add>, %304, %cst_140 [0] : vector<32x128xf32> to vector<128xf32>
    %306 = vector.shape_cast %305 : vector<128xf32> to vector<1x128xf32>
    %cst_141 = arith.constant 1.000000e-01 : f32
    %307 = vector.broadcast %cst_141 : f32 to vector<3x128xf32>
    %308 = arith.mulf %307, %299 : vector<3x128xf32>
    %309 = arith.addf %290, %308 : vector<3x128xf32>
    %cst_142 = arith.constant 1.000000e-01 : f32
    %310 = vector.broadcast %cst_142 : f32 to vector<1x128xf32>
    %311 = arith.mulf %310, %306 : vector<1x128xf32>
    %312 = arith.subf %293, %311 : vector<1x128xf32>
    %cst_143 = arith.constant 5.000000e-01 : f32
    %313 = vector.broadcast %cst_143 : f32 to vector<3x128xf32>
    %314 = arith.mulf %313, %309 : vector<3x128xf32>
    %315 = arith.mulf %314, %309 : vector<3x128xf32>
    %cst_144 = arith.constant -0.918938517 : f32
    %316 = vector.broadcast %cst_144 : f32 to vector<3x128xf32>
    %317 = arith.subf %316, %315 : vector<3x128xf32>
    %cst_145 = arith.constant dense<0.000000e+00> : vector<128xf32>
    %318 = vector.multi_reduction <add>, %317, %cst_145 [0] : vector<3x128xf32> to vector<128xf32>
    %319 = vector.shape_cast %318 : vector<128xf32> to vector<1x128xf32>
    %320 = arith.subf %319, %312 : vector<1x128xf32>
    %cst_146 = arith.constant 0.000000e+00 : f32
    %321 = vector.broadcast %cst_146 : f32 to vector<1x128xf32>
    %322 = arith.subf %321, %320 : vector<1x128xf32>
    %c0_147 = arith.constant 0 : index
    %c0_148 = arith.constant 0 : index
    %323 = vector.load %arg33[%c0_147, %c0_148] : memref<1x128xf32, #tpu.memory_space<vmem>>, vector<1x128xf32>
    tpu.vector_store %arg33[%c0_147, %c0_148], %322 {strides = array<i32>} : memref<1x128xf32, #tpu.memory_space<vmem>>, vector<1x128xf32>,
    return
  }
  func.func @transform_0(%arg0: i32) -> i32 {
    %c0_i32 = arith.constant 0 : i32
    %c0_i32_0 = arith.constant 0 : i32
    return %c0_i32 : i32
  }
  func.func @transform_1(%arg0: i32) -> (i32, i32) {
    %c0_i32 = arith.constant 0 : i32
    %c0_i32_0 = arith.constant 0 : i32
    %c0_i32_1 = arith.constant 0 : i32
    return %c0_i32, %c0_i32_0 : i32, i32
  }
  func.func @transform_2(%arg0: i32) -> (i32, i32) {
    %c0_i32 = arith.constant 0 : i32
    %c0_i32_0 = arith.constant 0 : i32
    %c0_i32_1 = arith.constant 0 : i32
    return %c0_i32, %c0_i32_0 : i32, i32
  }
  func.func @transform_3(%arg0: i32) -> (i32, i32) {
    %c0_i32 = arith.constant 0 : i32
    %c0_i32_0 = arith.constant 0 : i32
    %c0_i32_1 = arith.constant 0 : i32
    return %c0_i32, %c0_i32_0 : i32, i32
  }
  func.func @transform_4(%arg0: i32) -> (i32, i32) {
    %c0_i32 = arith.constant 0 : i32
    %c0_i32_0 = arith.constant 0 : i32
    %c0_i32_1 = arith.constant 0 : i32
    return %c0_i32, %c0_i32_0 : i32, i32
  }
  func.func @transform_5(%arg0: i32) -> (i32, i32) {
    %c0_i32 = arith.constant 0 : i32
    %c0_i32_0 = arith.constant 0 : i32
    %c0_i32_1 = arith.constant 0 : i32
    return %c0_i32, %c0_i32_0 : i32, i32
  }
  func.func @transform_6(%arg0: i32) -> (i32, i32) {
    %c0_i32 = arith.constant 0 : i32
    %c0_i32_0 = arith.constant 0 : i32
    %c0_i32_1 = arith.constant 0 : i32
    return %c0_i32, %c0_i32_0 : i32, i32
  }
  func.func @transform_7(%arg0: i32) -> (i32, i32) {
    %c0_i32 = arith.constant 0 : i32
    %c0_i32_0 = arith.constant 0 : i32
    %c0_i32_1 = arith.constant 0 : i32
    return %c0_i32, %c0_i32_0 : i32, i32
  }
  func.func @transform_8(%arg0: i32) -> (i32, i32) {
    %c0_i32 = arith.constant 0 : i32
    %c0_i32_0 = arith.constant 0 : i32
    %c0_i32_1 = arith.constant 0 : i32
    return %c0_i32, %c0_i32_0 : i32, i32
  }
  func.func @transform_9(%arg0: i32) -> (i32, i32) {
    %c0_i32 = arith.constant 0 : i32
    %c0_i32_0 = arith.constant 0 : i32
    %c0_i32_1 = arith.constant 0 : i32
    return %c0_i32, %c0_i32_0 : i32, i32
  }
  func.func @transform_10(%arg0: i32) -> (i32, i32) {
    %c0_i32 = arith.constant 0 : i32
    %c0_i32_0 = arith.constant 0 : i32
    %c0_i32_1 = arith.constant 0 : i32
    return %c0_i32, %c0_i32_0 : i32, i32
  }
  func.func @transform_11(%arg0: i32) -> (i32, i32) {
    %c0_i32 = arith.constant 0 : i32
    %c0_i32_0 = arith.constant 0 : i32
    %c0_i32_1 = arith.constant 0 : i32
    return %c0_i32, %c0_i32_0 : i32, i32
  }
  func.func @transform_12(%arg0: i32) -> (i32, i32) {
    %c0_i32 = arith.constant 0 : i32
    %c0_i32_0 = arith.constant 0 : i32
    %c0_i32_1 = arith.constant 0 : i32
    return %c0_i32, %c0_i32_0 : i32, i32
  }
  func.func @transform_13(%arg0: i32) -> (i32, i32) {
    %c0_i32 = arith.constant 0 : i32
    %c0_i32_0 = arith.constant 0 : i32
    %c0_i32_1 = arith.constant 0 : i32
    return %c0_i32, %c0_i32_0 : i32, i32
  }
  func.func @transform_14(%arg0: i32) -> (i32, i32) {
    %c0_i32 = arith.constant 0 : i32
    %c0_i32_0 = arith.constant 0 : i32
    %c0_i32_1 = arith.constant 0 : i32
    return %c0_i32, %c0_i32_0 : i32, i32
  }
  func.func @transform_15(%arg0: i32) -> (i32, i32) {
    %c0_i32 = arith.constant 0 : i32
    %c0_i32_0 = arith.constant 0 : i32
    %c0_i32_1 = arith.constant 0 : i32
    return %c0_i32, %c0_i32_0 : i32, i32
  }
  func.func @transform_16(%arg0: i32) -> (i32, i32) {
    %c0_i32 = arith.constant 0 : i32
    %c0_i32_0 = arith.constant 0 : i32
    %c0_i32_1 = arith.constant 0 : i32
    return %c0_i32, %c0_i32_0 : i32, i32
  }
  func.func @transform_17(%arg0: i32) -> (i32, i32) {
    %c0_i32 = arith.constant 0 : i32
    %c0_i32_0 = arith.constant 0 : i32
    %c0_i32_1 = arith.constant 0 : i32
    return %c0_i32, %c0_i32_0 : i32, i32
  }
  func.func @transform_18(%arg0: i32) -> (i32, i32) {
    %c0_i32 = arith.constant 0 : i32
    %c0_i32_0 = arith.constant 0 : i32
    %c0_i32_1 = arith.constant 0 : i32
    return %c0_i32, %c0_i32_0 : i32, i32
  }
  func.func @transform_19(%arg0: i32) -> (i32, i32) {
    %c0_i32 = arith.constant 0 : i32
    %c0_i32_0 = arith.constant 0 : i32
    %c0_i32_1 = arith.constant 0 : i32
    return %c0_i32, %c0_i32_0 : i32, i32
  }
  func.func @transform_20(%arg0: i32) -> (i32, i32) {
    %c0_i32 = arith.constant 0 : i32
    %c0_i32_0 = arith.constant 0 : i32
    %c0_i32_1 = arith.constant 0 : i32
    return %c0_i32, %c0_i32_0 : i32, i32
  }
  func.func @transform_21(%arg0: i32) -> (i32, i32) {
    %c0_i32 = arith.constant 0 : i32
    %c0_i32_0 = arith.constant 0 : i32
    %c0_i32_1 = arith.constant 0 : i32
    return %c0_i32, %c0_i32_0 : i32, i32
  }
  func.func @transform_22(%arg0: i32) -> (i32, i32) {
    %c0_i32 = arith.constant 0 : i32
    %c0_i32_0 = arith.constant 0 : i32
    %c0_i32_1 = arith.constant 0 : i32
    return %c0_i32, %c0_i32_0 : i32, i32
  }
  func.func @transform_23(%arg0: i32) -> (i32, i32) {
    %c0_i32 = arith.constant 0 : i32
    %c0_i32_0 = arith.constant 0 : i32
    %c0_i32_1 = arith.constant 0 : i32
    return %c0_i32, %c0_i32_0 : i32, i32
  }
  func.func @transform_24(%arg0: i32) -> (i32, i32) {
    %c0_i32 = arith.constant 0 : i32
    %c0_i32_0 = arith.constant 0 : i32
    %c0_i32_1 = arith.constant 0 : i32
    return %c0_i32, %c0_i32_0 : i32, i32
  }
  func.func @transform_25(%arg0: i32) -> (i32, i32) {
    %c0_i32 = arith.constant 0 : i32
    %c0_i32_0 = arith.constant 0 : i32
    %c0_i32_1 = arith.constant 0 : i32
    return %c0_i32, %c0_i32_0 : i32, i32
  }
  func.func @transform_26(%arg0: i32) -> (i32, i32) {
    %c0_i32 = arith.constant 0 : i32
    %c0_i32_0 = arith.constant 0 : i32
    %c0_i32_1 = arith.constant 0 : i32
    return %c0_i32, %c0_i32_0 : i32, i32
  }
  func.func @transform_27(%arg0: i32) -> (i32, i32) {
    %c0_i32 = arith.constant 0 : i32
    %c0_i32_0 = arith.constant 0 : i32
    %c0_i32_1 = arith.constant 0 : i32
    return %c0_i32, %c0_i32_0 : i32, i32
  }
  func.func @transform_28(%arg0: i32) -> (i32, i32) {
    %c0_i32 = arith.constant 0 : i32
    %c0_i32_0 = arith.constant 0 : i32
    %c0_i32_1 = arith.constant 0 : i32
    return %c0_i32, %c0_i32_0 : i32, i32
  }
  func.func @transform_29(%arg0: i32) -> (i32, i32) {
    %c0_i32 = arith.constant 0 : i32
    %c0_i32_0 = arith.constant 0 : i32
    %c0_i32_1 = arith.constant 0 : i32
    return %c0_i32, %c0_i32_0 : i32, i32
  }
  func.func @transform_30(%arg0: i32) -> (i32, i32) {
    %c0_i32 = arith.constant 0 : i32
    %c0_i32_0 = arith.constant 0 : i32
    %c0_i32_1 = arith.constant 0 : i32
    return %c0_i32, %c0_i32_0 : i32, i32
  }
  func.func @transform_31(%arg0: i32) -> (i32, i32) {
    %c0_i32 = arith.constant 0 : i32
    %c0_i32_0 = arith.constant 0 : i32
    %c0_i32_1 = arith.constant 0 : i32
    return %c0_i32, %c0_i32_0 : i32, i32
  }
  func.func @transform_32(%arg0: i32) -> (i32, i32) {
    %c0_i32 = arith.constant 0 : i32
    %c0_i32_0 = arith.constant 0 : i32
    %c0_i32_1 = arith.constant 0 : i32
    return %c0_i32, %c0_i32_0 : i32, i32
  }
  func.func @transform_33(%arg0: i32) -> (i32, i32) {
    %c0_i32 = arith.constant 0 : i32
    %c0_i32_0 = arith.constant 0 : i32
    %c0_i32_1 = arith.constant 0 : i32
    return %c0_i32, %c0_i32_0 : i32, i32
  }
}

</mosaic_0001>

<bundles_post_ra>
// kernel: squeeze.4
= control target key start
LH: loop header
LB: loop body
LE: loop exit
PB: predicated region body
PF: predicated region fallthrough
CT: control target
= control target key end

     0   :  { %vm7_vm0 = vcmask 31744   ;;  %vm13_vm1 = vcmask 64544   ;;  %s39_s0 = inlined_call_operand.vmem [shape: f32[2,4], index: 0, kind: input, shape index: {}]   ;;  %s40_s1 = inlined_call_operand.vmem [shape: f32[8], index: 1, kind: output, shape index: {}]  }
   0x1   :  { %v4_v0 = vld [vmem:[%s39_s0] sm:$0x3]  ;;  %s22_s0 = smov 4  }
   0x2   :  { %5 = vst [vmem:[#allocation1] sm:$0x3] %v4_v0 }
   0x9   :  { %v10_v1 = vld [vmem:[#allocation1 + $0x1] sm:$0x1]   ;;  %v6_v2 = vld [vmem:[#allocation1] sm:$0x1]  }
   0xa   :  { %11 = vrot.lane.b32.xlu0 %v10_v1, %s22_s0  ;;  %8 = vst.msk [vmem:[#allocation0] sm:$0x1] %vm7_vm0, %v6_v2  }
  0x7c   :  { %v12_v3 = vpop.permute.xlu0 %11  }
  0x7d   :  { %14 = vst.msk [vmem:[#allocation0] sm:$0x1] %vm13_vm1, %v12_v3  }
  0x84   :  { %v17_v4 = vld [vmem:[#allocation0] sm:$0x1] }
  0x85   :  { %20 = vst [vmem:[%s40_s1] sm:$0x1] %v17_v4 }

// kernel: eq.36
= control target key start
LH: loop header
LB: loop body
LE: loop exit
PB: predicated region body
PF: predicated region fallthrough
CT: control target
= control target key end

     0   :  { %vm7_vm0 = vcmask 31744   ;;  %s39_s0 = inlined_call_operand.vmem [shape: s32[8], index: 0, kind: input, shape index: {}]   ;;  %s40_s1 = inlined_call_operand.vmem [shape: s32[2,4], index: 1, kind: output, shape index: {}]  }
   0x1   :  { %v4_v0 = vld [vmem:[%s39_s0] sm:$0x1]  ;;  %s22_s0 = smov 124  }
   0x2   :  { %5 = vst [vmem:[#allocation1] sm:$0x1] %v4_v0 }
   0x9   :  { %v9_v1 = vld [vmem:[#allocation1] sm:$0x1]  }
   0xa   :  { %v6_v2 = vld [vmem:[#allocation1] sm:$0x1]   ;;  %10 = vrot.lane.b32.xlu0 %v9_v1, %s22_s0 }
   0xb   :  { %8 = vst.msk [vmem:[#allocation0] sm:$0x1] %vm7_vm0, %v6_v2  }
  0x7c   :  { %v11_v3 = vpop.permute.xlu0 %10  }
  0x7d   :  { %14 = vst.msk [vmem:[#allocation0 + $0x1] sm:$0x1] %vm7_vm0, %v11_v3  }
  0x84   :  { %v17_v4 = vld [vmem:[#allocation0] sm:$0x3] }
  0x85   :  { %20 = vst [vmem:[%s40_s1] sm:$0x3] %v17_v4 }

// kernel: caspr_forward.1
= control target key start
LH: loop header
LB: loop body
LE: loop exit
PB: predicated region body
PF: predicated region fallthrough
CT: control target
= control target key end

     0   :  { %s3148_s6 = smov 1   ;;  %s3149_s10 = smov 2   ;;  %s4362_s0 = inlined_call_operand.smem [shape: u32[34], index: -1, kind: input, shape index: {}] }
   0x1   :  { %s3193_s5 = sld [smem:[%s4362_s0]]   ;;  %s3150_s14 = smov 3  }
   0x2   :  { %s3198_s9 = sld [smem:[%s4362_s0 + %s3148_s6]]   ;;  %s3151_s18 = smov 4  }
   0x3   :  { %s3203_s13 = sld [smem:[%s4362_s0 + %s3149_s10]]   ;;  %s3152_s22 = smov 5  }
   0x4   :  { %s3208_s17 = sld [smem:[%s4362_s0 + %s3150_s14]]   ;;  %s3153_s26 = smov 6  }
   0x5   :  { %s3213_s21 = sld [smem:[%s4362_s0 + %s3151_s18]]   ;;  %s3154_s30 = smov 7  }
   0x6   :  { %s3218_s25 = sld [smem:[%s4362_s0 + %s3152_s22]]   ;;  %s3155_s4 = smov 8  }
   0x7   :  { %s3223_s29 = sld [smem:[%s4362_s0 + %s3153_s26]]   ;;  %s3156_s10 = smov 9  }
   0x8   :  { %s3228_s3 = sld [smem:[%s4362_s0 + %s3154_s30]]   ;;  %s3157_s15 = smov 10  }
   0x9   :  { %4369 = sst [smem:[#allocation8_spill]] %s3203_s13  ;;  %s3158_s20 = smov 11  }
   0xa   :  { %4370 = sst [smem:[#allocation9_spill]] %s3208_s17  ;;  %s3159_s26 = smov 12  }
   0xb   :  { %4371 = sst [smem:[#allocation10_spill]] %s3213_s21  ;;  %s3160_s1 = smov 13  }
   0xc   :  { %4372 = sst [smem:[#allocation11_spill]] %s3218_s25  ;;  %s3161_s7 = smov 14  }
   0xd   :  { %s3233_s8 = sld [smem:[%s4362_s0 + %s3155_s4]]   ;;  %s3163_s22 = smov 16  }
   0xe   :  { %4373 = sst [smem:[#allocation12_spill]] %s3228_s3  ;;  %s3164_s28 = smov 17  }
   0xf   :  { %s3238_s14 = sld [smem:[%s4362_s0 + %s3156_s10]]  }
  0x10   :  { %s3243_s19 = sld [smem:[%s4362_s0 + %s3157_s15]]   ;;  %s3162_s15 = smov 15  }
  0x11   :  { %s3248_s24 = sld [smem:[%s4362_s0 + %s3158_s20]]  }
  0x12   :  { %s3253_s30 = sld [smem:[%s4362_s0 + %s3159_s26]]  }
  0x13   :  { %s3258_s6 = sld [smem:[%s4362_s0 + %s3160_s1]]  }
  0x14   :  { %s3263_s12 = sld [smem:[%s4362_s0 + %s3161_s7]]   ;;  %s3165_s7 = smov 18  }
  0x15   :  { %s3268_s20 = sld [smem:[%s4362_s0 + %s3162_s15]]   ;;  %s3166_s15 = smov 19  }
  0x16   :  { %s3273_s27 = sld [smem:[%s4362_s0 + %s3163_s22]]   ;;  %s3167_s22 = smov 20  }
  0x17   :  { %s3278_s4 = sld [smem:[%s4362_s0 + %s3164_s28]]   ;;  %s3168_s28 = smov 21  }
  0x18   :  { %s3283_s17 = sld [smem:[%s4362_s0 + %s3165_s7]]   ;;  %s3169_s7 = smov 22  }
  0x19   :  { %s3288_s3 = sld [smem:[%s4362_s0 + %s3166_s15]]   ;;  %s3170_s15 = smov 23  }
  0x1a   :  { %s3293_s21 = sld [smem:[%s4362_s0 + %s3167_s22]]   ;;  %s3171_s22 = smov 24  }
  0x1b   :  { %4374 = sst [smem:[#allocation13_spill]] %s3268_s20 }
  0x1c   :  { %s3298_s25 = sld [smem:[%s4362_s0 + %s3168_s28]]   ;;  %s3172_s28 = smov 25  }
  0x1d   :  { %s3303_s20 = sld [smem:[%s4362_s0 + %s3169_s7]]   ;;  %s3173_s7 = smov 26  }
  0x1e   :  { %4375 = sst [smem:[#allocation14_spill]] %s3283_s17 }
  0x1f   :  { %s3308_s13 = sld [smem:[%s4362_s0 + %s3170_s15]]   ;;  %s3174_s15 = smov 27  }
  0x20   :  { %4376 = sst [smem:[#allocation15_spill]] %s3293_s21 }
  0x21   :  { %s3313_s21 = sld [smem:[%s4362_s0 + %s3171_s22]]   ;;  %s3175_s22 = smov 28  }
  0x22   :  { %s3318_s17 = sld [smem:[%s4362_s0 + %s3172_s28]]   ;;  %s3176_s28 = smov 29  }
  0x23   :  { %4377 = sst [smem:[#allocation16_spill]] %s3303_s20 }
  0x24   :  { %s3323_s20 = sld [smem:[%s4362_s0 + %s3173_s7]]   ;;  %s3177_s7 = smov 30  }
  0x25   :  { %4378 = sst [smem:[#allocation17_spill]] %s3308_s13 }
  0x26   :  { %s3328_s13 = sld [smem:[%s4362_s0 + %s3174_s15]]   ;;  %s3178_s15 = smov 31  }
  0x27   :  { %4379 = sst [smem:[#allocation18_spill]] %s3313_s21 }
  0x28   :  { %4380 = sst [smem:[#allocation19_spill]] %s3318_s17 }
  0x29   :  { %s3333_s21 = sld [smem:[%s4362_s0 + %s3175_s22]]   ;;  %s3179_s22 = smov 32  }
  0x2a   :  { %4381 = sst [smem:[#allocation20_spill]] %s3323_s20 }
  0x2b   :  { %s3338_s17 = sld [smem:[%s4362_s0 + %s3176_s28]]   ;;  %s3180_s28 = smov 33  }
  0x2c   :  { %4382 = sst [smem:[#allocation21_spill]] %s3328_s13 }
  0x2d   :  { %s3343_s20 = sld [smem:[%s4362_s0 + %s3177_s7]]  }
  0x2e   :  { %s3348_s13 = sld [smem:[%s4362_s0 + %s3178_s15]]  }
  0x2f   :  { %4383 = sst [smem:[#allocation22_spill]] %s3333_s21 }
  0x30   :  { %s3353_s21 = sld [smem:[%s4362_s0 + %s3179_s22]]  }
  0x31   :  { %4384 = sst [smem:[#allocation23_spill]] %s3338_s17 }
  0x32   :  { %s3358_s17 = sld [smem:[%s4362_s0 + %s3180_s28]]  }
  0x33   :  { %73 = vsyncpa [#allocation4], 0 }
  0x34   :  { %74 = vsyncpa [#allocation3], 0  ;;  %s80_s7 = sshll.u32 %s3193_s5, 4  ;;  %s3112_s15 = scalar_lea.vmem %s3193_s5, 1  ;;  %s81_s7 = int_to_ptr.vmem [resolvable:$true] %s80_s7 }
  0x35   :  { %s3108_s10 = sshra.s32 %s81_s7, 4  ;;  %s3109_s10 = int_to_ptr.vmem [resolvable:$true] %s3108_s10 }
  0x36   :  { %s3110_s11 = scalar_lea.vmem %s3109_s10, 1  ;;  %p3113_p1 = scmp.lt.s32.totalorder %s3109_s10, %s3193_s5 }
  0x37   :  { %p3111_p0 = scmp.ne.s32.totalorder %s3109_s10, %s3110_s11  ;;  %p3114_p2 = scmp.lt.s32.totalorder %s3112_s15, %s3110_s11 }
  0x39   :  { %p3115_p3 = por %p3114_p2, %p3113_p1 }
  0x3b   :  { %p3116_p4 = pnand %p3115_p3, %p3111_p0 }
  0x3d   :  { %3119 = shalt.err (!%p3116_p4)
}
  0x3e   :  { %s3181_s16 = smov [#allocation2]  }
  0x3f   :  { %83 = dma.vmem_to_smem %s81_s7, 16, %s3181_s16, [#allocation4]  }
  0x40   :  { %3144 = dma.done.wait [#allocation4], 16  }
  0x41   :  { %3145 = vsyncadd [#allocation4], 4294967280 }
  0x42   :  { %150 = sfence }
  0x43   :  { %v167_v0 = vld [vmem:[%s3233_s8] sm:$0xf]  ;;  %vm221_vm0 = vcmask 1043456   ;;  %vm172_vm1 = vcmask 31744   ;;  %v152_v2 = vld [vmem:[%s3198_s9 + $0x8] sm:$0xff]  ;;  %v153_v3 = vld [vmem:[%s3198_s9 + $0x10] sm:$0xff] }
  0x44   :  { %v151_v1 = vld [vmem:[%s3198_s9] sm:$0xff]  ;;  %2750 = vmatpush.msk.msra.mxu0 %vm221_vm0, %v167_v0  ;;  %v154_v4 = vld [vmem:[%s3198_s9 + $0x18] sm:$0xff]  ;;  %v156_v6 = vld [vmem:[%s3198_s9 + $0x28] sm:$0xff]  ;;  %vm318_vm2 = vcmask 523264   ;;  %vm504_vm3 = vcmask 1041409   ;;  %vm653_vm4 = vcmask 1041408  }
  0x45   :  { %2751 = vmatmul.msk.f32.vlgmr.msra.gmra.mxu0 %vm172_vm1, %v151_v1  ;;  %v155_v5 = vld [vmem:[%s3198_s9 + $0x20] sm:$0xff]  ;;  %v157_v7 = vld [vmem:[%s3198_s9 + $0x30] sm:$0xff]  ;;  %v158_v8 = vld [vmem:[%s3198_s9 + $0x38] sm:$0xff]  ;;  %vm604_vm5 = vcmask 15360   ;;  %s4385_s0 = sld [smem:[#allocation14_spill]]  ;;  %vm1422_vm6 = vcmask 130048  }
  0x46   :  { %v159_v9 = vld [vmem:[%s3198_s9 + $0x40] sm:$0xff]  ;;  %v160_v10 = vld [vmem:[%s3198_s9 + $0x48] sm:$0xff]  ;;  %v161_v11 = vld [vmem:[%s3198_s9 + $0x50] sm:$0xff]  ;;  %s4386_s5 = sld [smem:[#allocation17_spill]]  ;;  %vm1450_vm7 = vcmask 261120  }
  0x47   :  { %v313_v12 = vld [vmem:[%s3243_s19 + $0x38] sm:$0xff]  ;;  %v312_v13 = vld [vmem:[%s3243_s19 + $0x30] sm:$0xff]  ;;  %v311_v14 = vld [vmem:[%s3243_s19 + $0x28] sm:$0xff]  ;;  %s3865_s8 = sld [smem:[#allocation2 + $0x1]] }
  0x48   :  { %375 = vmatpush.msra.mxu1 %v313_v12  ;;  %v162_v15 = vld [vmem:[%s3198_s9 + $0x58] sm:$0xff]  ;;  %v310_v16 = vld [vmem:[%s3243_s19 + $0x20] sm:$0xff]  ;;  %v308_v18 = vld [vmem:[%s3243_s19 + $0x10] sm:$0xff]  ;;  %s2869_s22 = sld [smem:[#allocation2 + $0x3]] }
  0x49   :  { %v309_v17 = vld [vmem:[%s3243_s19 + $0x18] sm:$0xff]  ;;  %v163_v19 = vld [vmem:[%s3198_s9 + $0x60] sm:$0xff]  ;;  %v307_v20 = vld [vmem:[%s3243_s19 + $0x8] sm:$0xff]  ;;  %s4409_s28 = sld [smem:[#allocation20_spill]] }
  0x4a   :  { %376 = vmatpush.msra.mxu1 %v312_v13  ;;  %v306_v21 = vld [vmem:[%s3243_s19] sm:$0xff]  ;;  %v164_v22 = vld [vmem:[%s3198_s9 + $0x68] sm:$0xff]  ;;  %v165_v23 = vld [vmem:[%s3198_s9 + $0x70] sm:$0xff]  ;;  %s4410_s1 = sld [smem:[#allocation13_spill]] }
  0x4b   :  { %v166_v24 = vld [vmem:[%s3198_s9 + $0x78] sm:$0xff]  ;;  %v3406_v25 = vld [vmem:[%s3238_s14] ss:$0 sm:$0xff]  ;;  %s4387_s9 = sld [smem:[#allocation16_spill]] }
  0x4c   :  { %377 = vmatpush.msra.mxu1 %v311_v14  ;;  %s3871_s14 = sld [smem:[#allocation2]] }
  0x4d   :  { %2752 = vmatmul.msk.f32.gmra.mxu0 %vm172_vm1, %v152_v2  ;;  %s4411_s2 = sld [smem:[#allocation19_spill]] }
  0x4e   :  { %378 = vmatpush.msra.mxu1 %v310_v16  ;;  %s4412_s7 = sld [smem:[#allocation11_spill]] }
  0x4f   :  { %s4413_s10 = sld [smem:[#allocation10_spill]] }
  0x50   :  { %379 = vmatpush.msra.mxu1 %v309_v17  ;;  %s4414_s11 = sld [smem:[#allocation12_spill]] }
  0x51   :  { %s4415_s15 = sld [smem:[#allocation9_spill]] }
  0x52   :  { %380 = vmatpush.msra.mxu1 %v308_v18  ;;  %s1417_s19 = ssub.f32 %s3865_s8, %s3871_s14 }
  0x53   :  { %s4416_s16 = sld [smem:[#allocation21_spill]] }
  0x54   :  { %381 = vmatpush.msra.mxu1 %v307_v20 }
  0x55   :  { %2753 = vmatmul.msk.f32.gmra.mxu0 %vm172_vm1, %v153_v3 }
  0x56   :  { %382 = vmatpush.msra.mxu1 %v306_v21  ;;  %v497_v21 = vld [vmem:[%s3253_s30 + $0x38] sm:$0xff] }
  0x57   :  { %516 = vmatpush.msra.mxu2 %v497_v21 }
  0x5d   :  { %2754 = vmatmul.msk.f32.gmra.mxu0 %vm172_vm1, %v154_v4 }
  0x65   :  { %2755 = vmatmul.msk.f32.gmra.mxu0 %vm172_vm1, %v155_v5 }
  0x6d   :  { %2756 = vmatmul.msk.f32.gmra.mxu0 %vm172_vm1, %v156_v6 }
  0x75   :  { %2757 = vmatmul.msk.f32.gmra.mxu0 %vm172_vm1, %v157_v7 }
  0x7d   :  { %2758 = vmatmul.msk.f32.gmra.mxu0 %vm172_vm1, %v158_v8 }
  0x85   :  { %2759 = vmatmul.msk.f32.gmra.mxu0 %vm172_vm1, %v159_v9 }
  0x8d   :  { %2760 = vmatmul.msk.f32.gmra.mxu0 %vm172_vm1, %v160_v10 }
  0x95   :  { %2761 = vmatmul.msk.f32.gmra.mxu0 %vm172_vm1, %v161_v11 }
  0x9d   :  { %2762 = vmatmul.msk.f32.gmra.mxu0 %vm172_vm1, %v162_v15 }
  0xa5   :  { %2763 = vmatmul.msk.f32.gmra.mxu0 %vm172_vm1, %v163_v19 }
  0xad   :  { %2764 = vmatmul.msk.f32.gmra.mxu0 %vm172_vm1, %v164_v22  ;;  %v496_v22 = vld [vmem:[%s3253_s30 + $0x30] sm:$0xff] }
  0xae   :  { %517 = vmatpush.msra.mxu2 %v496_v22 }
  0xb5   :  { %2765 = vmatmul.msk.f32.gmra.mxu0 %vm172_vm1, %v165_v23  ;;  %v495_v23 = vld [vmem:[%s3253_s30 + $0x28] sm:$0xff] }
  0xb6   :  { %518 = vmatpush.msra.mxu2 %v495_v23 }
  0xbd   :  { %2766 = vmatmul.msk.f32.gmra.mxu0 %vm172_vm1, %v166_v24  ;;  %v494_v24 = vld [vmem:[%s3253_s30 + $0x20] sm:$0xff] }
  0xbe   :  { %519 = vmatpush.msra.mxu2 %v494_v24 }
  0xc2   :  { %v242_v26 = vpop.f32.mrf.mxu0 }
  0xc3   :  { %v243_v27 = vadd.f32 %v3406_v25, %v242_v26  ;;  %v493_v26 = vld [vmem:[%s3253_s30 + $0x18] sm:$0xff] }
  0xc4   :  { %520 = vmatpush.msra.mxu2 %v493_v26 }
  0xc5   :  { %v290_v28 = vmax.f32 %v243_v27, 0.0  ;;  %v492_v27 = vld [vmem:[%s3253_s30 + $0x10] sm:$0xff] }
  0xc6   :  { %521 = vmatpush.msra.mxu2 %v492_v27 }
  0xc7   :  { %2767 = vmatmul.msk.f32.vlgmr.msra.gmra.mxu1 %vm318_vm2, %v290_v28  ;;  %v491_v28 = vld [vmem:[%s3253_s30 + $0x8] sm:$0xff] }
  0xc8   :  { %522 = vmatpush.msra.mxu2 %v491_v28 }
  0xca   :  { %v245_v29 = vpop.f32.mrf.mxu0 }
  0xcb   :  { %v246_v30 = vadd.f32 %v3406_v25, %v245_v29  ;;  %v3456_v29 = vld [vmem:[%s3248_s24] ss:$0 sm:$0xff]  ;;  %s1418_s24 = smul.f32 0.25, %s1417_s19 }
  0xcd   :  { %v291_v31 = vmax.f32 %v246_v30, 0.0  ;;  %v490_v30 = vld [vmem:[%s3253_s30] sm:$0xff]  ;;  %s4398_s30 = sld [smem:[#allocation18_spill]] }
  0xce   :  { %523 = vmatpush.msra.mxu2 %v490_v30 }
  0xcf   :  { %2768 = vmatmul.msk.f32.gmra.mxu1 %vm318_vm2, %v291_v31  ;;  %v535_v31 = vld [vmem:[%s3263_s12 + $0x38] sm:$0xff] }
  0xd0   :  { %548 = vmatpush.msrb.mxu1 %v535_v31 }
  0xd2   :  { %v248_v32 = vpop.f32.mrf.mxu0 }
  0xd3   :  { %v249_v33 = vadd.f32 %v3406_v25, %v248_v32 }
  0xd5   :  { %v292_v34 = vmax.f32 %v249_v33, 0.0  ;;  %v583_v33 = vld [vmem:[%s3278_s4 + $0x38] sm:$0xff] }
  0xd6   :  { %592 = vmatpush.msrb.mxu2 %v583_v33 }
  0xd7   :  { %2769 = vmatmul.msk.f32.gmra.mxu1 %vm318_vm2, %v292_v34 }
  0xda   :  { %v251_v35 = vpop.f32.mrf.mxu0 }
  0xdb   :  { %v252_v36 = vadd.f32 %v3406_v25, %v251_v35  ;;  %v534_v35 = vld [vmem:[%s3263_s12 + $0x30] sm:$0xff] }
  0xdc   :  { %549 = vmatpush.msrb.mxu1 %v534_v35 }
  0xdd   :  { %v293_v37 = vmax.f32 %v252_v36, 0.0  ;;  %v582_v36 = vld [vmem:[%s3278_s4 + $0x30] sm:$0xff] }
  0xde   :  { %593 = vmatpush.msrb.mxu2 %v582_v36 }
  0xdf   :  { %2770 = vmatmul.msk.f32.gmra.mxu1 %vm318_vm2, %v293_v37 }
  0xe2   :  { %v254_v38 = vpop.f32.mrf.mxu0 }
  0xe3   :  { %v255_v39 = vadd.f32 %v3406_v25, %v254_v38 }
  0xe5   :  { %v294_v40 = vmax.f32 %v255_v39, 0.0 }
  0xe7   :  { %2771 = vmatmul.msk.f32.gmra.mxu1 %vm318_vm2, %v294_v40  ;;  %v533_v40 = vld [vmem:[%s3263_s12 + $0x28] sm:$0xff] }
  0xe8   :  { %550 = vmatpush.msrb.mxu1 %v533_v40 }
  0xea   :  { %v257_v41 = vpop.f32.mrf.mxu0 }
  0xeb   :  { %v258_v42 = vadd.f32 %v3406_v25, %v257_v41  ;;  %v581_v41 = vld [vmem:[%s3278_s4 + $0x28] sm:$0xff] }
  0xec   :  { %594 = vmatpush.msrb.mxu2 %v581_v41 }
  0xed   :  { %v295_v43 = vmax.f32 %v258_v42, 0.0 }
  0xef   :  { %2772 = vmatmul.msk.f32.gmra.mxu1 %vm318_vm2, %v295_v43 }
  0xf2   :  { %v260_v44 = vpop.f32.mrf.mxu0 }
  0xf3   :  { %v261_v45 = vadd.f32 %v3406_v25, %v260_v44 }
  0xf5   :  { %v296_v46 = vmax.f32 %v261_v45, 0.0 }
  0xf7   :  { %2773 = vmatmul.msk.f32.gmra.mxu1 %vm318_vm2, %v296_v46  ;;  %v532_v46 = vld [vmem:[%s3263_s12 + $0x20] sm:$0xff] }
  0xf8   :  { %551 = vmatpush.msrb.mxu1 %v532_v46 }
  0xfa   :  { %v263_v47 = vpop.f32.mrf.mxu0 }
  0xfb   :  { %v264_v48 = vadd.f32 %v3406_v25, %v263_v47  ;;  %v580_v47 = vld [vmem:[%s3278_s4 + $0x20] sm:$0xff] }
  0xfc   :  { %595 = vmatpush.msrb.mxu2 %v580_v47 }
  0xfd   :  { %v297_v49 = vmax.f32 %v264_v48, 0.0  ;;  %v531_v48 = vld [vmem:[%s3263_s12 + $0x18] sm:$0xff] }
  0xfe   :  { %552 = vmatpush.msrb.mxu1 %v531_v48 }
  0xff   :  { %2774 = vmatmul.msk.f32.gmra.mxu1 %vm318_vm2, %v297_v49  ;;  %v579_v49 = vld [vmem:[%s3278_s4 + $0x18] sm:$0xff] }
 0x100   :  { %596 = vmatpush.msrb.mxu2 %v579_v49 }
 0x102   :  { %v266_v50 = vpop.f32.mrf.mxu0 }
 0x103   :  { %v267_v51 = vadd.f32 %v3406_v25, %v266_v50 }
 0x105   :  { %v298_v52 = vmax.f32 %v267_v51, 0.0 }
 0x107   :  { %2775 = vmatmul.msk.f32.gmra.mxu1 %vm318_vm2, %v298_v52 }
 0x10a   :  { %v269_v53 = vpop.f32.mrf.mxu0 }
 0x10b   :  { %v270_v54 = vadd.f32 %v3406_v25, %v269_v53 }
 0x10d   :  { %v299_v55 = vmax.f32 %v270_v54, 0.0  ;;  %v530_v54 = vld [vmem:[%s3263_s12 + $0x10] sm:$0xff] }
 0x10e   :  { %553 = vmatpush.msrb.mxu1 %v530_v54 }
 0x10f   :  { %2776 = vmatmul.msk.f32.gmra.mxu1 %vm318_vm2, %v299_v55 }
 0x112   :  { %v272_v56 = vpop.f32.mrf.mxu0 }
 0x113   :  { %v273_v57 = vadd.f32 %v3406_v25, %v272_v56  ;;  %v578_v56 = vld [vmem:[%s3278_s4 + $0x10] sm:$0xff] }
 0x114   :  { %597 = vmatpush.msrb.mxu2 %v578_v56 }
 0x115   :  { %v300_v58 = vmax.f32 %v273_v57, 0.0 }
 0x117   :  { %2777 = vmatmul.msk.f32.gmra.mxu1 %vm318_vm2, %v300_v58 }
 0x11a   :  { %v275_v59 = vpop.f32.mrf.mxu0 }
 0x11b   :  { %v276_v60 = vadd.f32 %v3406_v25, %v275_v59 }
 0x11d   :  { %v301_v61 = vmax.f32 %v276_v60, 0.0 }
 0x11f   :  { %2778 = vmatmul.msk.f32.gmra.mxu1 %vm318_vm2, %v301_v61  ;;  %v529_v61 = vld [vmem:[%s3263_s12 + $0x8] sm:$0xff] }
 0x120   :  { %554 = vmatpush.msrb.mxu1 %v529_v61 }
 0x122   :  { %v278_v62 = vpop.f32.mrf.mxu0 }
 0x123   :  { %v279_v63 = vadd.f32 %v3406_v25, %v278_v62  ;;  %v577_v62 = vld [vmem:[%s3278_s4 + $0x8] sm:$0xff] }
 0x124   :  { %598 = vmatpush.msrb.mxu2 %v577_v62 }
 0x125   :  { %v302_v0 = vmax.f32 %v279_v63, 0.0 }
 0x127   :  { %2779 = vmatmul.msk.f32.gmra.mxu1 %vm318_vm2, %v302_v0 }
 0x12a   :  { %v281_v1 = vpop.f32.mrf.mxu0 }
 0x12b   :  { %v282_v2 = vadd.f32 %v3406_v25, %v281_v1 }
 0x12d   :  { %v303_v3 = vmax.f32 %v282_v2, 0.0 }
 0x12f   :  { %2780 = vmatmul.msk.f32.gmra.mxu1 %vm318_vm2, %v303_v3  ;;  %v528_v3 = vld [vmem:[%s3263_s12] sm:$0xff] }
 0x130   :  { %555 = vmatpush.msrb.mxu1 %v528_v3 }
 0x132   :  { %v284_v4 = vpop.f32.mrf.mxu0 }
 0x133   :  { %v285_v5 = vadd.f32 %v3406_v25, %v284_v4 }
 0x135   :  { %v304_v6 = vmax.f32 %v285_v5, 0.0 }
 0x137   :  { %2781 = vmatmul.msk.f32.gmra.mxu1 %vm318_vm2, %v304_v6 }
 0x13a   :  { %v287_v7 = vpop.f32.mrf.mxu0 }
 0x13b   :  { %v288_v8 = vadd.f32 %v3406_v25, %v287_v7 }
 0x13d   :  { %v305_v9 = vmax.f32 %v288_v8, 0.0 }
 0x13f   :  { %2782 = vmatmul.msk.f32.gmra.mxu1 %vm318_vm2, %v305_v9 }
 0x144   :  { %v384_v10 = vpop.f32.mrf.mxu1 }
 0x145   :  { %v3480_v42 = vadd.f32 %v3456_v29, %v384_v10  ;;  %v576_v10 = vld [vmem:[%s3278_s4] sm:$0xff] }
 0x146   :  { %599 = vmatpush.msrb.mxu2 %v576_v10 }
 0x147   :  { %v432_v57 = vmax.f32 %v3480_v42, 0.0  ;;  %v562_v42 = vld [vmem:[%s3223_s29 + $0x10] sm:$0xff] }
 0x149   :  { %v448_v5 = vsel %vm318_vm2, %v432_v57, -inf }
 0x14c   :  { %v387_v11 = vpop.f32.mrf.mxu1 }
 0x14d   :  { %v3469_v37 = vadd.f32 %v3456_v29, %v387_v11 }
 0x14f   :  { %v433_v50 = vmax.f32 %v3469_v37, 0.0  ;;  %v560_v37 = vld [vmem:[%s3223_s29] sm:$0xff] }
 0x151   :  { %v449_v63 = vsel %vm318_vm2, %v433_v50, -inf }
 0x154   :  { %v390_v12 = vpop.f32.mrf.mxu1 }
 0x155   :  { %v3472_v38 = vadd.f32 %v3456_v29, %v390_v12 }
 0x157   :  { %v434_v51 = vmax.f32 %v3472_v38, 0.0 }
 0x159   :  { %v450_v0 = vsel %vm318_vm2, %v434_v51, -inf }
 0x15a   :  { %v451_v8 = vmax.f32 %v448_v5, %v450_v0 }
 0x15c   :  { %v393_v13 = vpop.f32.mrf.mxu1 }
 0x15d   :  { %v3464_v34 = vadd.f32 %v3456_v29, %v393_v13 }
 0x15f   :  { %v435_v43 = vmax.f32 %v3464_v34, 0.0 }
 0x161   :  { %v452_v58 = vsel %vm318_vm2, %v435_v43, -inf }
 0x162   :  { %v453_v4 = vmax.f32 %v449_v63, %v452_v58 }
 0x164   :  { %v396_v14 = vpop.f32.mrf.mxu1 }
 0x165   :  { %v3484_v44 = vadd.f32 %v3456_v29, %v396_v14 }
 0x167   :  { %v436_v59 = vmax.f32 %v3484_v44, 0.0  ;;  %v564_v44 = vld [vmem:[%s3223_s29 + $0x20] sm:$0xff] }
 0x169   :  { %v454_v6 = vsel %vm318_vm2, %v436_v59, -inf }
 0x16a   :  { %v455_v14 = vmax.f32 %v451_v8, %v454_v6 }
 0x16c   :  { %v399_v15 = vpop.f32.mrf.mxu1 }
 0x16d   :  { %v3475_v39 = vadd.f32 %v3456_v29, %v399_v15 }
 0x16f   :  { %v437_v52 = vmax.f32 %v3475_v39, 0.0  ;;  %v561_v39 = vld [vmem:[%s3223_s29 + $0x8] sm:$0xff] }
 0x171   :  { %v456_v1 = vsel %vm318_vm2, %v437_v52, -inf }
 0x172   :  { %v457_v9 = vmax.f32 %v453_v4, %v456_v1 }
 0x174   :  { %v402_v16 = vpop.f32.mrf.mxu1 }
 0x175   :  { %v3497_v53 = vadd.f32 %v3456_v29, %v402_v16 }
 0x177   :  { %v438_v2 = vmax.f32 %v3497_v53, 0.0  ;;  %v569_v53 = vld [vmem:[%s3223_s29 + $0x48] sm:$0xff] }
 0x179   :  { %v458_v11 = vsel %vm318_vm2, %v438_v2, -inf }
 0x17a   :  { %v459_v23 = vmax.f32 %v455_v14, %v458_v11 }
 0x17c   :  { %v405_v17 = vpop.f32.mrf.mxu1 }
 0x17d   :  { %v3487_v45 = vadd.f32 %v3456_v29, %v405_v17 }
 0x17f   :  { %v439_v60 = vmax.f32 %v3487_v45, 0.0  ;;  %v565_v45 = vld [vmem:[%s3223_s29 + $0x28] sm:$0xff] }
 0x181   :  { %v460_v7 = vsel %vm318_vm2, %v439_v60, -inf }
 0x182   :  { %v461_v15 = vmax.f32 %v457_v9, %v460_v7 }
 0x184   :  { %v3440_v18 = vpop.f32.mrf.mxu1  ;;  %v462_v26 = vmax.f32 %v459_v23, %v461_v15  ;;  %v729_v15 = vld [vmem:[%s3273_s27 + $0x38] sm:$0xff]  ;;  %v728_v23 = vld [vmem:[%s3273_s27 + $0x30] sm:$0xff] }
 0x185   :  { %v3543_v16 = vadd.f32 %v3456_v29, %v3440_v18 }
 0x186   :  { %v463_v35 = vrot.slane %v462_v26, 4 }
 0x187   :  { %v440_v27 = vmax.f32 %v3543_v16, 0.0  ;;  %v884_v16 = vld [vmem:[%s3288_s3 + $0x28] sm:$0xff] }
 0x188   :  { %v464_v58 = vmax.f32 %v462_v26, %v463_v35  ;;  %v727_v26 = vld [vmem:[%s3273_s27 + $0x28] sm:$0xff]  ;;  %v724_v35 = vld [vmem:[%s3273_s27 + $0x10] sm:$0xff] }
 0x189   :  { %v469_v36 = vsel %vm318_vm2, %v440_v27, -inf }
 0x18a   :  { %v465_v4 = vrot.slane %v464_v58, 2 }
 0x18c   :  { %v3442_v19 = vpop.f32.mrf.mxu1  ;;  %v466_v6 = vmax.f32 %v464_v58, %v465_v4 }
 0x18d   :  { %v3547_v21 = vadd.f32 %v3456_v29, %v3442_v19 }
 0x18e   :  { %v467_v8 = vrot.slane %v466_v6, 1 }
 0x18f   :  { %v441_v19 = vmax.f32 %v3547_v21, 0.0  ;;  %v1407_v21 = vld [vmem:[%s3298_s25] sm:$0xff] }
 0x190   :  { %v468_v11 = vmax.f32 %v466_v6, %v467_v8 }
 0x191   :  { %v470_v41 = vsel %vm318_vm2, %v441_v19, -inf }
 0x194   :  { %v3444_v20 = vpop.f32.mrf.mxu1 }
 0x195   :  { %v3535_v12 = vadd.f32 %v3456_v29, %v3444_v20 }
 0x197   :  { %v442_v24 = vmax.f32 %v3535_v12, 0.0  ;;  %v885_v12 = vld [vmem:[%s3288_s3 + $0x30] sm:$0xff] }
 0x199   :  { %v471_v31 = vsel %vm318_vm2, %v442_v24, -inf }
 0x19a   :  { %v472_v49 = vmax.f32 %v469_v36, %v471_v31  ;;  %v726_v31 = vld [vmem:[%s3273_s27 + $0x20] sm:$0xff]  ;;  %v723_v36 = vld [vmem:[%s3273_s27 + $0x8] sm:$0xff] }
 0x19c   :  { %v3450_v25 = vpop.f32.mrf.mxu1 }
 0x19d   :  { %v3539_v13 = vadd.f32 %v3456_v29, %v3450_v25 }
 0x19f   :  { %v443_v25 = vmax.f32 %v3539_v13, 0.0  ;;  %v572_v13 = vld [vmem:[%s3223_s29 + $0x60] sm:$0xff] }
 0x1a4   :  { %v3460_v32 = vpop.f32.mrf.mxu1 }
 0x1a5   :  { %v3551_v20 = vadd.f32 %v3456_v29, %v3460_v32  ;;  %v473_v32 = vsel %vm318_vm2, %v443_v25, -inf }
 0x1a6   :  { %v474_v54 = vmax.f32 %v470_v41, %v473_v32  ;;  %v725_v32 = vld [vmem:[%s3273_s27 + $0x18] sm:$0xff] }
 0x1a7   :  { %v444_v28 = vmax.f32 %v3551_v20, 0.0  ;;  %v883_v20 = vld [vmem:[%s3288_s3 + $0x20] sm:$0xff] }
 0x1a9   :  { %v475_v46 = vsel %vm318_vm2, %v444_v28, -inf }
 0x1aa   :  { %v476_v61 = vmax.f32 %v472_v49, %v475_v46  ;;  %v2965_v46 = vld [vmem:[%s3258_s6] ss:$0 sm:$0xff] }
 0x1ac   :  { %v423_v55 = vpop.f32.mrf.mxu1 }
 0x1ad   :  { %v3554_v22 = vadd.f32 %v3456_v29, %v423_v55 }
 0x1af   :  { %v445_v30 = vmax.f32 %v3554_v22, 0.0  ;;  %v882_v22 = vld [vmem:[%s3288_s3 + $0x18] sm:$0xff] }
 0x1b1   :  { %v477_v47 = vsel %vm318_vm2, %v445_v30, -inf }
 0x1b2   :  { %v478_v62 = vmax.f32 %v474_v54, %v477_v47 }
 0x1b4   :  { %v426_v17 = vpop.f32.mrf.mxu1 }
 0x1b5   :  { %v3559_v18 = vadd.f32 %v3456_v29, %v426_v17 }
 0x1b7   :  { %v446_v33 = vmax.f32 %v3559_v18, 0.0  ;;  %v573_v18 = vld [vmem:[%s3223_s29 + $0x68] sm:$0xff] }
 0x1b9   :  { %v479_v55 = vsel %vm318_vm2, %v446_v33, -inf }
 0x1ba   :  { %v480_v0 = vmax.f32 %v476_v61, %v479_v55 }
 0x1bc   :  { %v429_v40 = vpop.f32.mrf.mxu1 }
 0x1bd   :  { %v430_v48 = vadd.f32 %v3456_v29, %v429_v40  ;;  %v722_v40 = vld [vmem:[%s3273_s27] sm:$0xff]  ;;  %s4104_s27 = sld [smem:[#allocation2 + $0x2]] }
 0x1bf   :  { %v447_v56 = vmax.f32 %v430_v48, 0.0  ;;  %v3698_v48 = vld [vmem:[%s4385_s0] ss:$0 sm:$0xff]  ;;  %s4417_s0 = sld [smem:[#allocation22_spill]] }
 0x1c1   :  { %v481_v63 = vsel %vm318_vm2, %v447_v56, -inf }
 0x1c2   :  { %v482_v1 = vmax.f32 %v478_v62, %v481_v63 }
 0x1c3   :  { %s1625_s4 = ssub.f32 %s4104_s27, %s3865_s8  ;;  %s3136_s8 = scalar_lea.hbm %s3358_s17, 1 }
 0x1c4   :  { %v483_v3 = vmax.f32 %v480_v0, %v482_v1  ;;  %s1825_s23 = ssub.f32 %s2869_s22, %s4104_s27 }
 0x1c5   :  { %s1626_s18 = smul.f32 0.25, %s1625_s4 }
 0x1c6   :  { %v484_v5 = vrot.slane %v483_v3, 4  ;;  %s1826_s26 = smul.f32 0.25, %s1825_s23 }
 0x1c8   :  { %v485_v29 = vmax.f32 %v483_v3, %v484_v5 }
 0x1ca   :  { %v486_v7 = vrot.slane %v485_v29, 2 }
 0x1cc   :  { %v487_v9 = vmax.f32 %v485_v29, %v486_v7 }
 0x1ce   :  { %v488_v10 = vrot.slane %v487_v9, 1 }
 0x1d0   :  { %v489_v14 = vmax.f32 %v487_v9, %v488_v10 }
 0x1d2   :  { %v505_v17 = vsel %vm504_vm3, %v489_v14, %v468_v11 }
 0x1d3   :  { %2783 = vmatmul.msk.f32.vlgmr.msra.gmra.mxu2 %vm318_vm2, %v505_v17  ;;  %2784 = vmatmul.msk.f32.vlgmr.msrb.gmra.mxu1 %vm318_vm2, %v505_v17 }
 0x1d4   :  { %786 = vmatpush.msra.mxu2 %v729_v15 }
 0x1d6   :  { %787 = vmatpush.msra.mxu2 %v728_v23 }
 0x1d8   :  { %788 = vmatpush.msra.mxu2 %v727_v26 }
 0x1da   :  { %789 = vmatpush.msra.mxu2 %v726_v31 }
 0x1db   :  { %2785 = vmatmul.msk.f32.vlgmr.msrb.gmra.mxu2 %vm318_vm2, %v505_v17 }
 0x1dc   :  { %790 = vmatpush.msra.mxu2 %v725_v32 }
 0x1de   :  { %791 = vmatpush.msra.mxu2 %v724_v35 }
 0x1e0   :  { %792 = vmatpush.msra.mxu2 %v723_v36 }
 0x1e2   :  { %793 = vmatpush.msra.mxu2 %v722_v40 }
 0x1e3   :  { %2803 = vmatmul.msk.f32.vlgmr.msra.gmra.mxu2 %vm318_vm2, %v432_v57  ;;  %v570_v57 = vld [vmem:[%s3223_s29 + $0x50] sm:$0xff] }
 0x1eb   :  { %2804 = vmatmul.msk.f32.gmra.mxu2 %vm318_vm2, %v433_v50  ;;  %v566_v50 = vld [vmem:[%s3223_s29 + $0x30] sm:$0xff] }
 0x1f3   :  { %2805 = vmatmul.msk.f32.gmra.mxu2 %vm318_vm2, %v434_v51  ;;  %v567_v51 = vld [vmem:[%s3223_s29 + $0x38] sm:$0xff] }
 0x1fb   :  { %2806 = vmatmul.msk.f32.gmra.mxu2 %vm318_vm2, %v435_v43  ;;  %v563_v43 = vld [vmem:[%s3223_s29 + $0x18] sm:$0xff] }
 0x203   :  { %2807 = vmatmul.msk.f32.gmra.mxu2 %vm318_vm2, %v436_v59  ;;  %v571_v59 = vld [vmem:[%s3223_s29 + $0x58] sm:$0xff] }
 0x20b   :  { %2808 = vmatmul.msk.f32.gmra.mxu2 %vm318_vm2, %v437_v52  ;;  %v568_v52 = vld [vmem:[%s3223_s29 + $0x40] sm:$0xff] }
 0x213   :  { %2809 = vmatmul.msk.f32.gmra.mxu2 %vm318_vm2, %v438_v2  ;;  %v886_v2 = vld [vmem:[%s3288_s3 + $0x38] sm:$0xff] }
 0x214   :  { %947 = vmatpush.msrb.mxu0 %v886_v2 }
 0x216   :  { %948 = vmatpush.msrb.mxu0 %v885_v12 }
 0x218   :  { %949 = vmatpush.msrb.mxu0 %v884_v16 }
 0x21a   :  { %950 = vmatpush.msrb.mxu0 %v883_v20 }
 0x21b   :  { %2810 = vmatmul.msk.f32.gmra.mxu2 %vm318_vm2, %v439_v60  ;;  %v1408_v60 = vld [vmem:[%s3298_s25 + $0x8] sm:$0xff] }
 0x21c   :  { %1644 = vmatpush.msrb.mxu2 %v1408_v60  ;;  %951 = vmatpush.msrb.mxu0 %v882_v22 }
 0x21e   :  { %1645 = vmatpush.msrb.mxu2 %v1407_v21 }
 0x223   :  { %2811 = vmatmul.msk.f32.gmra.mxu2 %vm318_vm2, %v440_v27  ;;  %v880_v27 = vld [vmem:[%s3288_s3 + $0x8] sm:$0xff] }
 0x22b   :  { %2812 = vmatmul.msk.f32.gmra.mxu2 %vm318_vm2, %v441_v19  ;;  %v879_v19 = vld [vmem:[%s3288_s3] sm:$0xff] }
 0x233   :  { %2813 = vmatmul.msk.f32.gmra.mxu2 %vm318_vm2, %v442_v24  ;;  %v881_v24 = vld [vmem:[%s3288_s3 + $0x10] sm:$0xff]  ;;  %s4389_s3 = sld [smem:[#allocation8_spill]] }
 0x234   :  { %952 = vmatpush.msrb.mxu0 %v881_v24 }
 0x236   :  { %953 = vmatpush.msrb.mxu0 %v880_v27 }
 0x238   :  { %954 = vmatpush.msrb.mxu0 %v879_v19 }
 0x23b   :  { %2814 = vmatmul.msk.f32.gmra.mxu2 %vm318_vm2, %v443_v25 }
 0x243   :  { %2815 = vmatmul.msk.f32.gmra.mxu2 %vm318_vm2, %v444_v28  ;;  %v574_v28 = vld [vmem:[%s3223_s29 + $0x70] sm:$0xff] }
 0x24b   :  { %2816 = vmatmul.msk.f32.gmra.mxu2 %vm318_vm2, %v445_v30 }
 0x253   :  { %2817 = vmatmul.msk.f32.gmra.mxu2 %vm318_vm2, %v446_v33  ;;  %v575_v33 = vld [vmem:[%s3223_s29 + $0x78] sm:$0xff]  ;;  %s4388_s29 = sld [smem:[#allocation15_spill]] }
 0x256   :  { %v3645_v34 = vpop.f32.mrf.mxu2 }
 0x257   :  { %v3693_v47 = vadd.f32 %v2965_v46, %v3645_v34 }
 0x25b   :  { %2818 = vmatmul.msk.f32.gmra.mxu2 %vm318_vm2, %v447_v56 }
 0x25e   :  { %v601_v38 = vpop.f32.mrf.mxu2 }
 0x25f   :  { %2786 = vmatpush.msk.msra.mxu3 %vm653_vm4, %v601_v38 }
 0x260   :  { %2787 = vmatmul.msk.f32.vlgmr.msra.gmra.mxu3 %vm604_vm5, %v560_v37 }
 0x261   :  { %1440 = vmatpush.msrb.mxu3 %v1408_v60 }
 0x263   :  { %1441 = vmatpush.msrb.mxu3 %v1407_v21 }
 0x265   :  { %1494 = vmatpush.msra.mxu3 %v1408_v60 }
 0x266   :  { %v795_v25 = vpop.f32.mrf.mxu2 }
 0x267   :  { %1495 = vmatpush.msra.mxu3 %v1407_v21 }
 0x268   :  { %2788 = vmatmul.msk.f32.gmra.mxu3 %vm604_vm5, %v561_v39 }
 0x26e   :  { %v798_v30 = vpop.f32.mrf.mxu2 }
 0x270   :  { %2789 = vmatmul.msk.f32.gmra.mxu3 %vm604_vm5, %v562_v42 }
 0x276   :  { %v801_v41 = vpop.f32.mrf.mxu2 }
 0x278   :  { %2790 = vmatmul.msk.f32.gmra.mxu3 %vm604_vm5, %v563_v43 }
 0x27e   :  { %v804_v49 = vpop.f32.mrf.mxu2 }
 0x280   :  { %2791 = vmatmul.msk.f32.gmra.mxu3 %vm604_vm5, %v564_v44 }
 0x286   :  { %v807_v63 = vpop.f32.mrf.mxu2 }
 0x288   :  { %2792 = vmatmul.msk.f32.gmra.mxu3 %vm604_vm5, %v565_v45 }
 0x28e   :  { %v810_v29 = vpop.f32.mrf.mxu2 }
 0x290   :  { %2793 = vmatmul.msk.f32.gmra.mxu3 %vm604_vm5, %v566_v50 }
 0x296   :  { %v813_v11 = vpop.f32.mrf.mxu2 }
 0x298   :  { %2794 = vmatmul.msk.f32.gmra.mxu3 %vm604_vm5, %v567_v51 }
 0x29e   :  { %v816_v26 = vpop.f32.mrf.mxu2 }
 0x2a0   :  { %2795 = vmatmul.msk.f32.gmra.mxu3 %vm604_vm5, %v568_v52 }
 0x2a6   :  { %v819_v37 = vpop.f32.mrf.mxu2 }
 0x2a8   :  { %2796 = vmatmul.msk.f32.gmra.mxu3 %vm604_vm5, %v569_v53 }
 0x2ae   :  { %v822_v45 = vpop.f32.mrf.mxu2 }
 0x2b0   :  { %2797 = vmatmul.msk.f32.gmra.mxu3 %vm604_vm5, %v570_v57 }
 0x2b8   :  { %2798 = vmatmul.msk.f32.gmra.mxu3 %vm604_vm5, %v571_v59  ;;  %v825_v59 = vpop.f32.mrf.mxu2 }
 0x2c0   :  { %2799 = vmatmul.msk.f32.gmra.mxu3 %vm604_vm5, %v572_v13  ;;  %v828_v16 = vpop.f32.mrf.mxu2 }
 0x2c8   :  { %2800 = vmatmul.msk.f32.gmra.mxu3 %vm604_vm5, %v573_v18  ;;  %v831_v27 = vpop.f32.mrf.mxu2 }
 0x2d0   :  { %2801 = vmatmul.msk.f32.gmra.mxu3 %vm604_vm5, %v574_v28 }
 0x2d8   :  { %2802 = vmatmul.msk.f32.gmra.mxu3 %vm604_vm5, %v575_v33 }
 0x2e0   :  { %2852 = vmatmul.msk.f32.vlgmr.msrb.gmra.mxu3 %vm1422_vm6, %v3693_v47 }
 0x2e1   :  { %1543 = vmatpush.msrb.mxu3 %v1408_v60 }
 0x2e3   :  { %v674_v54 = vpop.f32.mrf.mxu3  ;;  %1544 = vmatpush.msrb.mxu3 %v1407_v21 }
 0x2e4   :  { %v796_v55 = vadd.f32 %v795_v25, %v674_v54  ;;  %v3731_v54 = vld [vmem:[%s4386_s5 + $0x10] sm:$0xff] }
 0x2e6   :  { %v847_v56 = vadd.f32 %v3698_v48, %v796_v55 }
 0x2e8   :  { %v863_v58 = vmax.f32 %v847_v56, 0.0  ;;  %v3736_v56 = vld [vmem:[%s4386_s5 + $0x8] sm:$0xff] }
 0x2ea   :  { %2819 = vmatmul.msk.f32.vlgmr.msrb.gmra.mxu0 %vm318_vm2, %v863_v58 }
 0x2eb   :  { %v677_v61 = vpop.f32.mrf.mxu3 }
 0x2ec   :  { %v799_v62 = vadd.f32 %v798_v30, %v677_v61  ;;  %v3741_v61 = vld [vmem:[%s4386_s5] sm:$0xff] }
 0x2ee   :  { %v848_v0 = vadd.f32 %v3698_v48, %v799_v62 }
 0x2f0   :  { %v864_v1 = vmax.f32 %v848_v0, 0.0 }
 0x2f2   :  { %2820 = vmatmul.msk.f32.gmra.mxu0 %vm318_vm2, %v864_v1 }
 0x2f3   :  { %v680_v3 = vpop.f32.mrf.mxu3 }
 0x2f4   :  { %v802_v4 = vadd.f32 %v801_v41, %v680_v3  ;;  %v3725_v41 = vld [vmem:[%s4386_s5 + $0x18] sm:$0xff] }
 0x2f5   :  { %1466 = vmatpush.msra.mxu1 %v3725_v41  ;;  %1716 = vmatpush.msra.mxu2 %v3725_v41 }
 0x2f6   :  { %v849_v5 = vadd.f32 %v3698_v48, %v802_v4 }
 0x2f7   :  { %1467 = vmatpush.msra.mxu1 %v3731_v54  ;;  %1717 = vmatpush.msra.mxu2 %v3731_v54 }
 0x2f8   :  { %v865_v6 = vmax.f32 %v849_v5, 0.0 }
 0x2f9   :  { %1468 = vmatpush.msra.mxu1 %v3736_v56  ;;  %1718 = vmatpush.msra.mxu2 %v3736_v56 }
 0x2fa   :  { %2821 = vmatmul.msk.f32.gmra.mxu0 %vm318_vm2, %v865_v6 }
 0x2fb   :  { %v683_v7 = vpop.f32.mrf.mxu3  ;;  %1469 = vmatpush.msra.mxu1 %v3741_v61  ;;  %1719 = vmatpush.msra.mxu2 %v3741_v61 }
 0x2fc   :  { %v805_v8 = vadd.f32 %v804_v49, %v683_v7  ;;  %v834_v49 = vpop.f32.mrf.mxu2 }
 0x2fd   :  { %1516 = vmatpush.msrb.mxu1 %v3725_v41 }
 0x2fe   :  { %v850_v9 = vadd.f32 %v3698_v48, %v805_v8 }
 0x2ff   :  { %1517 = vmatpush.msrb.mxu1 %v3731_v54 }
 0x300   :  { %v866_v10 = vmax.f32 %v850_v9, 0.0 }
 0x301   :  { %1518 = vmatpush.msrb.mxu1 %v3736_v56 }
 0x302   :  { %2822 = vmatmul.msk.f32.gmra.mxu0 %vm318_vm2, %v866_v10 }
 0x303   :  { %v686_v14 = vpop.f32.mrf.mxu3  ;;  %1519 = vmatpush.msrb.mxu1 %v3741_v61 }
 0x304   :  { %v808_v15 = vadd.f32 %v807_v63, %v686_v14  ;;  %v837_v1 = vpop.f32.mrf.mxu2 }
 0x306   :  { %v851_v17 = vadd.f32 %v3698_v48, %v808_v15 }
 0x308   :  { %v867_v23 = vmax.f32 %v851_v17, 0.0  ;;  %v3761_v17 = vld [vmem:[%s4388_s29] ss:$0 sm:$0xff] }
 0x30a   :  { %2823 = vmatmul.msk.f32.gmra.mxu0 %vm318_vm2, %v867_v23 }
 0x30b   :  { %v689_v31 = vpop.f32.mrf.mxu3 }
 0x30c   :  { %v811_v32 = vadd.f32 %v810_v29, %v689_v31  ;;  %v840_v6 = vpop.f32.mrf.mxu2 }
 0x30e   :  { %v852_v35 = vadd.f32 %v3698_v48, %v811_v32 }
 0x310   :  { %v868_v36 = vmax.f32 %v852_v35, 0.0 }
 0x312   :  { %2824 = vmatmul.msk.f32.gmra.mxu0 %vm318_vm2, %v868_v36 }
 0x313   :  { %v692_v40 = vpop.f32.mrf.mxu3 }
 0x314   :  { %v814_v34 = vadd.f32 %v813_v11, %v692_v40  ;;  %v3756_v11 = vld [vmem:[%s4387_s9] ss:$0 sm:$0xff] }
 0x316   :  { %v853_v38 = vadd.f32 %v3698_v48, %v814_v34 }
 0x318   :  { %v869_v39 = vmax.f32 %v853_v38, 0.0 }
 0x31a   :  { %2825 = vmatmul.msk.f32.gmra.mxu0 %vm318_vm2, %v869_v39 }
 0x31b   :  { %v695_v42 = vpop.f32.mrf.mxu3 }
 0x31c   :  { %v817_v43 = vadd.f32 %v816_v26, %v695_v42 }
 0x31e   :  { %v854_v44 = vadd.f32 %v3698_v48, %v817_v43 }
 0x320   :  { %v870_v50 = vmax.f32 %v854_v44, 0.0 }
 0x322   :  { %2826 = vmatmul.msk.f32.gmra.mxu0 %vm318_vm2, %v870_v50 }
 0x323   :  { %v698_v51 = vpop.f32.mrf.mxu3 }
 0x324   :  { %v820_v52 = vadd.f32 %v819_v37, %v698_v51 }
 0x326   :  { %v855_v53 = vadd.f32 %v3698_v48, %v820_v52 }
 0x328   :  { %v871_v57 = vmax.f32 %v855_v53, 0.0 }
 0x32a   :  { %2827 = vmatmul.msk.f32.gmra.mxu0 %vm318_vm2, %v871_v57 }
 0x32b   :  { %v701_v60 = vpop.f32.mrf.mxu3 }
 0x32c   :  { %v823_v2 = vadd.f32 %v822_v45, %v701_v60 }
 0x32e   :  { %v856_v12 = vadd.f32 %v3698_v48, %v823_v2 }
 0x330   :  { %v872_v13 = vmax.f32 %v856_v12, 0.0 }
 0x332   :  { %2828 = vmatmul.msk.f32.gmra.mxu0 %vm318_vm2, %v872_v13 }
 0x333   :  { %v704_v21 = vpop.f32.mrf.mxu3 }
 0x334   :  { %v826_v20 = vadd.f32 %v825_v59, %v704_v21 }
 0x336   :  { %v857_v22 = vadd.f32 %v3698_v48, %v826_v20 }
 0x338   :  { %v873_v24 = vmax.f32 %v857_v22, 0.0 }
 0x33a   :  { %2829 = vmatmul.msk.f32.gmra.mxu0 %vm318_vm2, %v873_v24 }
 0x33b   :  { %v707_v25 = vpop.f32.mrf.mxu3 }
 0x33c   :  { %v829_v18 = vadd.f32 %v828_v16, %v707_v25 }
 0x33e   :  { %v858_v19 = vadd.f32 %v3698_v48, %v829_v18  ;;  %v1308_v18 = vld [vmem:[%s4389_s3] sm:$0xff] }
 0x340   :  { %v874_v28 = vmax.f32 %v858_v19, 0.0 }
 0x342   :  { %2830 = vmatmul.msk.f32.gmra.mxu0 %vm318_vm2, %v874_v28 }
 0x343   :  { %v710_v30 = vpop.f32.mrf.mxu3 }
 0x344   :  { %v832_v33 = vadd.f32 %v831_v27, %v710_v30 }
 0x346   :  { %v859_v46 = vadd.f32 %v3698_v48, %v832_v33 }
 0x348   :  { %v875_v55 = vmax.f32 %v859_v46, 0.0 }
 0x34a   :  { %2831 = vmatmul.msk.f32.gmra.mxu0 %vm318_vm2, %v875_v55 }
 0x34b   :  { %v713_v58 = vpop.f32.mrf.mxu3 }
 0x34c   :  { %v835_v62 = vadd.f32 %v834_v49, %v713_v58 }
 0x34e   :  { %v860_v63 = vadd.f32 %v3698_v48, %v835_v62 }
 0x350   :  { %v876_v0 = vmax.f32 %v860_v63, 0.0 }
 0x352   :  { %2832 = vmatmul.msk.f32.gmra.mxu0 %vm318_vm2, %v876_v0  ;;  %v1309_v0 = vld [vmem:[%s4389_s3 + $0x8] sm:$0xff] }
 0x353   :  { %v716_v3 = vpop.f32.mrf.mxu3 }
 0x354   :  { %v838_v4 = vadd.f32 %v837_v1, %v716_v3 }
 0x356   :  { %v861_v5 = vadd.f32 %v3698_v48, %v838_v4 }
 0x358   :  { %v877_v29 = vmax.f32 %v861_v5, 0.0 }
 0x35a   :  { %2833 = vmatmul.msk.f32.gmra.mxu0 %vm318_vm2, %v877_v29 }
 0x35b   :  { %v719_v7 = vpop.f32.mrf.mxu3 }
 0x35c   :  { %v841_v8 = vadd.f32 %v840_v6, %v719_v7 }
 0x35e   :  { %v862_v9 = vadd.f32 %v3698_v48, %v841_v8 }
 0x360   :  { %v878_v10 = vmax.f32 %v862_v9, 0.0 }
 0x362   :  { %2834 = vmatmul.msk.f32.gmra.mxu0 %vm318_vm2, %v878_v10 }
 0x363   :  { %v1443_v14 = vpop.f32.mrf.mxu3 }
 0x364   :  { %v1444_v15 = vadd.f32 %v3756_v11, %v1443_v14 }
 0x366   :  { %2971 = vtanh.f32 %v1444_v15 }
 0x367   :  { %v956_v23 = vpop.f32.mrf.mxu0 }
 0x368   :  { %v957_v26 = vadd.f32 %v3761_v17, %v956_v23 }
 0x36a   :  { %v2835_v31 = vmul.f32 -1.442695, %v957_v26 }
 0x36c   :  { %v2972_v32 = vpop.eup %2971  ;;  %2973 = vpow2.f32 %v2835_v31 }
 0x36d   :  { %2853 = vmatmul.msk.f32.vlgmr.msra.gmra.mxu1 %vm1450_vm7, %v2972_v32 }
 0x36e   :  { %1565 = vmatpush.msra.mxu1 %v3725_v41 }
 0x36f   :  { %v959_v48 = vpop.f32.mrf.mxu0 }
 0x370   :  { %v960_v35 = vadd.f32 %v3761_v17, %v959_v48  ;;  %1566 = vmatpush.msra.mxu1 %v3731_v54 }
 0x372   :  { %v2974_v36 = vpop.eup %2973  ;;  %v2836_v40 = vmul.f32 -1.442695, %v960_v35  ;;  %1567 = vmatpush.msra.mxu1 %v3736_v56 }
 0x373   :  { %v1052_v34 = vadd.f32 1.0, %v2974_v36 }
 0x374   :  { %2975 = vpow2.f32 %v2836_v40  ;;  %1568 = vmatpush.msra.mxu1 %v3741_v61  ;;  %v1310_v40 = vld [vmem:[%s4389_s3 + $0x10] sm:$0xff] }
 0x375   :  { %2977 = vrcp.f32 %v1052_v34  ;;  %v1079_v57 = vand.u32 2147483648, %v1052_v34  ;;  %vm1073_vm9 = vweird.f32 %v1052_v34  ;;  %v1077_v2 = vand.u32 2147483647, %v1052_v34 }
 0x377   :  { %v962_v37 = vpop.f32.mrf.mxu0  ;;  %v1080_v22 = vor.u32 1.1754944e-38, %v1079_v57  ;;  %vm1078_vm11 = vcmp.eq.f32.partialorder %v1077_v2, 8.507059e+37 }
 0x378   :  { %v963_v38 = vadd.f32 %v3761_v17, %v962_v37 }
 0x37a   :  { %v2976_v39 = vpop.eup %2975  ;;  %v2837_v42 = vmul.f32 -1.442695, %v963_v38 }
 0x37b   :  { %v2978_v43 = vpop.eup %2977  ;;  %v1053_v44 = vadd.f32 1.0, %v2976_v39 }
 0x37c   :  { %v1069_v45 = vmul.f32 %v2978_v43, %v1052_v34  ;;  %2979 = vpow2.f32 %v2837_v42  ;;  %vm1074_vm8 = vweird.f32 %v2978_v43 }
 0x37d   :  { %2981 = vrcp.f32 %v1053_v44  ;;  %vm1075_vm10 = vmor %vm1073_vm9, %vm1074_vm8  ;;  %v1094_v27 = vand.u32 2147483648, %v1053_v44  ;;  %v1092_v30 = vand.u32 2147483647, %v1053_v44  ;;  %vm1088_vm13 = vweird.f32 %v1053_v44 }
 0x37e   :  { %v1070_v50 = vsub.f32 1.0, %v1069_v45 }
 0x37f   :  { %v965_v51 = vpop.f32.mrf.mxu0  ;;  %v1095_v63 = vor.u32 1.1754944e-38, %v1094_v27  ;;  %vm1093_vm15 = vcmp.eq.f32.partialorder %v1092_v30, 8.507059e+37 }
 0x380   :  { %v1071_v52 = vmul.f32 %v2978_v43, %v1070_v50  ;;  %v966_v53 = vadd.f32 %v3761_v17, %v965_v51 }
 0x382   :  { %v2980_v59 = vpop.eup %2979  ;;  %v1072_v60 = vadd.f32 %v2978_v43, %v1071_v52  ;;  %v2838_v12 = vmul.f32 -1.442695, %v966_v53 }
 0x383   :  { %v2982_v13 = vpop.eup %2981  ;;  %v1054_v16 = vadd.f32 1.0, %v2980_v59 }
 0x384   :  { %v1076_v21 = vsel %vm1075_vm10, %v2978_v43, %v1072_v60  ;;  %v1084_v20 = vmul.f32 %v2982_v13, %v1053_v44  ;;  %2983 = vpow2.f32 %v2838_v12  ;;  %vm1089_vm12 = vweird.f32 %v2982_v13  ;;  %v1311_v12 = vld [vmem:[%s4389_s3 + $0x18] sm:$0xff] }
 0x385   :  { %2985 = vrcp.f32 %v1054_v16  ;;  %v1081_v25 = vsel %vm1078_vm11, %v1080_v22, %v1076_v21  ;;  %vm1090_vm14 = vmor %vm1088_vm13, %vm1089_vm12  ;;  %v1109_v8 = vand.u32 2147483648, %v1054_v16  ;;  %v1107_v15 = vand.u32 2147483647, %v1054_v16 }
 0x386   :  { %v1085_v24 = vsub.f32 1.0, %v1084_v20  ;;  %v1324_v49 = vsub.f32 %v1081_v25, %v1308_v18  ;;  %vm1103_vm3 = vweird.f32 %v1054_v16 }
 0x387   :  { %v968_v19 = vpop.f32.mrf.mxu0  ;;  %v1110_v36 = vor.u32 1.1754944e-38, %v1109_v8  ;;  %vm1108_vm9 = vcmp.eq.f32.partialorder %v1107_v15, 8.507059e+37 }
 0x388   :  { %v1086_v28 = vmul.f32 %v2982_v13, %v1085_v24  ;;  %v969_v33 = vadd.f32 %v3761_v17, %v968_v19  ;;  %v1340_v29 = vmul.f32 %v1324_v49, %v1324_v49 }
 0x38a   :  { %v2984_v46 = vpop.eup %2983  ;;  %v1087_v55 = vadd.f32 %v2982_v13, %v1086_v28  ;;  %v2839_v58 = vmul.f32 -1.442695, %v969_v33  ;;  %v1356_v26 = vsel %vm172_vm1, %v1340_v29, 0.0 }
 0x38b   :  { %v2986_v62 = vpop.eup %2985  ;;  %v1055_v1 = vadd.f32 1.0, %v2984_v46 }
 0x38c   :  { %v1091_v3 = vsel %vm1090_vm14, %v2982_v13, %v1087_v55  ;;  %v1099_v4 = vmul.f32 %v2986_v62, %v1054_v16  ;;  %2987 = vpow2.f32 %v2839_v58  ;;  %vm1104_vm2 = vweird.f32 %v2986_v62 }
 0x38d   :  { %v1096_v5 = vsel %vm1093_vm15, %v1095_v63, %v1091_v3  ;;  %2989 = vrcp.f32 %v1055_v1  ;;  %vm1105_vm8 = vmor %vm1103_vm3, %vm1104_vm2  ;;  %v1124_v44 = vand.u32 2147483648, %v1055_v1  ;;  %v1122_v52 = vand.u32 2147483647, %v1055_v1 }
 0x38e   :  { %v1325_v6 = vsub.f32 %v1096_v5, %v1309_v0  ;;  %v1100_v7 = vsub.f32 1.0, %v1099_v4  ;;  %vm1118_vm11 = vweird.f32 %v1055_v1 }
 0x38f   :  { %v971_v9 = vpop.f32.mrf.mxu0  ;;  %v1125_v2 = vor.u32 1.1754944e-38, %v1124_v44  ;;  %vm1123_vm13 = vcmp.eq.f32.partialorder %v1122_v52, 8.507059e+37 }
 0x390   :  { %v1341_v10 = vmul.f32 %v1325_v6, %v1325_v6  ;;  %v1101_v14 = vmul.f32 %v2986_v62, %v1100_v7  ;;  %v972_v20 = vadd.f32 %v3761_v17, %v971_v9 }
 0x392   :  { %v2988_v23 = vpop.eup %2987  ;;  %v1357_v31 = vsel %vm172_vm1, %v1341_v10, 0.0  ;;  %v1102_v32 = vadd.f32 %v2986_v62, %v1101_v14  ;;  %v2840_v30 = vmul.f32 -1.442695, %v972_v20 }
 0x393   :  { %v2990_v48 = vpop.eup %2989  ;;  %v1358_v35 = vadd.f32 %v1357_v31, %v1356_v26  ;;  %v1056_v34 = vadd.f32 1.0, %v2988_v23 }
 0x394   :  { %v1106_v37 = vsel %vm1105_vm8, %v2986_v62, %v1102_v32  ;;  %v1114_v38 = vmul.f32 %v2990_v48, %v1055_v1  ;;  %vm1119_vm10 = vweird.f32 %v2990_v48  ;;  %v1312_v62 = vld [vmem:[%s4389_s3 + $0x20] sm:$0xff] }
 0x395   :  { %v1111_v39 = vsel %vm1108_vm9, %v1110_v36, %v1106_v37  ;;  %2991 = vrcp.f32 %v1056_v34  ;;  %vm1120_vm12 = vmor %vm1118_vm11, %vm1119_vm10  ;;  %v1139_v25 = vand.u32 2147483648, %v1056_v34  ;;  %v1137_v28 = vand.u32 2147483647, %v1056_v34 }
 0x396   :  { %v1326_v42 = vsub.f32 %v1111_v39, %v1310_v40  ;;  %v1115_v43 = vsub.f32 1.0, %v1114_v38  ;;  %vm1133_vm15 = vweird.f32 %v1056_v34  ;;  %2993 = vpow2.f32 %v2840_v30 }
 0x397   :  { %v974_v45 = vpop.f32.mrf.mxu0  ;;  %v1140_v58 = vor.u32 1.1754944e-38, %v1139_v25  ;;  %vm1138_vm3 = vcmp.eq.f32.partialorder %v1137_v28, 8.507059e+37 }
 0x398   :  { %v1342_v50 = vmul.f32 %v1326_v42, %v1326_v42  ;;  %v1116_v51 = vmul.f32 %v2990_v48, %v1115_v43  ;;  %v975_v49 = vadd.f32 %v3761_v17, %v974_v45 }
 0x39a   :  { %v1359_v53 = vsel %vm172_vm1, %v1342_v50, 0.0  ;;  %v1117_v57 = vadd.f32 %v2990_v48, %v1116_v51  ;;  %v2841_v4 = vmul.f32 -1.442695, %v975_v49 }
 0x39b   :  { %v2992_v59 = vpop.eup %2991  ;;  %v1360_v60 = vadd.f32 %v1359_v53, %v1358_v35 }
 0x39c   :  { %v1121_v13 = vsel %vm1120_vm12, %v2990_v48, %v1117_v57  ;;  %v1129_v16 = vmul.f32 %v2992_v59, %v1056_v34  ;;  %vm1134_vm14 = vweird.f32 %v2992_v59  ;;  %2995 = vpow2.f32 %v2841_v4  ;;  %v2994_v8 = vpop.eup %2993  ;;  %v1313_v4 = vld [vmem:[%s4389_s3 + $0x28] sm:$0xff] }
 0x39d   :  { %v1126_v21 = vsel %vm1123_vm13, %v1125_v2, %v1121_v13  ;;  %vm1135_vm2 = vmor %vm1133_vm15, %vm1134_vm14  ;;  %v1057_v10 = vadd.f32 1.0, %v2994_v8 }
 0x39e   :  { %v1327_v22 = vsub.f32 %v1126_v21, %v1311_v12  ;;  %v1130_v24 = vsub.f32 1.0, %v1129_v16 }
 0x39f   :  { %v977_v18 = vpop.f32.mrf.mxu0  ;;  %v1154_v20 = vand.u32 2147483648, %v1057_v10  ;;  %vm1148_vm9 = vweird.f32 %v1057_v10 }
 0x3a0   :  { %v1343_v27 = vmul.f32 %v1327_v22, %v1327_v22  ;;  %v1131_v19 = vmul.f32 %v2992_v59, %v1130_v24  ;;  %v978_v1 = vadd.f32 %v3761_v17, %v977_v18 }
 0x3a1   :  { %v1155_v49 = vor.u32 1.1754944e-38, %v1154_v20 }
 0x3a2   :  { %v1361_v33 = vsel %vm172_vm1, %v1343_v27, 0.0  ;;  %v1132_v46 = vadd.f32 %v2992_v59, %v1131_v19  ;;  %v2842_v6 = vmul.f32 -1.442695, %v978_v1  ;;  %v2996_v23 = vpop.eup %2995  ;;  %v1152_v19 = vand.u32 2147483647, %v1057_v10 }
 0x3a3   :  { %v1362_v55 = vadd.f32 %v1361_v33, %v1360_v60  ;;  %v3790_v48 = vadd.f32 1.0, %v2996_v23 }
 0x3a4   :  { %v1136_v63 = vsel %vm1135_vm2, %v2992_v59, %v1132_v46  ;;  %2997 = vpow2.f32 %v2842_v6  ;;  %vm1153_vm12 = vcmp.eq.f32.partialorder %v1152_v19, 8.507059e+37 }
 0x3a5   :  { %v1141_v0 = vsel %vm1138_vm3, %v1140_v58, %v1136_v63  ;;  %2999 = vrcp.f32 %v1057_v10  ;;  %v1169_v1 = vand.u32 2147483648, %v3790_v48  ;;  %vm1163_vm13 = vweird.f32 %v3790_v48 }
 0x3a6   :  { %v1328_v3 = vsub.f32 %v1141_v0, %v1312_v62 }
 0x3a7   :  { %v980_v5 = vpop.f32.mrf.mxu0 }
 0x3a8   :  { %v1344_v29 = vmul.f32 %v1328_v3, %v1328_v3  ;;  %v981_v14 = vadd.f32 %v3761_v17, %v980_v5  ;;  %v1167_v5 = vand.u32 2147483647, %v3790_v48 }
 0x3aa   :  { %v1363_v7 = vsel %vm172_vm1, %v1344_v29, 0.0  ;;  %v2843_v31 = vmul.f32 -1.442695, %v981_v14  ;;  %v2998_v32 = vpop.eup %2997  ;;  %vm1168_vm3 = vcmp.eq.f32.partialorder %v1167_v5, 8.507059e+37 }
 0x3ab   :  { %v3786_v9 = vadd.f32 %v1363_v7, %v1362_v55  ;;  %v3792_v36 = vadd.f32 1.0, %v2998_v32  ;;  %v3000_v34 = vpop.eup %2999 }
 0x3ac   :  { %3001 = vpow2.f32 %v2843_v31  ;;  %v1144_v38 = vmul.f32 %v3000_v34, %v1057_v10  ;;  %vm1149_vm8 = vweird.f32 %v3000_v34  ;;  %v1170_v31 = vor.u32 1.1754944e-38, %v1169_v1 }
 0x3ad   :  { %3003 = vrcp.f32 %v3790_v48  ;;  %vm1150_vm10 = vmor %vm1148_vm9, %vm1149_vm8  ;;  %v1184_v14 = vand.u32 2147483648, %v3792_v36  ;;  %vm1178_vm2 = vweird.f32 %v3792_v36  ;;  %v1182_v32 = vand.u32 2147483647, %v3792_v36 }
 0x3ae   :  { %v1145_v45 = vsub.f32 1.0, %v1144_v38 }
 0x3af   :  { %v983_v15 = vpop.f32.mrf.mxu0  ;;  %vm1183_vm9 = vcmp.eq.f32.partialorder %v1182_v32, 8.507059e+37 }
 0x3b0   :  { %v984_v26 = vadd.f32 %v3761_v17, %v983_v15  ;;  %v1146_v2 = vmul.f32 %v3000_v34, %v1145_v45 }
 0x3b2   :  { %v2844_v35 = vmul.f32 -1.442695, %v984_v26  ;;  %v3002_v39 = vpop.eup %3001  ;;  %v1147_v21 = vadd.f32 %v3000_v34, %v1146_v2 }
 0x3b3   :  { %v3797_v42 = vpop.eup %3003  ;;  %v3799_v50 = vadd.f32 1.0, %v3002_v39 }
 0x3b4   :  { %3005 = vpow2.f32 %v2844_v35  ;;  %v1159_v53 = vmul.f32 %v3797_v42, %v3790_v48  ;;  %v1151_v46 = vsel %vm1150_vm10, %v3000_v34, %v1147_v21  ;;  %vm1164_vm11 = vweird.f32 %v3797_v42 }
 0x3b5   :  { %3007 = vrcp.f32 %v3792_v36  ;;  %v1156_v3 = vsel %vm1153_vm12, %v1155_v49, %v1151_v46  ;;  %vm3832_vm14 = vmor %vm1163_vm13, %vm1164_vm11  ;;  %vm1193_vm11 = vweird.f32 %v3799_v50 }
 0x3b6   :  { %v1160_v13 = vsub.f32 1.0, %v1159_v53  ;;  %v1329_v26 = vsub.f32 %v1156_v3, %v1313_v4 }
 0x3b7   :  { %v986_v40 = vpop.f32.mrf.mxu0 }
 0x3b8   :  { %v987_v37 = vadd.f32 %v3761_v17, %v986_v40  ;;  %v1161_v25 = vmul.f32 %v3797_v42, %v1160_v13 }
 0x3ba   :  { %v2845_v43 = vmul.f32 -1.442695, %v987_v37  ;;  %v3006_v44 = vpop.eup %3005  ;;  %v1162_v63 = vadd.f32 %v3797_v42, %v1161_v25  ;;  %v1314_v37 = vld [vmem:[%s4389_s3 + $0x30] sm:$0xff] }
 0x3bb   :  { %v3801_v52 = vpop.eup %3007  ;;  %v3806_v59 = vadd.f32 1.0, %v3006_v44 }
 0x3bc   :  { %3009 = vpow2.f32 %v2845_v43  ;;  %v1174_v12 = vmul.f32 %v3801_v52, %v3792_v36  ;;  %vm1179_vm15 = vweird.f32 %v3801_v52  ;;  %v1166_v10 = vsel %vm3832_vm14, %v3797_v42, %v1162_v63 }
 0x3bd   :  { %3011 = vrcp.f32 %v3799_v50  ;;  %vm3848_vm8 = vmor %vm1178_vm2, %vm1179_vm15  ;;  %v1171_v34 = vsel %vm1168_vm3, %v1170_v31, %v1166_v10  ;;  %v1185_v36 = vor.u32 1.1754944e-38, %v1184_v14  ;;  %vm1208_vm14 = vweird.f32 %v3806_v59  ;;  %v1316_v14 = vld [vmem:[%s4389_s3 + $0x40] sm:$0xff] }
 0x3be   :  { %v1175_v22 = vsub.f32 1.0, %v1174_v12  ;;  %v1330_v53 = vsub.f32 %v1171_v34, %v1314_v37  ;;  %v1212_v5 = vand.u32 2147483647, %v3806_v59 }
 0x3bf   :  { %v989_v51 = vpop.f32.mrf.mxu0 }
 0x3c0   :  { %v990_v57 = vadd.f32 %v3761_v17, %v989_v51  ;;  %v1176_v55 = vmul.f32 %v3801_v52, %v1175_v22  ;;  %v1345_v51 = vmul.f32 %v1329_v26, %v1329_v26  ;;  %v1197_v22 = vand.u32 2147483647, %v3799_v50 }
 0x3c1   :  { %v1346_v19 = vmul.f32 %v1330_v53, %v1330_v53  ;;  %vm1213_vm3 = vcmp.eq.f32.partialorder %v1212_v5, 8.507059e+37 }
 0x3c2   :  { %v2846_v60 = vmul.f32 -1.442695, %v990_v57  ;;  %v3010_v16 = vpop.eup %3009  ;;  %v1177_v6 = vadd.f32 %v3801_v52, %v1176_v55  ;;  %v1365_v25 = vsel %vm172_vm1, %v1345_v51, 0.0  ;;  %vm1198_vm15 = vcmp.eq.f32.partialorder %v1197_v22, 8.507059e+37  ;;  %v3960_v22 = vld [vmem:[%s4398_s30] ss:$0 sm:$0xff] }
 0x3c3   :  { %v3814_v27 = vpop.eup %3011  ;;  %v3816_v30 = vadd.f32 1.0, %v3010_v16 }
 0x3c4   :  { %3013 = vpow2.f32 %v2846_v60  ;;  %v1189_v0 = vmul.f32 %v3814_v27, %v3799_v50  ;;  %v1181_v38 = vsel %vm3848_vm8, %v3801_v52, %v1177_v6  ;;  %v1199_v60 = vand.u32 2147483648, %v3799_v50  ;;  %v1315_v52 = vld [vmem:[%s4389_s3 + $0x38] sm:$0xff] }
 0x3c5   :  { %3015 = vrcp.f32 %v3806_v59  ;;  %v1186_v57 = vsel %vm1183_vm9, %v1185_v36, %v1181_v38  ;;  %vm1194_vm10 = vweird.f32 %v3814_v27  ;;  %v1227_v32 = vand.u32 2147483647, %v3816_v30  ;;  %v1317_v38 = vld [vmem:[%s4389_s3 + $0x48] sm:$0xff] }
 0x3c6   :  { %v1190_v15 = vsub.f32 1.0, %v1189_v0  ;;  %vm3884_vm12 = vmor %vm1193_vm11, %vm1194_vm10  ;;  %vm1223_vm10 = vweird.f32 %v3816_v30 }
 0x3c7   :  { %v992_v24 = vpop.f32.mrf.mxu0 }
 0x3c8   :  { %v993_v18 = vadd.f32 %v3761_v17, %v992_v24  ;;  %v1191_v44 = vmul.f32 %v3814_v27, %v1190_v15  ;;  %v1331_v24 = vsub.f32 %v1186_v57, %v1315_v52  ;;  %v3915_v15 = vsel %vm172_vm1, %v1346_v19, 0.0 }
 0x3ca   :  { %v3014_v28 = vpop.eup %3013  ;;  %v2847_v33 = vmul.f32 -1.442695, %v993_v18  ;;  %v1192_v16 = vadd.f32 %v3814_v27, %v1191_v44  ;;  %v1347_v29 = vmul.f32 %v1331_v24, %v1331_v24  ;;  %v3962_v24 = vstv %s1418_s24 }
 0x3cb   :  { %v3819_v58 = vadd.f32 1.0, %v3014_v28  ;;  %v3821_v62 = vpop.eup %3015  ;;  %v1200_v28 = vor.u32 1.1754944e-38, %v1199_v60 }
 0x3cc   :  { %3017 = vpow2.f32 %v2847_v33  ;;  %v1204_v7 = vmul.f32 %v3821_v62, %v3806_v59  ;;  %v1214_v33 = vand.u32 2147483648, %v3806_v59  ;;  %vm1209_vm13 = vweird.f32 %v3821_v62 }
 0x3cd   :  { %3019 = vrcp.f32 %v3816_v30  ;;  %v1196_v1 = vsel %vm3884_vm12, %v3814_v27, %v1192_v16  ;;  %vm3900_vm2 = vmor %vm1208_vm14, %vm1209_vm13  ;;  %v3905_v27 = vadd.f32 %v1365_v25, %v3786_v9  ;;  %v3922_v35 = vsel %vm172_vm1, %v1347_v29, 0.0 }
 0x3ce   :  { %3021 = vrcp.f32 %v3819_v58  ;;  %v1205_v39 = vsub.f32 1.0, %v1204_v7  ;;  %v1201_v10 = vsel %vm1198_vm15, %v1200_v28, %v1196_v1  ;;  %v1244_v44 = vand.u32 2147483648, %v3819_v58  ;;  %v1318_v1 = vld [vmem:[%s4389_s3 + $0x50] sm:$0xff] }
 0x3cf   :  { %v995_v8 = vpop.f32.mrf.mxu0  ;;  %v1242_v52 = vand.u32 2147483647, %v3819_v58  ;;  %vm3948_vm12 = vcmp.eq.f32.partialorder %v1227_v32, 8.507059e+37  ;;  %vm1238_vm13 = vweird.f32 %v3819_v58 }
 0x3d0   :  { %v996_v23 = vadd.f32 %v3761_v17, %v995_v8  ;;  %v1206_v2 = vmul.f32 %v3821_v62, %v1205_v39  ;;  %v1332_v39 = vsub.f32 %v1201_v10, %v1316_v14 }
 0x3d2   :  { %v3018_v48 = vpop.eup %3017  ;;  %v2848_v40 = vmul.f32 -1.442695, %v996_v23  ;;  %v1207_v63 = vadd.f32 %v3821_v62, %v1206_v2  ;;  %v1215_v23 = vor.u32 1.1754944e-38, %v1214_v33 }
 0x3d3   :  { %v3856_v42 = vadd.f32 1.0, %v3018_v48  ;;  %v3858_v43 = vpop.eup %3019  ;;  %v1229_v48 = vand.u32 2147483648, %v3816_v30 }
 0x3d4   :  { %3023 = vpow2.f32 %v2848_v40  ;;  %v3861_v45 = vpop.eup %3021  ;;  %v1219_v12 = vmul.f32 %v3858_v43, %v3816_v30  ;;  %v1211_v59 = vsel %vm3900_vm2, %v3821_v62, %v1207_v63  ;;  %v3924_v40 = vpop.f32.mrf.mxu1  ;;  %vm1224_vm8 = vweird.f32 %v3858_v43 }
 0x3d5   :  { %3025 = vrcp.f32 %v3856_v42  ;;  %v1234_v21 = vmul.f32 %v3861_v45, %v3819_v58  ;;  %v1216_v37 = vsel %vm1213_vm3, %v1215_v23, %v1211_v59  ;;  %vm1239_vm9 = vweird.f32 %v3861_v45  ;;  %vm3944_vm11 = vmor %vm1223_vm10, %vm1224_vm8 }
 0x3d6   :  { %v1220_v50 = vsub.f32 1.0, %v1219_v12  ;;  %v1333_v2 = vsub.f32 %v1216_v37, %v1317_v38  ;;  %v1230_v16 = vor.u32 1.1754944e-38, %v1229_v48  ;;  %vm3955_vm14 = vmor %vm1238_vm13, %vm1239_vm9  ;;  %vm1253_vm2 = vweird.f32 %v3856_v42  ;;  %v1320_v37 = vld [vmem:[%s4389_s3 + $0x60] sm:$0xff] }
 0x3d7   :  { %v998_v13 = vpop.f32.mrf.mxu0  ;;  %v1235_v3 = vsub.f32 1.0, %v1234_v21  ;;  %vm1243_vm3 = vcmp.eq.f32.partialorder %v1242_v52, 8.507059e+37  ;;  %v1259_v33 = vand.u32 2147483648, %v3856_v42 }
 0x3d8   :  { %v999_v20 = vadd.f32 %v3761_v17, %v998_v13  ;;  %v1221_v7 = vmul.f32 %v3858_v43, %v1220_v50 }
 0x3d9   :  { %v1236_v26 = vmul.f32 %v3861_v45, %v1235_v3  ;;  %v1260_v23 = vor.u32 1.1754944e-38, %v1259_v33 }
 0x3da   :  { %v3024_v18 = vpop.eup %3023  ;;  %v2849_v46 = vmul.f32 -1.442695, %v999_v20  ;;  %v1245_v20 = vor.u32 1.1754944e-38, %v1244_v44  ;;  %v1368_v44 = vadd.f32 %v3915_v15, %v3905_v27 }
 0x3db   :  { %v3882_v49 = vpop.eup %3025  ;;  %v3890_v0 = vadd.f32 1.0, %v3024_v18  ;;  %v1237_v60 = vadd.f32 %v3861_v45, %v1236_v26  ;;  %v1348_v18 = vmul.f32 %v1332_v39, %v1332_v39 }
 0x3dc   :  { %v1249_v4 = vmul.f32 %v3882_v49, %v3856_v42  ;;  %3027 = vpow2.f32 %v2849_v46  ;;  %vm1254_vm15 = vweird.f32 %v3882_v49  ;;  %v1349_v46 = vmul.f32 %v1333_v2, %v1333_v2  ;;  %v4025_v2 = vld [vmem:[%s3298_s25 + $0x8] sm:$0xff] }
 0x3dd   :  { %3029 = vrcp.f32 %v3890_v0  ;;  %v1241_v58 = vsel %vm3955_vm14, %v3861_v45, %v1237_v60  ;;  %v1257_v45 = vand.u32 2147483647, %v3856_v42  ;;  %vm3988_vm9 = vmor %vm1253_vm2, %vm1254_vm15  ;;  %vm1268_vm10 = vweird.f32 %v3890_v0 }
 0x3de   :  { %v1250_v31 = vsub.f32 1.0, %v1249_v4  ;;  %v1246_v29 = vsel %vm1243_vm3, %v1245_v20, %v1241_v58  ;;  %v1272_v14 = vand.u32 2147483647, %v3890_v0  ;;  %v1370_v30 = vadd.f32 %v3922_v35, %v1368_v44 }
 0x3df   :  { %v1001_v8 = vpop.f32.mrf.mxu0  ;;  %v1373_v27 = vsel %vm172_vm1, %v1349_v46, 0.0 }
 0x3e0   :  { %v1002_v9 = vadd.f32 %v3761_v17, %v1001_v8  ;;  %v1222_v17 = vadd.f32 %v3858_v43, %v1221_v7  ;;  %v1251_v53 = vmul.f32 %v3882_v49, %v1250_v31  ;;  %v1274_v7 = vand.u32 2147483648, %v3890_v0  ;;  %v1319_v8 = vld [vmem:[%s4389_s3 + $0x58] sm:$0xff] }
 0x3e1   :  { %vm1273_vm13 = vcmp.eq.f32.partialorder %v1272_v14, 8.507059e+37 }
 0x3e2   :  { %v3028_v62 = vpop.eup %3027  ;;  %v2850_v34 = vmul.f32 -1.442695, %v1002_v9  ;;  %v1226_v25 = vsel %vm3944_vm11, %v3858_v43, %v1222_v17  ;;  %v1252_v19 = vadd.f32 %v3882_v49, %v1251_v53  ;;  %v1321_v17 = vld [vmem:[%s4389_s3 + $0x68] sm:$0xff]  ;;  %v1371_v53 = vsel %vm172_vm1, %v1348_v18, 0.0 }
 0x3e3   :  { %v3928_v36 = vpop.eup %3029  ;;  %v3933_v51 = vadd.f32 1.0, %v3028_v62  ;;  %v1231_v63 = vsel %vm3948_vm12, %v1230_v16, %v1226_v25  ;;  %vm1258_vm12 = vcmp.eq.f32.partialorder %v1257_v45, 8.507059e+37  ;;  %v1275_v62 = vor.u32 1.1754944e-38, %v1274_v7  ;;  %v1322_v16 = vld [vmem:[%s4389_s3 + $0x70] sm:$0xff]  ;;  %v4033_v25 = vld [vmem:[%s3298_s25] sm:$0xff]  ;;  %v1323_v7 = vld [vmem:[%s4389_s3 + $0x78] sm:$0xff] }
 0x3e4   :  { %v1264_v57 = vmul.f32 %v3928_v36, %v3890_v0  ;;  %3031 = vpow2.f32 %v2850_v34  ;;  %vm1269_vm8 = vweird.f32 %v3928_v36  ;;  %v1256_v59 = vsel %vm3988_vm9, %v3882_v49, %v1252_v19 }
 0x3e5   :  { %3033 = vrcp.f32 %v3933_v51  ;;  %vm4004_vm11 = vmor %vm1268_vm10, %vm1269_vm8  ;;  %v1334_v31 = vsub.f32 %v1231_v63, %v1318_v1  ;;  %v1335_v0 = vsub.f32 %v1246_v29, %v1319_v8  ;;  %v1261_v48 = vsel %vm1258_vm12, %v1260_v23, %v1256_v59 }
 0x3e6   :  { %v1265_v21 = vsub.f32 1.0, %v1264_v57  ;;  %v1289_v34 = vand.u32 2147483648, %v3933_v51  ;;  %v1287_v39 = vand.u32 2147483647, %v3933_v51  ;;  %vm1283_vm15 = vweird.f32 %v3933_v51 }
 0x3e7   :  { %v1336_v60 = vsub.f32 %v1261_v48, %v1320_v37  ;;  %v1350_v52 = vmul.f32 %v1334_v31, %v1334_v31  ;;  %v1372_v58 = vadd.f32 %v1371_v53, %v1370_v30  ;;  %v3182_v48 = vmov 512.0  }
 0x3e8   :  { %v1266_v28 = vmul.f32 %v3928_v36, %v1265_v21  ;;  %v1290_v13 = vor.u32 1.1754944e-38, %v1289_v34  ;;  %v1351_v21 = vmul.f32 %v1335_v0, %v1335_v0  ;;  %vm1288_vm3 = vcmp.eq.f32.partialorder %v1287_v39, 8.507059e+37 }
 0x3e9   :  { %v1352_v33 = vmul.f32 %v1336_v60, %v1336_v60  ;;  %v1374_v46 = vadd.f32 %v1373_v27, %v1372_v58  ;;  %vm2070_vm12 = vcmask 654336  }
 0x3ea   :  { %v3032_v43 = vpop.eup %3031  ;;  %v1471_v55 = vpop.f32.mrf.mxu1  ;;  %v1267_v50 = vadd.f32 %v3928_v36, %v1266_v28 }
 0x3eb   :  { %v3034_v3 = vpop.eup %3033  ;;  %v3981_v4 = vadd.f32 1.0, %v3032_v43  ;;  %v1472_v5 = vadd.f32 %v3960_v22, %v1471_v55  ;;  %v1375_v43 = vsel %vm172_vm1, %v1350_v52, 0.0  ;;  %v1377_v55 = vsel %vm172_vm1, %v1351_v21, 0.0 }
 0x3ec   :  { %v1279_v10 = vmul.f32 %v3034_v3, %v3933_v51  ;;  %v1271_v49 = vsel %vm4004_vm11, %v3928_v36, %v1267_v50  ;;  %vm1284_vm14 = vweird.f32 %v3034_v3  ;;  %v1376_v1 = vadd.f32 %v1375_v43, %v1374_v46  ;;  %v4080_v46 = vld [vmem:[%s4386_s5 + $0x8] sm:$0xff] }
 0x3ed   :  { %3035 = vrcp.f32 %v3981_v4  ;;  %v1475_v42 = vmul.f32 %v3962_v24, %v1472_v5  ;;  %v1276_v36 = vsel %vm1273_vm13, %v1275_v62, %v1271_v49  ;;  %vm1285_vm2 = vmor %vm1283_vm15, %vm1284_vm14  ;;  %v1304_v35 = vand.u32 2147483648, %v3981_v4 }
 0x3ee   :  { %v1280_v9 = vsub.f32 1.0, %v1279_v10  ;;  %v1337_v20 = vsub.f32 %v1276_v36, %v1321_v17  ;;  %v1302_v45 = vand.u32 2147483647, %v3981_v4  ;;  %vm1298_vm9 = vweird.f32 %v3981_v4 }
 0x3ef   :  { %v4012_v32 = vadd.f32 %v1475_v42, %v3693_v47  ;;  %v1379_v29 = vsel %vm172_vm1, %v1352_v33, 0.0  ;;  %v1305_v6 = vor.u32 1.1754944e-38, %v1304_v35  ;;  %v1378_v8 = vadd.f32 %v1377_v55, %v1376_v1  ;;  %v4084_v55 = vld [vmem:[%s4386_s5] sm:$0xff] }
 0x3f0   :  { %v1281_v38 = vmul.f32 %v3034_v3, %v1280_v9  ;;  %v1353_v50 = vmul.f32 %v1337_v20, %v1337_v20  ;;  %vm1303_vm11 = vcmp.eq.f32.partialorder %v1302_v45, 8.507059e+37  ;;  %3037 = vrcp.f32 %v3182_v48  ;;  %v4061_v20 = vld [vmem:[%s4386_s5 + $0x10] sm:$0xff] }
 0x3f1   :  { %2854 = vmatmul.msk.f32.vlgmr.msra.gmra.mxu3 %vm1422_vm6, %v4012_v32  ;;  %v1380_v42 = vadd.f32 %v1379_v29, %v1378_v8  ;;  %vm2033_vm13 = vcmask 1045504   ;;  %vm2122_vm14 = vcmask 64512  }
 0x3f2   :  { %v1282_v57 = vadd.f32 %v3034_v3, %v1281_v38  ;;  %1592 = vmatpush.msra.mxu3 %v4025_v2  ;;  %v1381_v59 = vsel %vm172_vm1, %v1353_v50, 0.0 }
 0x3f3   :  { %v3036_v12 = vpop.eup %3035  ;;  %v1382_v31 = vadd.f32 %v1381_v59, %v1380_v42 }
 0x3f4   :  { %v1286_v15 = vsel %vm1285_vm2, %v3034_v3, %v1282_v57  ;;  %v1294_v51 = vmul.f32 %v3036_v12, %v3981_v4  ;;  %1593 = vmatpush.msra.mxu3 %v4033_v25  ;;  %vm1299_vm8 = vweird.f32 %v3036_v12 }
 0x3f5   :  { %v1291_v18 = vsel %vm1288_vm3, %v1290_v13, %v1286_v15  ;;  %vm1300_vm10 = vmor %vm1298_vm9, %vm1299_vm8 }
 0x3f6   :  { %v1295_v19 = vsub.f32 1.0, %v1294_v51  ;;  %v1338_v28 = vsub.f32 %v1291_v18, %v1322_v16  ;;  %v3038_v62 = vpop.eup %3037  ;;  %v4057_v51 = vld [vmem:[%s4386_s5 + $0x18] sm:$0xff]  ;;  %s3184_s5 = smov [#allocation5]  }
 0x3f7   :  { %v1397_v34 = vmul.f32 512.0, %v3038_v62 }
 0x3f8   :  { %v1296_v63 = vmul.f32 %v3036_v12, %v1295_v19  ;;  %v1354_v5 = vmul.f32 %v1338_v28, %v1338_v28 }
 0x3f9   :  { %v1398_v39 = vsub.f32 1.0, %v1397_v34 }
 0x3fa   :  { %v1297_v3 = vadd.f32 %v3036_v12, %v1296_v63  ;;  %v1383_v26 = vsel %vm172_vm1, %v1354_v5, 0.0 }
 0x3fb   :  { %v1384_v49 = vadd.f32 %v1383_v26, %v1382_v31  ;;  %v1399_v53 = vmul.f32 %v3038_v62, %v1398_v39 }
 0x3fc   :  { %v1301_v10 = vsel %vm1300_vm10, %v3036_v12, %v1297_v3  ;;  %v4096_v3 = vld [vmem:[%s4387_s9] ss:$0 sm:$0xff]  ;;  %s2703_s9 = sshll.u32 %s3184_s5, 4  ;;  %s2704_s9 = int_to_ptr.vmem [resolvable:$true] %s2703_s9 }
 0x3fd   :  { %v1306_v14 = vsel %vm1303_vm11, %v1305_v6, %v1301_v10  ;;  %v1400_v12 = vadd.f32 %v3038_v62, %v1399_v53  ;;  %v1674_v6 = vstv %s1626_s18 }
 0x3fe   :  { %v1339_v23 = vsub.f32 %v1306_v14, %v1323_v7 }
 0x400   :  { %v1355_v9 = vmul.f32 %v1339_v23, %v1339_v23 }
 0x402   :  { %v1385_v4 = vsel %vm172_vm1, %v1355_v9, 0.0  ;;  %vm1401_vm1 = vweird.f32 %v3038_v62 }
 0x403   :  { %v1386_v0 = vadd.f32 %v1385_v4, %v1384_v49  ;;  %v1402_v21 = vsel %vm1401_vm1, %v3038_v62, %v1400_v12 }
 0x405   :  { %1387 = vadd.xlane.f32.xlu1 %v1386_v0 }
 0x474   :  { %v1497_v37 = vpop.f32.mrf.mxu3 }
 0x475   :  { %v1498_v38 = vadd.f32 %v3756_v11, %v1497_v37 }
 0x477   :  { %3039 = vtanh.f32 %v1498_v38 }
 0x478   :  { %v1388_v36 = vpop.xlane.xlu1 %1387 }
 0x479   :  { %v1389_v17 = vrot.slane %v1388_v36, 4 }
 0x47b   :  { %v1390_v44 = vadd.f32 %v1389_v17, %v1388_v36 }
 0x47d   :  { %v3040_v57 = vpop.eup %3039  ;;  %v1391_v60 = vrot.slane %v1390_v44, 2 }
 0x47e   :  { %2855 = vmatmul.msk.f32.vlgmr.msrb.gmra.mxu1 %vm1450_vm7, %v3040_v57 }
 0x47f   :  { %v1392_v52 = vadd.f32 %v1391_v60, %v1390_v44  ;;  %1614 = vmatpush.msrb.mxu1 %v3725_v41 }
 0x481   :  { %v1393_v13 = vrot.slane %v1392_v52, 1  ;;  %1615 = vmatpush.msrb.mxu1 %v3731_v54 }
 0x483   :  { %v1394_v16 = vadd.f32 %v1393_v13, %v1392_v52  ;;  %1616 = vmatpush.msrb.mxu1 %v3736_v56 }
 0x485   :  { %2917 = vpush %v1394_v16  ;;  %1617 = vmatpush.msrb.mxu1 %v3741_v61 }
 0x486   :  { %2919 = vpush %v1402_v21 }
 0x4b6   :  { %s2918_s25 = spop %2917 }
 0x4b7   :  { %s2920_s6 = spop %2919 }
 0x4b8   :  { %s1404_s12 = smul.f32 %s2920_s6, %s2918_s25 }
 0x4ba   :  { %v1405_v30 = vstv %s1404_s12 }
 0x4bb   :  { %1406 = vst [vmem:[#allocation5] sm:$0x1] %v1405_v30 }
 0x4fb   :  { %v1521_v41 = vpop.f32.mrf.mxu1 }
 0x4fc   :  { %v1522_v27 = vadd.f32 %v3960_v22, %v1521_v41 }
 0x4fe   :  { %v1524_v54 = vmul.f32 %v1522_v27, %v3962_v24 }
 0x500   :  { %v1525_v15 = vadd.f32 %v1524_v54, %v4012_v32 }
 0x502   :  { %2856 = vmatmul.msk.f32.vlgmr.msrb.gmra.mxu3 %vm1422_vm6, %v1525_v15 }
 0x503   :  { %1666 = vmatpush.msrb.mxu3 %v4057_v51 }
 0x505   :  { %1667 = vmatpush.msrb.mxu3 %v4061_v20 }
 0x507   :  { %1668 = vmatpush.msrb.mxu3 %v3736_v56 }
 0x509   :  { %1669 = vmatpush.msrb.mxu3 %v3741_v61 }
 0x585   :  { %v1546_v18 = vpop.f32.mrf.mxu3 }
 0x586   :  { %v1547_v58 = vadd.f32 %v3756_v11, %v1546_v18  ;;  %v2069_v18 = vld [vmem:[%s4409_s28 + $0x48] sm:$0xff] }
 0x588   :  { %3041 = vtanh.f32 %v1547_v58  ;;  %v2068_v58 = vld [vmem:[%s4409_s28 + $0x40] sm:$0xff] }
 0x58e   :  { %v3042_v19 = vpop.eup %3041 }
 0x58f   :  { %2857 = vmatmul.msk.f32.vlgmr.msra.gmra.mxu1 %vm1450_vm7, %v3042_v19 }
 0x590   :  { %1694 = vmatpush.msra.mxu1 %v4025_v2 }
 0x592   :  { %1695 = vmatpush.msra.mxu1 %v4033_v25 }
 0x60c   :  { %v1570_v32 = vpop.f32.mrf.mxu1 }
 0x60d   :  { %v1571_v28 = vadd.f32 %v3960_v22, %v1570_v32 }
 0x60f   :  { %v1573_v56 = vmul.f32 %v1571_v28, %v3962_v24 }
 0x611   :  { %v1574_v33 = vadd.f32 %v1573_v56, %v1525_v15  ;;  %v2067_v56 = vld [vmem:[%s4409_s28 + $0x38] sm:$0xff] }
 0x613   :  { %2858 = vmatmul.msk.f32.vlgmr.msra.gmra.mxu3 %vm1422_vm6, %v1574_v33 }
 0x614   :  { %1743 = vmatpush.msra.mxu3 %v4025_v2 }
 0x616   :  { %1744 = vmatpush.msra.mxu3 %v4033_v25 }
 0x696   :  { %v1595_v61 = vpop.f32.mrf.mxu3 }
 0x697   :  { %v1596_v43 = vadd.f32 %v3756_v11, %v1595_v61  ;;  %v2065_v61 = vld [vmem:[%s4409_s28 + $0x28] sm:$0xff] }
 0x699   :  { %3043 = vtanh.f32 %v1596_v43  ;;  %v2064_v43 = vld [vmem:[%s4409_s28 + $0x20] sm:$0xff] }
 0x69f   :  { %v3044_v35 = vpop.eup %3043 }
 0x6a0   :  { %2859 = vmatmul.msk.f32.vlgmr.msrb.gmra.mxu1 %vm1450_vm7, %v3044_v35  ;;  %v2063_v35 = vld [vmem:[%s4409_s28 + $0x18] sm:$0xff] }
 0x6a1   :  { %1765 = vmatpush.msrb.mxu1 %v4057_v51 }
 0x6a3   :  { %1766 = vmatpush.msrb.mxu1 %v4061_v20 }
 0x6a5   :  { %1767 = vmatpush.msrb.mxu1 %v4080_v46 }
 0x6a7   :  { %1768 = vmatpush.msrb.mxu1 %v4084_v55 }
 0x71d   :  { %v1619_v63 = vpop.f32.mrf.mxu1 }
 0x71e   :  { %v1620_v11 = vadd.f32 %v3960_v22, %v1619_v63  ;;  %v2060_v63 = vld [vmem:[%s4409_s28] sm:$0xff] }
 0x720   :  { %v1622_v45 = vmul.f32 %v1620_v11, %v3962_v24 }
 0x722   :  { %v4089_v50 = vadd.f32 %v1622_v45, %v1574_v33  ;;  %v2066_v33 = vld [vmem:[%s4409_s28 + $0x30] sm:$0xff] }
 0x724   :  { %2861 = vmatmul.msk.f32.vlgmr.msrb.gmra.mxu2 %vm1422_vm6, %v4089_v50 }
 0x725   :  { %1792 = vmatpush.msrb.mxu2 %v4025_v2 }
 0x727   :  { %1793 = vmatpush.msrb.mxu2 %v4033_v25 }
 0x7a7   :  { %v1647_v1 = vpop.f32.mrf.mxu2 }
 0x7a8   :  { %v1648_v5 = vadd.f32 %v4096_v3, %v1647_v1 }
 0x7aa   :  { %3045 = vtanh.f32 %v1648_v5 }
 0x7b0   :  { %v3046_v29 = vpop.eup %3045 }
 0x7b1   :  { %2862 = vmatmul.msk.f32.vlgmr.msrb.gmra.mxu3 %vm1450_vm7, %v3046_v29  ;;  %v2964_v29 = vld [vmem:[%s4410_s1] ss:$0 sm:$0xff] }
 0x7b2   :  { %1814 = vmatpush.msrb.mxu3 %v4057_v51 }
 0x7b4   :  { %1815 = vmatpush.msrb.mxu3 %v4061_v20 }
 0x7b6   :  { %1816 = vmatpush.msrb.mxu3 %v4080_v46 }
 0x7b8   :  { %1817 = vmatpush.msrb.mxu3 %v4084_v55 }
 0x834   :  { %v1671_v24 = vpop.f32.mrf.mxu3 }
 0x835   :  { %v1672_v7 = vadd.f32 %v3960_v22, %v1671_v24  ;;  %v558_v24 = vadd.f32 %v2964_v29, %v3924_v40 }
 0x837   :  { %v1675_v8 = vmul.f32 %v1674_v6, %v1672_v7 }
 0x839   :  { %v1676_v10 = vadd.f32 %v1675_v8, %v4089_v50 }
 0x83b   :  { %2863 = vmatmul.msk.f32.vlgmr.msra.gmra.mxu1 %vm1422_vm6, %v1676_v10 }
 0x83c   :  { %1844 = vmatpush.msra.mxu1 %v4025_v2 }
 0x83e   :  { %1845 = vmatpush.msra.mxu1 %v4033_v25 }
 0x8b8   :  { %v1697_v59 = vpop.f32.mrf.mxu1 }
 0x8b9   :  { %v1698_v14 = vadd.f32 %v4096_v3, %v1697_v59  ;;  %v2036_v59 = vld [vmem:[%s4411_s2 + $0x8] sm:$0xff] }
 0x8bb   :  { %3047 = vtanh.f32 %v1698_v14  ;;  %v2035_v14 = vld [vmem:[%s4411_s2] sm:$0xff] }
 0x8c1   :  { %v3048_v42 = vpop.eup %3047 }
 0x8c2   :  { %2864 = vmatmul.msk.f32.vlgmr.msra.gmra.mxu2 %vm1450_vm7, %v3048_v42 }
 0x8c3   :  { %1866 = vmatpush.msra.mxu2 %v4057_v51 }
 0x8c5   :  { %1867 = vmatpush.msra.mxu2 %v4061_v20 }
 0x8c7   :  { %1868 = vmatpush.msra.mxu2 %v4080_v46 }
 0x8c9   :  { %1869 = vmatpush.msra.mxu2 %v4084_v55 }
 0x945   :  { %v1721_v23 = vpop.f32.mrf.mxu2 }
 0x946   :  { %v1722_v26 = vadd.f32 %v3960_v22, %v1721_v23  ;;  %v2024_v23 = vrot.slane %v4089_v50, 6  ;;  %v2094_v50 = vld [vmem:[%s4413_s10] sm:$0xff] }
 0x948   :  { %v1724_v31 = vmul.f32 %v1722_v26, %v1674_v6 }
 0x94a   :  { %v1725_v9 = vadd.f32 %v1724_v31, %v1676_v10 }
 0x94c   :  { %2865 = vmatmul.msk.f32.vlgmr.msra.gmra.mxu3 %vm1422_vm6, %v1725_v9 }
 0x94d   :  { %1894 = vmatpush.msra.mxu3 %v4025_v2 }
 0x94f   :  { %1895 = vmatpush.msra.mxu3 %v4033_v25 }
 0x9cf   :  { %v1746_v49 = vpop.f32.mrf.mxu3 }
 0x9d0   :  { %v1747_v4 = vadd.f32 %v4096_v3, %v1746_v49  ;;  %v2031_v49 = vsel %vm653_vm4, %v3693_v47, %v2024_v23  ;;  %v4200_v47 = vld [vmem:[%s4415_s15] sm:$0x7] }
 0x9d2   :  { %3049 = vtanh.f32 %v1747_v4 }
 0x9d8   :  { %v3050_v0 = vpop.eup %3049 }
 0x9d9   :  { %2866 = vmatmul.msk.f32.vlgmr.msrb.gmra.mxu1 %vm1450_vm7, %v3050_v0 }
 0x9da   :  { %1916 = vmatpush.msrb.mxu1 %v4057_v51 }
 0x9dc   :  { %1917 = vmatpush.msrb.mxu1 %v4061_v20 }
 0x9de   :  { %1918 = vmatpush.msrb.mxu1 %v4080_v46 }
 0x9e0   :  { %1919 = vmatpush.msrb.mxu1 %v4084_v55 }
 0xa56   :  { %v1770_v48 = vpop.f32.mrf.mxu1 }
 0xa57   :  { %v1771_v62 = vadd.f32 %v3960_v22, %v1770_v48 }
 0xa59   :  { %v1773_v34 = vmul.f32 %v1771_v62, %v1674_v6  ;;  %v2183_v62 = vld [vmem:[%s4414_s11] sm:$0xff] }
 0xa5b   :  { %v1774_v37 = vadd.f32 %v1773_v34, %v1725_v9 }
 0xa5d   :  { %2867 = vmatmul.msk.f32.vlgmr.msrb.gmra.mxu2 %vm1422_vm6, %v1774_v37 }
 0xa5e   :  { %1943 = vmatpush.msrb.mxu2 %v4025_v2 }
 0xa60   :  { %1944 = vmatpush.msrb.mxu2 %v4033_v25 }
 0xae0   :  { %v1795_v38 = vpop.f32.mrf.mxu2 }
 0xae1   :  { %v1796_v39 = vadd.f32 %v4096_v3, %v1795_v38 }
 0xae3   :  { %3051 = vtanh.f32 %v1796_v39 }
 0xae9   :  { %v3052_v36 = vpop.eup %3051 }
 0xaea   :  { %2868 = vmatmul.msk.f32.vlgmr.msrb.gmra.mxu3 %vm1450_vm7, %v3052_v36 }
 0xaeb   :  { %1965 = vmatpush.msrb.mxu3 %v4057_v51 }
 0xaed   :  { %1966 = vmatpush.msrb.mxu3 %v4061_v20 }
 0xaef   :  { %1967 = vmatpush.msrb.mxu3 %v4080_v46 }
 0xaf1   :  { %1968 = vmatpush.msrb.mxu3 %v4084_v55 }
 0xb6d   :  { %v1819_v17 = vpop.f32.mrf.mxu3 }
 0xb6e   :  { %v1820_v44 = vadd.f32 %v3960_v22, %v1819_v17  ;;  %v4206_v17 = vld [vmem:[%s4417_s0] sm:$0xff] }
 0xb70   :  { %v1822_v53 = vmul.f32 %v1820_v44, %v1674_v6  ;;  %v4211_v44 = vld [vmem:[%s4417_s0 + $0x8] sm:$0xff] }
 0xb72   :  { %v4140_v57 = vadd.f32 %v1822_v53, %v1774_v37  ;;  %v2970_v37 = vld [vmem:[%s4416_s16] ss:$0 sm:$0xff]  ;;  %v4216_v53 = vld [vmem:[%s4417_s0 + $0x10] sm:$0xff] }
 0xb74   :  { %2870 = vmatmul.msk.f32.vlgmr.msra.gmra.mxu1 %vm1422_vm6, %v4140_v57  ;;  %v2026_v26 = vrot.slane %v4140_v57, 4 }
 0xb75   :  { %1992 = vmatpush.msra.mxu1 %v4025_v2 }
 0xb76   :  { %v2032_v4 = vsel %vm221_vm0, %v2031_v49, %v2026_v26  ;;  %vm2249_vm0 = vcmask 1042432  }
 0xb77   :  { %1993 = vmatpush.msra.mxu1 %v4033_v25  ;;  %v4153_v25 = vstv %s1826_s26 }
 0xbf1   :  { %v1847_v60 = vpop.f32.mrf.mxu1 }
 0xbf2   :  { %v1848_v52 = vadd.f32 %v4096_v3, %v1847_v60  ;;  %v2231_v60 = vld [vmem:[%s3348_s13] sm:$0xff] }
 0xbf4   :  { %3053 = vtanh.f32 %v1848_v52  ;;  %v2232_v52 = vld [vmem:[%s3348_s13 + $0x8] sm:$0xff] }
 0xbfa   :  { %v3054_v12 = vpop.eup %3053 }
 0xbfb   :  { %2871 = vmatmul.msk.f32.vlgmr.msra.gmra.mxu2 %vm1450_vm7, %v3054_v12  ;;  %v3183_v12 = vmov 0  }
 0xbfc   :  { %2014 = vmatpush.msra.mxu2 %v4057_v51  ;;  %2960 = vset.pattern.permute.xlu1 %v3183_v12 }
 0xbfd   :  { %2324 = vperm.xlu1 %2960, %v2231_v60   ;;  %2961 = vset.pattern.permute.xlu2 %v3183_v12 }
 0xbfe   :  { %2015 = vmatpush.msra.mxu2 %v4061_v20  ;;  %2329 = vperm.xlu2 %2961, %v2232_v52  }
 0xc00   :  { %2016 = vmatpush.msra.mxu2 %v4080_v46  ;;  %v2062_v46 = vld [vmem:[%s4409_s28 + $0x10] sm:$0xff] }
 0xc02   :  { %2017 = vmatpush.msra.mxu2 %v4084_v55  ;;  %v2061_v55 = vld [vmem:[%s4409_s28 + $0x8] sm:$0xff] }
 0xc7e   :  { %v1871_v2 = vpop.f32.mrf.mxu2 }
 0xc7f   :  { %v1872_v13 = vadd.f32 %v3960_v22, %v1871_v2 }
 0xc81   :  { %v1875_v16 = vmul.f32 %v4153_v25, %v1872_v13 }
 0xc83   :  { %v1876_v21 = vadd.f32 %v1875_v16, %v4140_v57  ;;  %v4221_v57 = vld [vmem:[%s4417_s0 + $0x18] sm:$0xff] }
 0xc84   :  { %v2234_v16 = vld [vmem:[%s3348_s13 + $0x18] sm:$0xff] }
 0xc85   :  { %2872 = vmatmul.msk.f32.vlgmr.msra.gmra.mxu3 %vm1422_vm6, %v1876_v21 }
 0xc86   :  { %2054 = vmatpush.msra.mxu3 %v2036_v59 }
 0xc88   :  { %2055 = vmatpush.msra.mxu3 %v2035_v14 }
 0xd08   :  { %v1897_v30 = vpop.f32.mrf.mxu3 }
 0xd09   :  { %v1898_v41 = vadd.f32 %v4096_v3, %v1897_v30 }
 0xd0b   :  { %3055 = vtanh.f32 %v1898_v41 }
 0xd11   :  { %v3056_v27 = vpop.eup %3055 }
 0xd12   :  { %2873 = vmatmul.msk.f32.vlgmr.msrb.gmra.mxu1 %vm1450_vm7, %v3056_v27 }
 0xd13   :  { %2080 = vmatpush.msrb.mxu1 %v2069_v18 }
 0xd15   :  { %2081 = vmatpush.msrb.mxu1 %v2068_v58 }
 0xd17   :  { %2082 = vmatpush.msrb.mxu1 %v2067_v56 }
 0xd19   :  { %2083 = vmatpush.msrb.mxu1 %v2066_v33 }
 0xd1b   :  { %2084 = vmatpush.msrb.mxu1 %v2065_v61 }
 0xd1d   :  { %2085 = vmatpush.msrb.mxu1 %v2064_v43 }
 0xd1f   :  { %2086 = vmatpush.msrb.mxu1 %v2063_v35  ;;  %v4244_v35 = vpop.permute.xlu1 %2324 }
 0xd21   :  { %2087 = vmatpush.msrb.mxu1 %v2062_v46 }
 0xd23   :  { %2088 = vmatpush.msrb.mxu1 %v2061_v55 }
 0xd25   :  { %2089 = vmatpush.msrb.mxu1 %v2060_v63 }
 0xd8f   :  { %v1921_v54 = vpop.f32.mrf.mxu1 }
 0xd90   :  { %v1922_v15 = vadd.f32 %v3960_v22, %v1921_v54 }
 0xd92   :  { %v1924_v51 = vmul.f32 %v1922_v15, %v4153_v25 }
 0xd94   :  { %v1925_v20 = vadd.f32 %v1924_v51, %v1876_v21 }
 0xd96   :  { %2874 = vmatmul.msk.f32.vlgmr.msrb.gmra.mxu2 %vm1422_vm6, %v1925_v20 }
 0xe19   :  { %v1946_v19 = vpop.f32.mrf.mxu2 }
 0xe1a   :  { %v1947_v32 = vadd.f32 %v4096_v3, %v1946_v19 }
 0xe1c   :  { %3057 = vtanh.f32 %v1947_v32  ;;  %v4239_v32 = vpop.permute.xlu2 %2329 }
 0xe22   :  { %v3058_v28 = vpop.eup %3057 }
 0xe23   :  { %2875 = vmatmul.msk.f32.vlgmr.msrb.gmra.mxu3 %vm1450_vm7, %v3058_v28 }
 0xea6   :  { %v1970_v11 = vpop.f32.mrf.mxu3 }
 0xea7   :  { %v1971_v45 = vadd.f32 %v3960_v22, %v1970_v11 }
 0xea9   :  { %v1973_v1 = vmul.f32 %v1971_v45, %v4153_v25  ;;  %v2230_v45 = vld [vmem:[%s3343_s20] sm:$0x7]  ;;  %s2705_s20 = sshll.u32 %s3358_s17, 4  ;;  %s2706_s20 = int_to_ptr.hbm [resolvable:$true] %s2705_s20 }
 0xeaa   :  { %s3132_s29 = sshra.s32 %s2706_s20, 4  ;;  %s3133_s29 = int_to_ptr.hbm [resolvable:$true] %s3132_s29 }
 0xeab   :  { %v1974_v5 = vadd.f32 %v1973_v1, %v1925_v20  ;;  %s3134_s3 = scalar_lea.hbm %s3133_s29, 1  ;;  %p3137_p6 = scmp.lt.s32.totalorder %s3133_s29, %s3358_s17 }
 0xeac   :  { %p3135_p5 = scmp.ne.s32.totalorder %s3133_s29, %s3134_s3  ;;  %p3138_p7 = scmp.lt.s32.totalorder %s3136_s8, %s3134_s3 }
 0xead   :  { %2876 = vmatmul.msk.f32.vlgmr.msra.gmra.mxu1 %vm1422_vm6, %v1974_v5 }
 0xeae   :  { %p3139_p8 = por %p3138_p7, %p3137_p6 }
 0xeb0   :  { %p3140_p9 = pnand %p3139_p8, %p3135_p5 }
 0xeb5   :  { %2879 = vmatmul.msk.f32.vlgmr.msrb.gmra.mxu1 %vm2070_vm12, %v558_v24 }
 0xf2a   :  { %v1995_v6 = vpop.f32.mrf.mxu1 }
 0xf2b   :  { %v1996_v7 = vadd.f32 %v4096_v3, %v1995_v6 }
 0xf2d   :  { %3059 = vtanh.f32 %v1996_v7 }
 0xf32   :  { %v2091_v8 = vpop.f32.mrf.mxu1 }
 0xf33   :  { %v3060_v10 = vpop.eup %3059  ;;  %2880 = vmatpush.msk.msrb.mxu2 %vm653_vm4, %v2091_v8  ;;  %vm2236_vm4 = vcmask 23552  }
 0xf34   :  { %2877 = vmatmul.msk.f32.vlgmr.msra.gmra.mxu2 %vm1450_vm7, %v3060_v10 }
 0xf35   :  { %2211 = vmatpush.msra.mxu2 %v2183_v62 }
 0xfb7   :  { %v2019_v42 = vpop.f32.mrf.mxu2 }
 0xfb8   :  { %v2020_v40 = vadd.f32 %v3960_v22, %v2019_v42  ;;  %v2095_v22 = vld [vmem:[%s4412_s7] sm:$0xff] }
 0xfb9   :  { %2881 = vmatmul.msk.f32.vlgmr.msrb.gmra.mxu2 %vm604_vm5, %v2095_v22 }
 0xfba   :  { %v2022_v3 = vmul.f32 %v2020_v40, %v4153_v25  ;;  %v2233_v25 = vld [vmem:[%s3348_s13 + $0x10] sm:$0xff]  ;;  %s4418_s13 = sld [smem:[#allocation23_spill]] }
 0xfbb   :  { %2334 = vperm.xlu2 %2961, %v2233_v25  }
 0xfbc   :  { %v2023_v31 = vadd.f32 %v2022_v3, %v1974_v5 }
 0xfbe   :  { %v2029_v9 = vrot.slane %v2023_v31, 2 }
 0xfc0   :  { %v2034_v0 = vsel %vm2033_vm13, %v2032_v4, %v2029_v9  ;;  %v4259_v26 = vld [vmem:[%s4418_s13] sm:$0x7] }
 0xfc1   :  { %2878 = vmatmul.msk.f32.vlgmr.msra.gmra.mxu3 %vm1422_vm6, %v2034_v0 }
 0xfc3   :  { %2339 = vperm.xlu2 %2961, %v2234_v16  }
0x1015   :  { %v4252_v6 = vpop.permute.xlu2 %2334 }
0x101d   :  { %v4255_v40 = vpop.permute.xlu2 %2339 }
0x103c   :  { %v2119_v34 = vpop.f32.mrf.mxu2 }
0x1044   :  { %v2057_v48 = vpop.f32.mrf.mxu3 }
0x1045   :  { %2141 = vmatpush.msrb.mxu3 %v2057_v48 }
0x1046   :  { %2882 = vmatmul.msk.f32.vlgmr.msrb.gmra.mxu3 %vm2122_vm14, %v2094_v50 }
0x1047   :  { %2887 = vmatpush.msk.msra.mxu3 %vm2249_vm0, %v4200_v47 }
0x104e   :  { %2888 = vmatmul.msk.f32.vlgmr.msra.gmra.mxu3 %vm2236_vm4, %v4206_v17 }
0x1056   :  { %2889 = vmatmul.msk.f32.gmra.mxu3 %vm2236_vm4, %v4211_v44 }
0x105e   :  { %2890 = vmatmul.msk.f32.gmra.mxu3 %vm2236_vm4, %v4216_v53 }
0x1066   :  { %2891 = vmatmul.msk.f32.gmra.mxu3 %vm2236_vm4, %v4221_v57 }
0x10c9   :  { %v2143_v38 = vpop.f32.mrf.mxu3 }
0x10ca   :  { %v2144_v39 = vadd.f32 %v2143_v38, %v2119_v34 }
0x10cc   :  { %v2150_v36 = vadd.f32 %v2970_v37, %v2144_v39 }
0x10ce   :  { %2151 = vxpose.xlu0.b32.start.end [1/1] (short) (narrow) %v2150_v36, 32 }
0x10d1   :  { %v2270_v41 = vpop.f32.mrf.mxu3 }
0x10d9   :  { %v2273_v15 = vpop.f32.mrf.mxu3 }
0x10e1   :  { %v2276_v58 = vpop.f32.mrf.mxu3 }
0x10e9   :  { %v2279_v11 = vpop.f32.mrf.mxu3 }
0x1135   :  { %2959 = vset.pattern.permute.xlu0 %v3183_v12 }
0x1154   :  { %2288 = vperm.xlu0 %2959, %v2230_v45  }
0x1172   :  { %v2167_v2 = vpop.trf.xlu0 }
0x1173   :  { %2883 = vmatmul.msk.f32.vlgmr.msra.gmra.mxu2 %vm2122_vm14, %v2167_v2 }
0x117a   :  { %v2168_v13 = vpop.trf.xlu0 }
0x117b   :  { %2884 = vmatmul.msk.f32.gmra.mxu2 %vm2122_vm14, %v2168_v13 }
0x1182   :  { %v2169_v21 = vpop.trf.xlu0 }
0x1183   :  { %2885 = vmatmul.msk.f32.gmra.mxu2 %vm2122_vm14, %v2169_v21 }
0x118a   :  { %v2170_v30 = vpop.trf.xlu0 }
0x118b   :  { %2886 = vmatmul.msk.f32.gmra.mxu2 %vm2122_vm14, %v2170_v30 }
0x11c6   :  { %v4263_v9 = vpop.permute.xlu0 %2288 }
0x11f6   :  { %v4233_v27 = vpop.f32.mrf.mxu2 }
0x11f7   :  { %v2271_v54 = vadd.f32 %v2270_v41, %v4233_v27 }
0x11f9   :  { %3061 = vtanh.f32 %v2271_v54 }
0x11fe   :  { %v4236_v51 = vpop.f32.mrf.mxu2 }
0x11ff   :  { %v2274_v20 = vadd.f32 %v2273_v15, %v4236_v51  ;;  %v3062_v18 = vpop.eup %3061 }
0x1200   :  { %v2314_v19 = vmul.f32 %v3062_v18, %v3062_v18 }
0x1201   :  { %3063 = vtanh.f32 %v2274_v20 }
0x1202   :  { %v2318_v43 = vsub.f32 1.0, %v2314_v19 }
0x1204   :  { %v2342_v55 = vmul.f32 %v4244_v35, %v2318_v43 }
0x1206   :  { %v4241_v28 = vpop.f32.mrf.mxu2 }
0x1207   :  { %v3064_v56 = vpop.eup %3063  ;;  %v2277_v33 = vadd.f32 %v2276_v58, %v4241_v28 }
0x1208   :  { %v2315_v61 = vmul.f32 %v3064_v56, %v3064_v56 }
0x1209   :  { %3065 = vtanh.f32 %v2277_v33 }
0x120a   :  { %v2319_v46 = vsub.f32 1.0, %v2315_v61 }
0x120c   :  { %v2343_v63 = vmul.f32 %v4239_v32, %v2319_v46 }
0x120e   :  { %v2346_v1 = vadd.f32 %v2343_v63, %v2342_v55  ;;  %v4249_v5 = vpop.f32.mrf.mxu2 }
0x120f   :  { %v3066_v29 = vpop.eup %3065  ;;  %v2280_v24 = vadd.f32 %v2279_v11, %v4249_v5 }
0x1210   :  { %v2316_v7 = vmul.f32 %v3066_v29, %v3066_v29 }
0x1211   :  { %3067 = vtanh.f32 %v2280_v24 }
0x1212   :  { %v2320_v8 = vsub.f32 1.0, %v2316_v7 }
0x1214   :  { %v2344_v10 = vmul.f32 %v4252_v6, %v2320_v8 }
0x1216   :  { %v2347_v59 = vadd.f32 %v2346_v1, %v2344_v10 }
0x1217   :  { %v3068_v14 = vpop.eup %3067 }
0x1218   :  { %v2317_v42 = vmul.f32 %v3068_v14, %v3068_v14  ;;  %2306 = vmatpush.msra.mxu1 %v3068_v14 }
0x121a   :  { %2307 = vmatpush.msra.mxu1 %v3066_v29  ;;  %v2321_v23 = vsub.f32 1.0, %v2317_v42 }
0x121c   :  { %v2345_v3 = vmul.f32 %v4255_v40, %v2321_v23  ;;  %2308 = vmatpush.msra.mxu1 %v3064_v56 }
0x121e   :  { %v2348_v31 = vadd.f32 %v2347_v59, %v2345_v3  ;;  %2309 = vmatpush.msra.mxu1 %v3062_v18 }
0x121f   :  { %2892 = vmatmul.msk.f32.vlgmr.msra.gmra.mxu1 %vm1450_vm7, %v4259_v26 }
0x1220   :  { %v2349_v41 = vrot.slane %v2348_v31, 4 }
0x1222   :  { %v2350_v20 = vadd.f32 %v2349_v41, %v2348_v31 }
0x1224   :  { %v2351_v56 = vrot.slane %v2350_v20, 2 }
0x1226   :  { %v2352_v43 = vadd.f32 %v2351_v56, %v2350_v20 }
0x1228   :  { %v2353_v63 = vrot.slane %v2352_v43, 1 }
0x122a   :  { %v2354_v1 = vadd.f32 %v2353_v63, %v2352_v43 }
0x122c   :  { %v2357_v7 = vmul.f32 0.1, %v2354_v1 }
0x122e   :  { %v2358_v59 = vsub.f32 0.0, %v2357_v7 }
0x129c   :  { %v2311_v49 = vpop.f32.mrf.mxu1 }
0x129d   :  { %v2312_v4 = vadd.f32 %v2311_v49, %v4263_v9 }
0x129f   :  { %v2355_v0 = vmul.f32 0.1, %v2312_v4 }
0x12a1   :  { %v2356_v22 = vadd.f32 %v2355_v0, %v4200_v47 }
0x12a3   :  { %2893 = vmatpush.msk.msrb.mxu1 %vm2249_vm0, %v2356_v22 }
0x12a4   :  { %2894 = vmatmul.msk.f32.vlgmr.msrb.gmra.mxu1 %vm2236_vm4, %v4206_v17 }
0x12ac   :  { %2895 = vmatmul.msk.f32.gmra.mxu1 %vm2236_vm4, %v4211_v44 }
0x12b4   :  { %2896 = vmatmul.msk.f32.gmra.mxu1 %vm2236_vm4, %v4216_v53 }
0x12bc   :  { %2897 = vmatmul.msk.f32.gmra.mxu1 %vm2236_vm4, %v4221_v57 }
0x1321   :  { %v2379_v50 = vpop.f32.mrf.mxu1 }
0x1322   :  { %v2380_v48 = vadd.f32 %v2379_v50, %v4233_v27 }
0x1324   :  { %3069 = vtanh.f32 %v2380_v48 }
0x1329   :  { %v2382_v62 = vpop.f32.mrf.mxu1 }
0x132a   :  { %v2383_v47 = vadd.f32 %v2382_v62, %v4236_v51  ;;  %v3070_v34 = vpop.eup %3069 }
0x132b   :  { %v2415_v37 = vmul.f32 %v3070_v34, %v3070_v34 }
0x132c   :  { %3071 = vtanh.f32 %v2383_v47 }
0x132d   :  { %v2419_v60 = vsub.f32 1.0, %v2415_v37 }
0x132f   :  { %v2423_v2 = vmul.f32 %v2419_v60, %v4244_v35 }
0x1331   :  { %v2385_v38 = vpop.f32.mrf.mxu1 }
0x1332   :  { %v3072_v39 = vpop.eup %3071  ;;  %v2386_v36 = vadd.f32 %v2385_v38, %v4241_v28 }
0x1333   :  { %v2416_v52 = vmul.f32 %v3072_v39, %v3072_v39 }
0x1334   :  { %3073 = vtanh.f32 %v2386_v36 }
0x1335   :  { %v2420_v12 = vsub.f32 1.0, %v2416_v52 }
0x1337   :  { %v2424_v25 = vmul.f32 %v2420_v12, %v4239_v32 }
0x1339   :  { %v2427_v13 = vadd.f32 %v2424_v25, %v2423_v2  ;;  %v2388_v16 = vpop.f32.mrf.mxu1 }
0x133a   :  { %v3074_v21 = vpop.eup %3073  ;;  %v2389_v30 = vadd.f32 %v2388_v16, %v4249_v5 }
0x133b   :  { %v2417_v54 = vmul.f32 %v3074_v21, %v3074_v21 }
0x133c   :  { %3075 = vtanh.f32 %v2389_v30 }
0x133d   :  { %v2421_v15 = vsub.f32 1.0, %v2417_v54 }
0x133f   :  { %v2425_v18 = vmul.f32 %v2421_v15, %v4252_v6 }
0x1341   :  { %v2428_v58 = vadd.f32 %v2427_v13, %v2425_v18 }
0x1342   :  { %v3076_v19 = vpop.eup %3075 }
0x1343   :  { %v2418_v33 = vmul.f32 %v3076_v19, %v3076_v19  ;;  %2407 = vmatpush.msra.mxu0 %v3076_v19 }
0x1345   :  { %v2422_v61 = vsub.f32 1.0, %v2418_v33  ;;  %2408 = vmatpush.msra.mxu0 %v3074_v21 }
0x1347   :  { %v2426_v46 = vmul.f32 %v2422_v61, %v4255_v40  ;;  %2409 = vmatpush.msra.mxu0 %v3072_v39 }
0x1349   :  { %v2429_v55 = vadd.f32 %v2428_v58, %v2426_v46  ;;  %2410 = vmatpush.msra.mxu0 %v3070_v34 }
0x134a   :  { %2898 = vmatmul.msk.f32.vlgmr.msra.gmra.mxu0 %vm1450_vm7, %v4259_v26 }
0x134b   :  { %v2430_v11 = vrot.slane %v2429_v55, 4 }
0x134d   :  { %v2431_v45 = vadd.f32 %v2430_v11, %v2429_v55 }
0x134f   :  { %v2432_v29 = vrot.slane %v2431_v45, 2 }
0x1351   :  { %v2433_v24 = vadd.f32 %v2432_v29, %v2431_v45 }
0x1353   :  { %v2434_v8 = vrot.slane %v2433_v24, 1 }
0x1355   :  { %v2435_v10 = vadd.f32 %v2434_v8, %v2433_v24 }
0x1357   :  { %v2438_v14 = vmul.f32 0.1, %v2435_v10 }
0x1359   :  { %v4286_v42 = vsub.f32 %v2358_v59, %v2438_v14 }
0x13c7   :  { %v2412_v23 = vpop.f32.mrf.mxu0 }
0x13c8   :  { %v2413_v3 = vadd.f32 %v2412_v23, %v4263_v9 }
0x13ca   :  { %v2436_v31 = vmul.f32 0.1, %v2413_v3 }
0x13cc   :  { %v2437_v49 = vadd.f32 %v2436_v31, %v2356_v22 }
0x13ce   :  { %2899 = vmatpush.msk.msrb.mxu2 %vm2249_vm0, %v2437_v49 }
0x13cf   :  { %2900 = vmatmul.msk.f32.vlgmr.msrb.gmra.mxu2 %vm2236_vm4, %v4206_v17 }
0x13d7   :  { %2901 = vmatmul.msk.f32.gmra.mxu2 %vm2236_vm4, %v4211_v44 }
0x13df   :  { %2902 = vmatmul.msk.f32.gmra.mxu2 %vm2236_vm4, %v4216_v53 }
0x13e7   :  { %2903 = vmatmul.msk.f32.gmra.mxu2 %vm2236_vm4, %v4221_v57 }
0x1452   :  { %v2460_v4 = vpop.f32.mrf.mxu2 }
0x1453   :  { %v2461_v0 = vadd.f32 %v2460_v4, %v4233_v27 }
0x1455   :  { %3077 = vtanh.f32 %v2461_v0 }
0x145a   :  { %v2463_v50 = vpop.f32.mrf.mxu2 }
0x145b   :  { %v2464_v22 = vadd.f32 %v2463_v50, %v4236_v51  ;;  %v3078_v48 = vpop.eup %3077 }
0x145c   :  { %v2496_v62 = vmul.f32 %v3078_v48, %v3078_v48 }
0x145d   :  { %3079 = vtanh.f32 %v2464_v22 }
0x145e   :  { %v2500_v38 = vsub.f32 1.0, %v2496_v62 }
0x1460   :  { %v2504_v60 = vmul.f32 %v2500_v38, %v4244_v35 }
0x1462   :  { %v2466_v47 = vpop.f32.mrf.mxu2 }
0x1463   :  { %v3080_v34 = vpop.eup %3079  ;;  %v2467_v37 = vadd.f32 %v2466_v47, %v4241_v28 }
0x1464   :  { %v2497_v39 = vmul.f32 %v3080_v34, %v3080_v34 }
0x1465   :  { %3081 = vtanh.f32 %v2467_v37 }
0x1466   :  { %v2501_v36 = vsub.f32 1.0, %v2497_v39 }
0x1468   :  { %v2505_v52 = vmul.f32 %v2501_v36, %v4239_v32 }
0x146a   :  { %v2508_v12 = vadd.f32 %v2505_v52, %v2504_v60  ;;  %v2469_v2 = vpop.f32.mrf.mxu2 }
0x146b   :  { %v3082_v25 = vpop.eup %3081  ;;  %v2470_v13 = vadd.f32 %v2469_v2, %v4249_v5 }
0x146c   :  { %v2498_v16 = vmul.f32 %v3082_v25, %v3082_v25 }
0x146d   :  { %3083 = vtanh.f32 %v2470_v13 }
0x146e   :  { %v2502_v21 = vsub.f32 1.0, %v2498_v16 }
0x1470   :  { %v2506_v30 = vmul.f32 %v2502_v21, %v4252_v6 }
0x1472   :  { %v2509_v41 = vadd.f32 %v2508_v12, %v2506_v30 }
0x1473   :  { %v3084_v54 = vpop.eup %3083 }
0x1474   :  { %v2499_v15 = vmul.f32 %v3084_v54, %v3084_v54  ;;  %2488 = vmatpush.msrb.mxu3 %v3084_v54 }
0x1476   :  { %v2503_v20 = vsub.f32 1.0, %v2499_v15  ;;  %2489 = vmatpush.msrb.mxu3 %v3082_v25 }
0x1478   :  { %v2507_v18 = vmul.f32 %v2503_v20, %v4255_v40  ;;  %2490 = vmatpush.msrb.mxu3 %v3080_v34 }
0x147a   :  { %v2510_v58 = vadd.f32 %v2509_v41, %v2507_v18  ;;  %2491 = vmatpush.msrb.mxu3 %v3078_v48 }
0x147b   :  { %2904 = vmatmul.msk.f32.vlgmr.msrb.gmra.mxu3 %vm1450_vm7, %v4259_v26 }
0x147c   :  { %v2511_v19 = vrot.slane %v2510_v58, 4 }
0x147e   :  { %v2512_v56 = vadd.f32 %v2511_v19, %v2510_v58 }
0x1480   :  { %v2513_v33 = vrot.slane %v2512_v56, 2 }
0x1482   :  { %v2514_v61 = vadd.f32 %v2513_v33, %v2512_v56 }
0x1484   :  { %v2515_v43 = vrot.slane %v2514_v61, 1 }
0x1486   :  { %v2516_v46 = vadd.f32 %v2515_v43, %v2514_v61 }
0x1488   :  { %v2519_v55 = vmul.f32 0.1, %v2516_v46 }
0x148a   :  { %v2520_v63 = vsub.f32 %v4286_v42, %v2519_v55 }
0x14fe   :  { %v2493_v11 = vpop.f32.mrf.mxu3 }
0x14ff   :  { %v2494_v45 = vadd.f32 %v2493_v11, %v4263_v9 }
0x1501   :  { %v2517_v1 = vmul.f32 0.1, %v2494_v45 }
0x1503   :  { %v2518_v29 = vadd.f32 %v2517_v1, %v2437_v49 }
0x1505   :  { %2905 = vmatpush.msk.msrb.mxu0 %vm2249_vm0, %v2518_v29 }
0x1506   :  { %2906 = vmatmul.msk.f32.vlgmr.msrb.gmra.mxu0 %vm2236_vm4, %v4206_v17 }
0x150e   :  { %2907 = vmatmul.msk.f32.gmra.mxu0 %vm2236_vm4, %v4211_v44 }
0x1516   :  { %2908 = vmatmul.msk.f32.gmra.mxu0 %vm2236_vm4, %v4216_v53 }
0x151e   :  { %2909 = vmatmul.msk.f32.gmra.mxu0 %vm2236_vm4, %v4221_v57 }
0x1583   :  { %v2541_v24 = vpop.f32.mrf.mxu0 }
0x1584   :  { %v2542_v7 = vadd.f32 %v2541_v24, %v4233_v27 }
0x1586   :  { %3085 = vtanh.f32 %v2542_v7 }
0x158b   :  { %v2544_v8 = vpop.f32.mrf.mxu0 }
0x158c   :  { %v2545_v10 = vadd.f32 %v2544_v8, %v4236_v51  ;;  %v3086_v59 = vpop.eup %3085 }
0x158d   :  { %v2577_v14 = vmul.f32 %v3086_v59, %v3086_v59 }
0x158e   :  { %3087 = vtanh.f32 %v2545_v10 }
0x158f   :  { %v2581_v31 = vsub.f32 1.0, %v2577_v14 }
0x1591   :  { %v2585_v0 = vmul.f32 %v2581_v31, %v4244_v35 }
0x1593   :  { %v2547_v42 = vpop.f32.mrf.mxu0 }
0x1594   :  { %v3088_v23 = vpop.eup %3087  ;;  %v2548_v3 = vadd.f32 %v2547_v42, %v4241_v28 }
0x1595   :  { %v2578_v49 = vmul.f32 %v3088_v23, %v3088_v23 }
0x1596   :  { %3089 = vtanh.f32 %v2548_v3 }
0x1597   :  { %v2582_v4 = vsub.f32 1.0, %v2578_v49 }
0x1599   :  { %v2586_v50 = vmul.f32 %v2582_v4, %v4239_v32 }
0x159b   :  { %v2589_v22 = vadd.f32 %v2586_v50, %v2585_v0  ;;  %v2550_v48 = vpop.f32.mrf.mxu0 }
0x159c   :  { %v3090_v62 = vpop.eup %3089  ;;  %v2551_v47 = vadd.f32 %v2550_v48, %v4249_v5 }
0x159d   :  { %v2579_v34 = vmul.f32 %v3090_v62, %v3090_v62 }
0x159e   :  { %3091 = vtanh.f32 %v2551_v47 }
0x159f   :  { %v2583_v37 = vsub.f32 1.0, %v2579_v34 }
0x15a1   :  { %v2587_v38 = vmul.f32 %v2583_v37, %v4252_v6 }
0x15a3   :  { %v2590_v39 = vadd.f32 %v2589_v22, %v2587_v38 }
0x15a4   :  { %v3092_v36 = vpop.eup %3091 }
0x15a5   :  { %v2580_v60 = vmul.f32 %v3092_v36, %v3092_v36  ;;  %2569 = vmatpush.msra.mxu3 %v3092_v36 }
0x15a7   :  { %v2584_v52 = vsub.f32 1.0, %v2580_v60  ;;  %2570 = vmatpush.msra.mxu3 %v3090_v62 }
0x15a9   :  { %v2588_v12 = vmul.f32 %v2584_v52, %v4255_v40  ;;  %2571 = vmatpush.msra.mxu3 %v3088_v23 }
0x15ab   :  { %v2591_v2 = vadd.f32 %v2590_v39, %v2588_v12  ;;  %2572 = vmatpush.msra.mxu3 %v3086_v59 }
0x15ac   :  { %2910 = vmatmul.msk.f32.vlgmr.msra.gmra.mxu3 %vm1450_vm7, %v4259_v26 }
0x15ad   :  { %v2592_v25 = vrot.slane %v2591_v2, 4 }
0x15af   :  { %v2593_v13 = vadd.f32 %v2592_v25, %v2591_v2 }
0x15b1   :  { %v2594_v16 = vrot.slane %v2593_v13, 2 }
0x15b3   :  { %v2595_v21 = vadd.f32 %v2594_v16, %v2593_v13 }
0x15b5   :  { %v2596_v30 = vrot.slane %v2595_v21, 1 }
0x15b7   :  { %v2597_v41 = vadd.f32 %v2596_v30, %v2595_v21 }
0x15b9   :  { %v2600_v54 = vmul.f32 0.1, %v2597_v41 }
0x15bb   :  { %v4329_v15 = vsub.f32 %v2520_v63, %v2600_v54 }
0x162f   :  { %v2574_v20 = vpop.f32.mrf.mxu3 }
0x1630   :  { %v2575_v18 = vadd.f32 %v2574_v20, %v4263_v9 }
0x1632   :  { %v2598_v58 = vmul.f32 0.1, %v2575_v18 }
0x1634   :  { %v4332_v19 = vadd.f32 %v2598_v58, %v2518_v29 }
0x1636   :  { %2911 = vmatpush.msk.msrb.mxu3 %vm2249_vm0, %v4332_v19 }
0x1637   :  { %2912 = vmatmul.msk.f32.vlgmr.msrb.gmra.mxu3 %vm2236_vm4, %v4206_v17 }
0x163f   :  { %2913 = vmatmul.msk.f32.gmra.mxu3 %vm2236_vm4, %v4211_v44 }
0x1647   :  { %2914 = vmatmul.msk.f32.gmra.mxu3 %vm2236_vm4, %v4216_v53 }
0x164f   :  { %2915 = vmatmul.msk.f32.gmra.mxu3 %vm2236_vm4, %v4221_v57 }
0x16ba   :  { %v2622_v56 = vpop.f32.mrf.mxu3 }
0x16bb   :  { %v2623_v33 = vadd.f32 %v2622_v56, %v4233_v27 }
0x16bd   :  { %3093 = vtanh.f32 %v2623_v33 }
0x16c2   :  { %v2625_v61 = vpop.f32.mrf.mxu3 }
0x16c3   :  { %v2626_v43 = vadd.f32 %v2625_v61, %v4236_v51  ;;  %v3094_v46 = vpop.eup %3093 }
0x16c4   :  { %v2658_v55 = vmul.f32 %v3094_v46, %v3094_v46 }
0x16c5   :  { %3095 = vtanh.f32 %v2626_v43 }
0x16c6   :  { %v2662_v11 = vsub.f32 1.0, %v2658_v55 }
0x16c8   :  { %v2666_v57 = vmul.f32 %v2662_v11, %v4244_v35 }
0x16ca   :  { %v2628_v17 = vpop.f32.mrf.mxu3 }
0x16cb   :  { %v3096_v63 = vpop.eup %3095  ;;  %v2629_v44 = vadd.f32 %v2628_v17, %v4241_v28 }
0x16cc   :  { %v2659_v45 = vmul.f32 %v3096_v63, %v3096_v63 }
0x16cd   :  { %3097 = vtanh.f32 %v2629_v44 }
0x16ce   :  { %v2663_v53 = vsub.f32 1.0, %v2659_v45 }
0x16d0   :  { %v2667_v1 = vmul.f32 %v2663_v53, %v4239_v32 }
0x16d2   :  { %v2670_v27 = vadd.f32 %v2667_v1, %v2666_v57  ;;  %v2631_v29 = vpop.f32.mrf.mxu3 }
0x16d3   :  { %v3098_v24 = vpop.eup %3097  ;;  %v2632_v51 = vadd.f32 %v2631_v29, %v4249_v5 }
0x16d4   :  { %v2660_v7 = vmul.f32 %v3098_v24, %v3098_v24 }
0x16d5   :  { %3099 = vtanh.f32 %v2632_v51 }
0x16d6   :  { %v2664_v8 = vsub.f32 1.0, %v2660_v7 }
0x16d8   :  { %v2668_v10 = vmul.f32 %v2664_v8, %v4252_v6 }
0x16da   :  { %v2671_v59 = vadd.f32 %v2670_v27, %v2668_v10 }
0x16db   :  { %v3100_v28 = vpop.eup %3099 }
0x16dc   :  { %v2661_v14 = vmul.f32 %v3100_v28, %v3100_v28  ;;  %2650 = vmatpush.msra.mxu1 %v3100_v28 }
0x16de   :  { %v2665_v42 = vsub.f32 1.0, %v2661_v14  ;;  %2651 = vmatpush.msra.mxu1 %v3098_v24 }
0x16e0   :  { %v2669_v35 = vmul.f32 %v2665_v42, %v4255_v40  ;;  %2652 = vmatpush.msra.mxu1 %v3096_v63 }
0x16e2   :  { %v2672_v32 = vadd.f32 %v2671_v59, %v2669_v35  ;;  %2653 = vmatpush.msra.mxu1 %v3094_v46 }
0x16e3   :  { %2916 = vmatmul.msk.f32.vlgmr.msra.gmra.mxu1 %vm1450_vm7, %v4259_v26 }
0x16e4   :  { %v2673_v5 = vrot.slane %v2672_v32, 4 }
0x16e6   :  { %v2674_v23 = vadd.f32 %v2673_v5, %v2672_v32 }
0x16e8   :  { %v2675_v3 = vrot.slane %v2674_v23, 2 }
0x16ea   :  { %v2676_v6 = vadd.f32 %v2675_v3, %v2674_v23 }
0x16ec   :  { %v2677_v31 = vrot.slane %v2676_v6, 1 }
0x16ee   :  { %v2678_v49 = vadd.f32 %v2677_v31, %v2676_v6 }
0x16f0   :  { %v2681_v4 = vmul.f32 0.1, %v2678_v49 }
0x16f2   :  { %v2682_v0 = vsub.f32 %v4329_v15, %v2681_v4 }
0x16f3   :  { %3143 = shalt.err (!%p3140_p9)
}
0x16f4   :  { %2708 = dma.vmem_to_hbm [thread:$0]  %s2704_s9, 16, %s2706_s20, [#allocation3]  }
0x1760   :  { %v2655_v40 = vpop.f32.mrf.mxu1 }
0x1761   :  { %v2656_v26 = vadd.f32 %v2655_v40, %v4263_v9 }
0x1763   :  { %v2679_v50 = vmul.f32 0.1, %v2656_v26 }
0x1765   :  { %v2680_v22 = vadd.f32 %v2679_v50, %v4332_v19 }
0x1767   :  { %v2683_v48 = vmul.f32 0.5, %v2680_v22 }
0x1769   :  { %v2684_v62 = vmul.f32 %v2683_v48, %v2680_v22 }
0x176b   :  { %v2685_v47 = vsub.f32 -0.9189385, %v2684_v62 }
0x176d   :  { %v2686_v34 = vsel %vm2249_vm0, %v2685_v47, 0.0 }
0x176e   :  { %v2687_v37 = vrot.slane %v2686_v34, 4 }
0x1770   :  { %v2688_v38 = vadd.f32 %v2687_v37, %v2686_v34 }
0x1772   :  { %v2689_v39 = vrot.slane %v2688_v38, 2 }
0x1774   :  { %v2690_v36 = vadd.f32 %v2689_v39, %v2688_v38 }
0x1776   :  { %v2691_v60 = vrot.slane %v2690_v36, 1 }
0x1778   :  { %v2692_v52 = vadd.f32 %v2691_v60, %v2690_v36 }
0x177a   :  { %v2693_v12 = vsub.f32 %v2692_v52, %v2682_v0 }
0x177c   :  { %v2694_v2 = vsub.f32 0.0, %v2693_v12 }
0x177e   :  { %2695 = vst [vmem:[%s3353_s21] sm:$0x1] %v2694_v2 }
0x177f   :  { %3146 = dma.done.wait [#allocation3], 16  }
0x1780   :  { %3147 = vsyncadd [#allocation3], 4294967280 }
0x1781   :  { %2715 = vsyncpa [#allocation3], 1 }
0x1782   :  { %2716 = vsyncpa [#allocation4], 1 }

</bundles_post_ra>
